<compile_context>
chip_gen: v5e
topology: v5e:2x2
jax: 0.10.0
libtpu: 0.0.40
codegen_flags: <defaults>
</compile_context>

<pallas_src>
import functools

import jax
import jax.numpy as jnp
from jax import lax
from jax.experimental import pallas as pl
from jax.experimental.pallas import tpu as pltpu

PRIMITIVES = ['none', 'max_pool_3x3', 'avg_pool_3x3', 'skip_connect',
              'sep_conv_3x3', 'sep_conv_5x5', 'dil_conv_3x3', 'dil_conv_5x5']
BN_EPS = 1e-5
VMEM_LIMIT = 32 * 1024 * 1024   # explicit: raises v5e's 16MiB default, safe on v7x (64MiB phys)


def _round_up(x, m):
    return (x + m - 1) // m * m


def _cparams(*dims):
    return pltpu.CompilerParams(dimension_semantics=dims,
                                vmem_limit_bytes=VMEM_LIMIT)


# ----------------------------- matmul (MXU, tiled) -----------------------------

def _matmul_kernel(a_ref, b_ref, o_ref):
    o_ref[...] = jnp.dot(a_ref[...], b_ref[...], preferred_element_type=jnp.float32)


def pallas_matmul(a, b):
    """(M,K)x(K,N) -> (M,N) f32.  bf16 operands, f32 accumulation, tiled M/N grid."""
    m, k = a.shape
    _, n = b.shape
    tm = 256 if m >= 256 else _round_up(m, 16)
    mp = _round_up(m, tm)
    tn = 256 if n > 128 else 128
    np_ = _round_up(n, tn)
    a_p = jnp.pad(a, ((0, mp - m), (0, 0))).astype(jnp.bfloat16)
    b_p = jnp.pad(b, ((0, 0), (0, np_ - n))).astype(jnp.bfloat16)
    y = pl.pallas_call(
        _matmul_kernel,
        grid=(mp // tm, np_ // tn),
        in_specs=[pl.BlockSpec((tm, k), lambda i, j: (i, 0)),
                  pl.BlockSpec((k, tn), lambda i, j: (0, j))],
        out_specs=pl.BlockSpec((tm, tn), lambda i, j: (i, j)),
        out_shape=jax.ShapeDtypeStruct((mp, np_), jnp.float32),
        compiler_params=_cparams("parallel", "parallel"),
    )(a_p, b_p)
    return y[:m, :n]


# ----------------------------- batch norm (tiled, single-pass stats) -----------------------------

def _bn_stats_kernel(x_ref, s_ref, q_ref):
    @pl.when(pl.program_id(0) == 0)
    def _():
        s_ref[...] = jnp.zeros_like(s_ref)
        q_ref[...] = jnp.zeros_like(q_ref)
    x = x_ref[...]
    s_ref[...] += jnp.sum(x, axis=1, keepdims=True)
    q_ref[...] += jnp.sum(x * x, axis=1, keepdims=True)


def _bn_apply_kernel(x_ref, m_ref, r_ref, o_ref):
    o_ref[...] = (x_ref[...] - m_ref[...]) * r_ref[...]


def batchnorm2d(x):
    """training-mode BatchNorm2d: batch statistics, affine=False."""
    n, c, h, w = x.shape
    l = n * h * w
    xm = jnp.transpose(x, (1, 0, 2, 3)).reshape(c, l)
    tl = min(2048, _round_up(l, 128))
    lp = _round_up(l, tl)
    xp = jnp.pad(xm, ((0, 0), (0, lp - l)))      # zero cols add 0 to both sums
    s, q = pl.pallas_call(
        _bn_stats_kernel,
        grid=(lp // tl,),
        in_specs=[pl.BlockSpec((c, tl), lambda i: (0, i))],
        out_specs=(pl.BlockSpec((c, 1), lambda i: (0, 0)),
                   pl.BlockSpec((c, 1), lambda i: (0, 0))),
        out_shape=(jax.ShapeDtypeStruct((c, 1), jnp.float32),
                   jax.ShapeDtypeStruct((c, 1), jnp.float32)),
        compiler_params=_cparams("arbitrary"),
    )(xp)
    mean = s / l
    var = jnp.maximum(q / l - mean * mean, 0.0)
    rstd = lax.rsqrt(var + BN_EPS)
    y = pl.pallas_call(
        _bn_apply_kernel,
        grid=(lp // tl,),
        in_specs=[pl.BlockSpec((c, tl), lambda i: (0, i)),
                  pl.BlockSpec((c, 1), lambda i: (0, 0)),
                  pl.BlockSpec((c, 1), lambda i: (0, 0))],
        out_specs=pl.BlockSpec((c, tl), lambda i: (0, i)),
        out_shape=jax.ShapeDtypeStruct((c, lp), jnp.float32),
        compiler_params=_cparams("parallel"),
    )(xp, mean, rstd)
    return jnp.transpose(y[:, :l].reshape(c, n, h, w), (1, 0, 2, 3))


# ----------------------------- im2col glue -----------------------------

def _extract_patches(x, kh, kw, stride, padding, dilation, pad_value):
    n, c, h, w = x.shape
    xp = jnp.pad(x, ((0, 0), (0, 0), (padding, padding), (padding, padding)),
                 constant_values=pad_value)
    hp, wp = h + 2 * padding, w + 2 * padding
    oh = (hp - dilation * (kh - 1) - 1) // stride + 1
    ow = (wp - dilation * (kw - 1) - 1) // stride + 1
    taps = []
    for i in range(kh):
        for j in range(kw):
            r0, c0 = i * dilation, j * dilation
            taps.append(xp[:, :, r0:r0 + stride * (oh - 1) + 1:stride,
                                 c0:c0 + stride * (ow - 1) + 1:stride])
    return jnp.stack(taps, axis=2), oh, ow            # (N, C, kh*kw, OH, OW)


def conv2d(x, w, *, stride=1, padding=0, dilation=1, relu_input=False):
    n = x.shape[0]
    cout, cin, kh, kw = w.shape
    if relu_input:
        # ReLU fused upstream of patch extraction (no kh*kw-times redundant work);
        # XLA fuses it with the pad/slice glue.
        x = jnp.maximum(x, 0.0)
    patches, oh, ow = _extract_patches(x, kh, kw, stride, padding, dilation, 0.0)
    a = jnp.transpose(patches, (0, 3, 4, 1, 2)).reshape(n * oh * ow, cin * kh * kw)
    b = w.reshape(cout, cin * kh * kw).T
    y = pallas_matmul(a, b)
    return jnp.transpose(y.reshape(n, oh, ow, cout), (0, 3, 1, 2))


# ----------------------------- depthwise conv (taps-leading, lane-tiled) -----------------------------
# TODO(synk): a shifted-accumulation depthwise kernel (no im2col expansion) would cut
# HBM traffic a further kh*kw x; kept as tiled taps-leading im2col for robustness.

def _dw_kernel(p_ref, w_ref, o_ref, *, taps):
    p = p_ref[...]                                    # (taps, C, tl)
    w = w_ref[...]                                    # (C, taps)
    acc = p[0] * w[:, 0:1]
    for k in range(1, taps):
        acc = acc + p[k] * w[:, k:k + 1]
    o_ref[...] = acc


def depthwise_conv2d(x, w, *, stride=1, padding=0, dilation=1, relu_input=False):
    n, c = x.shape[0], x.shape[1]
    kh, kw = w.shape[2], w.shape[3]
    if relu_input:
        x = jnp.maximum(x, 0.0)                       # ReLU before patch extraction
    patches, oh, ow = _extract_patches(x, kh, kw, stride, padding, dilation, 0.0)
    taps = kh * kw
    m = n * oh * ow
    p = jnp.transpose(patches, (2, 1, 0, 3, 4)).reshape(taps, c, m)
    budget = 2 * 1024 * 1024                          # bytes per (taps, C, tl) block
    cap = min(2048, max(128, (budget // (taps * c * 4)) // 128 * 128))
    tl = min(cap, _round_up(m, 128))
    mp = _round_up(m, tl)
    p = jnp.pad(p, ((0, 0), (0, 0), (0, mp - m)))
    wm = w.reshape(c, taps)
    y = pl.pallas_call(
        functools.partial(_dw_kernel, taps=taps),
        grid=(mp // tl,),
        in_specs=[pl.BlockSpec((taps, c, tl), lambda i: (0, 0, i)),
                  pl.BlockSpec((c, taps), lambda i: (0, 0))],
        out_specs=pl.BlockSpec((c, tl), lambda i: (0, i)),
        out_shape=jax.ShapeDtypeStruct((c, mp), jnp.float32),
        compiler_params=_cparams("parallel"),
    )(p, wm)
    return jnp.transpose(y[:, :m].reshape(c, n, oh, ow), (1, 0, 2, 3))


# ----------------------------- 3x3 pools (taps-leading, 2-D grid) -----------------------------

def _maxpool_kernel(t_ref, o_ref, *, taps):
    t = t_ref[...]                                    # (taps, tr, tl)
    acc = t[0]
    for k in range(1, taps):
        acc = jnp.maximum(acc, t[k])
    o_ref[...] = acc


def _avgpool_kernel(t_ref, inv_ref, o_ref, *, taps):
    t = t_ref[...]
    acc = t[0]
    for k in range(1, taps):
        acc = acc + t[k]
    o_ref[...] = acc * inv_ref[...]                   # count_include_pad=False


def _pool_tiles(r, l):
    tr = min(256, _round_up(r, 8))
    rp = _round_up(r, tr)
    tl = min(512, _round_up(l, 128))
    lp = _round_up(l, tl)
    return tr, rp, tl, lp


def max_pool_3x3(x, *, stride):
    n, c, h, w = x.shape
    patches, oh, ow = _extract_patches(x, 3, 3, stride, 1, 1, -jnp.inf)
    r, l = n * c, oh * ow
    t = jnp.transpose(patches, (2, 0, 1, 3, 4)).reshape(9, r, l)
    tr, rp, tl, lp = _pool_tiles(r, l)
    t = jnp.pad(t, ((0, 0), (0, rp - r), (0, lp - l)), constant_values=-jnp.inf)
    y = pl.pallas_call(
        functools.partial(_maxpool_kernel, taps=9),
        grid=(rp // tr, lp // tl),
        in_specs=[pl.BlockSpec((9, tr, tl), lambda i, j: (0, i, j))],
        out_specs=pl.BlockSpec((tr, tl), lambda i, j: (i, j)),
        out_shape=jax.ShapeDtypeStruct((rp, lp), jnp.float32),
        compiler_params=_cparams("parallel", "parallel"),
    )(t)
    return y[:r, :l].reshape(n, c, oh, ow)


def avg_pool_3x3(x, *, stride):
    n, c, h, w = x.shape
    patches, oh, ow = _extract_patches(x, 3, 3, stride, 1, 1, 0.0)
    r, l = n * c, oh * ow
    t = jnp.transpose(patches, (2, 0, 1, 3, 4)).reshape(9, r, l)
    # static valid-tap count map (count_include_pad=False); constant folded by XLA
    ones = jnp.ones((1, 1, h, w), jnp.float32)
    cnt, _, _ = _extract_patches(ones, 3, 3, stride, 1, 1, 0.0)
    inv = (1.0 / jnp.sum(cnt, axis=2)).reshape(1, l)
    tr, rp, tl, lp = _pool_tiles(r, l)
    t = jnp.pad(t, ((0, 0), (0, rp - r), (0, lp - l)))
    inv = jnp.pad(inv, ((0, 0), (0, lp - l)))
    y = pl.pallas_call(
        functools.partial(_avgpool_kernel, taps=9),
        grid=(rp // tr, lp // tl),
        in_specs=[pl.BlockSpec((9, tr, tl), lambda i, j: (0, i, j)),
                  pl.BlockSpec((1, tl), lambda i, j: (0, j))],
        out_specs=pl.BlockSpec((tr, tl), lambda i, j: (i, j)),
        out_shape=jax.ShapeDtypeStruct((rp, lp), jnp.float32),
        compiler_params=_cparams("parallel", "parallel"),
    )(t, inv)
    return y[:r, :l].reshape(n, c, oh, ow)


# ----------------------------- MixedOp weighted sum (fused VPU accumulation) -----------------------------

def _wsum_kernel(w_ref, *refs):
    # refs = (y_0, ..., y_{T-1}, out); w_ref is the SMEM-prefetched alpha vector.
    o_ref = refs[-1]
    ys = refs[:-1]
    acc = w_ref[0] * ys[0][...]
    for i in range(1, len(ys)):
        acc = acc + w_ref[i] * ys[i][...]
    o_ref[...] = acc


def mixed_weighted_sum(ys, wvec):
    shape = ys[0].shape
    f = 1
    for d in shape:
        f *= d
    fp = _round_up(f, 1024)
    ll = fp // 8
    tl = min(2048, ll)
    ll = _round_up(ll, tl)
    fp = 8 * ll
    flats = [jnp.pad(y.reshape(1, f), ((0, 0), (0, fp - f))).reshape(8, ll) for y in ys]
    yspec = pl.BlockSpec((8, tl), lambda i, wr: (0, i))
    out = pl.pallas_call(
        _wsum_kernel,
        grid_spec=pltpu.PrefetchScalarGridSpec(
            num_scalar_prefetch=1,
            grid=(ll // tl,),
            in_specs=[yspec] * len(flats),
            out_specs=pl.BlockSpec((8, tl), lambda i, wr: (0, i)),
        ),
        out_shape=jax.ShapeDtypeStruct((8, ll), jnp.float32),
        compiler_params=_cparams("parallel"),
    )(wvec.astype(jnp.float32), *flats)
    return out.reshape(1, fp)[:, :f].reshape(shape)


# ----------------------------- alpha softmax -----------------------------

def _softmax_kernel(a_ref, o_ref):
    a = a_ref[...]
    m = jnp.max(a, axis=1, keepdims=True)
    e = jnp.exp(a - m)
    o_ref[...] = e / jnp.sum(e, axis=1, keepdims=True)


def pallas_softmax(a):
    return pl.pallas_call(
        _softmax_kernel,
        out_shape=jax.ShapeDtypeStruct(a.shape, jnp.float32),
        in_specs=[pl.BlockSpec(memory_space=pltpu.MemorySpace.VMEM)],
        out_specs=pl.BlockSpec(memory_space=pltpu.MemorySpace.VMEM),
    )(a)


# ----------------------------- DARTS ops -----------------------------

def relu_conv_bn_1x1(x, w):
    return batchnorm2d(conv2d(x, w, stride=1, padding=0, relu_input=True))


def factorized_reduce(x, p):
    y1 = conv2d(x, p['conv1'], stride=2, padding=0, relu_input=True)
    y2 = conv2d(x[:, :, 1:, 1:], p['conv2'], stride=2, padding=0, relu_input=True)
    return batchnorm2d(jnp.concatenate([y1, y2], axis=1))


def sep_conv(x, p, stride, padding):
    y = depthwise_conv2d(x, p['dw1'], stride=stride, padding=padding, relu_input=True)
    y = conv2d(y, p['pw1'], stride=1, padding=0)
    y = batchnorm2d(y)
    y = depthwise_conv2d(y, p['dw2'], stride=1, padding=padding, relu_input=True)
    y = conv2d(y, p['pw2'], stride=1, padding=0)
    return batchnorm2d(y)


def dil_conv(x, p, stride, padding, dilation):
    y = depthwise_conv2d(x, p['dw'], stride=stride, padding=padding,
                         dilation=dilation, relu_input=True)
    y = conv2d(y, p['pw'], stride=1, padding=0)
    return batchnorm2d(y)


def apply_primitive(prim, x, p, stride):
    # 'none' is never dispatched: it contributes exactly weight*0 and is skipped.
    if prim == 'max_pool_3x3':
        return batchnorm2d(max_pool_3x3(x, stride=stride))
    if prim == 'avg_pool_3x3':
        return batchnorm2d(avg_pool_3x3(x, stride=stride))
    if prim == 'skip_connect':
        return x if stride == 1 else factorized_reduce(x, p)
    if prim == 'sep_conv_3x3':
        return sep_conv(x, p, stride, 1)
    if prim == 'sep_conv_5x5':
        return sep_conv(x, p, stride, 2)
    if prim == 'dil_conv_3x3':
        return dil_conv(x, p, stride, 2, 2)
    if prim == 'dil_conv_5x5':
        return dil_conv(x, p, stride, 4, 2)
    raise ValueError(prim)


def cell_forward(s0, s1, weights, cfg, cp, steps, multiplier):
    if cfg['reduction_prev']:
        s0 = factorized_reduce(s0, cp['pre0'])
    else:
        s0 = relu_conv_bn_1x1(s0, cp['pre0']['w'])
    s1 = relu_conv_bn_1x1(s1, cp['pre1']['w'])
    states = [s0, s1]
    offset = 0
    for _ in range(steps):
        ys, ws = [], []
        for j, h in enumerate(states):
            stride = 2 if cfg['reduction'] and j < 2 else 1
            ep = cp['ops'][offset + j]
            for pi, prim in enumerate(PRIMITIVES):
                if prim == 'none':
                    continue                               # exactly w * 0
                ys.append(apply_primitive(prim, h, ep[prim], stride))
                ws.append(weights[offset + j, pi])
        s = mixed_weighted_sum(ys, jnp.stack(ws))          # fused MixedOp / node sum
        offset += len(states)
        states.append(s)
    return jnp.concatenate(states[-multiplier:], axis=1)


def network_forward(params, cfgs, x, steps, multiplier):
    stem = batchnorm2d(conv2d(x, params['stem_w'], stride=1, padding=1))
    s0 = s1 = stem                                         # stem(input) used twice
    w_norm = pallas_softmax(params['alphas_normal'])
    w_red = pallas_softmax(params['alphas_reduce'])
    for cfg, cp in zip(cfgs, params['cells']):
        w = w_red if cfg['reduction'] else w_norm
        s0, s1 = s1, cell_forward(s0, s1, w, cfg, cp, steps, multiplier)
    # AdaptiveAvgPool2d(1): tiny, lane-sparse -> plain XLA (per perf review).
    pooled = jnp.mean(s1, axis=(2, 3))
    nb = pooled.shape[0]
    # Linear: bias folded in via appended ones column; padded tiled matmul.
    a = jnp.concatenate([pooled, jnp.ones((nb, 1), jnp.float32)], axis=1)
    b = jnp.concatenate([params['fc_w'].T, params['fc_b'][None, :]], axis=0)
    return pallas_matmul(a, b)


# ----------------------------- parameter init -----------------------------

def _mixed_op_params(C, stride, nrm):
    p = {}
    for prim in PRIMITIVES:
        if prim == 'skip_connect' and stride != 1:
            p[prim] = {'conv1': nrm((C // 2, C, 1, 1)), 'conv2': nrm((C // 2, C, 1, 1))}
        elif prim.startswith('sep_conv'):
            k = 3 if prim.endswith('3x3') else 5
            p[prim] = {'dw1': nrm((C, 1, k, k)), 'pw1': nrm((C, C, 1, 1)),
                       'dw2': nrm((C, 1, k, k)), 'pw2': nrm((C, C, 1, 1))}
        elif prim.startswith('dil_conv'):
            k = 3 if prim.endswith('3x3') else 5
            p[prim] = {'dw': nrm((C, 1, k, k)), 'pw': nrm((C, C, 1, 1))}
        else:
            p[prim] = {}
    return p


def init_network(key, C, num_classes, layers, steps, multiplier, stem_multiplier):
    keys = iter(jax.random.split(key, 4096))

    def nrm(shape, scale=0.1):
        return scale * jax.random.normal(next(keys), shape, dtype=jnp.float32)

    params = {'stem_w': nrm((stem_multiplier * C, 3, 3, 3))}
    cfgs, cells_params = [], []
    C_pp, C_p, C_curr = stem_multiplier * C, stem_multiplier * C, C
    reduction_prev = False
    for i in range(layers):
        if i in [layers // 3, 2 * layers // 3]:
            C_curr *= 2
            reduction = True
        else:
            reduction = False
        cp = {}
        if reduction_prev:
            cp['pre0'] = {'conv1': nrm((C_curr // 2, C_pp, 1, 1)),
                          'conv2': nrm((C_curr // 2, C_pp, 1, 1))}
        else:
            cp['pre0'] = {'w': nrm((C_curr, C_pp, 1, 1))}
        cp['pre1'] = {'w': nrm((C_curr, C_p, 1, 1))}
        ops = []
        for n in range(steps):
            for j in range(n + 2):
                stride = 2 if reduction and j < 2 else 1
                ops.append(_mixed_op_params(C_curr, stride, nrm))
        cp['ops'] = ops
        cfgs.append({'reduction': reduction, 'reduction_prev': reduction_prev, 'C': C_curr})
        cells_params.append(cp)
        reduction_prev = reduction
        C_pp, C_p = C_p, multiplier * C_curr
    params['cells'] = cells_params
    K = sum(1 for i2 in range(steps) for _ in range(2 + i2))
    params['alphas_normal'] = 0.001 * jax.random.normal(next(keys), (K, len(PRIMITIVES)), jnp.float32)
    params['alphas_reduce'] = 0.001 * jax.random.normal(next(keys), (K, len(PRIMITIVES)), jnp.float32)
    params['fc_w'] = nrm((num_classes, C_p))
    params['fc_b'] = jnp.zeros((num_classes,), jnp.float32)
    return params, cfgs, C_p


# TODO(synk): _loss / new() / genotype() / criterion are training utilities, not part
# of the forward pass, and are intentionally not implemented.
# TODO(synk): a full channels-last end-to-end layout (fusing ReLU->conv->BN in one
# pallas_call and dropping the NCHW transpose glue) is a further refactor not done here.

if __name__ == "__main__":
    key = jax.random.PRNGKey(0)
    kp, kx = jax.random.split(key)

    # small-but-consistent DARTS search config
    C, num_classes, layers = 4, 10, 2
    steps, multiplier, stem_multiplier = 2, 2, 3

    params, cfgs, C_prev = init_network(kp, C, num_classes, layers,
                                        steps, multiplier, stem_multiplier)
    x = jax.random.normal(kx, (2, 3, 16, 16), jnp.float32)   # NCHW, like PyTorch

    fwd = jax.jit(lambda p, xx: network_forward(p, cfgs, xx, steps, multiplier))
    logits = jax.block_until_ready(fwd(params, x))
    assert logits.shape == (2, num_classes)
    print("KERNEL_OK")
</pallas_src>

<mosaic_0001>
module attributes {stable_mosaic.version = 11 : i64} {
  func.func @_softmax_kernel(%arg0: memref<5x8xf32, #tpu.memory_space<vmem>>, %arg1: memref<5x8xf32, #tpu.memory_space<vmem>>) attributes {dimension_semantics = [], scalar_prefetch = 0 : i64, scratch_operands = 0 : i64, tpu.core_type = #tpu.core_type<tc>} {
    %c0 = arith.constant 0 : index
    %c0_0 = arith.constant 0 : index
    %0 = vector.load %arg0[%c0, %c0_0] : memref<5x8xf32, #tpu.memory_space<vmem>>, vector<5x8xf32>
    %cst = arith.constant dense<0xFF800000> : vector<5xf32>
    %1 = vector.multi_reduction <maximumf>, %0, %cst [1] : vector<5x8xf32> to vector<5xf32>
    %2 = vector.shape_cast %1 : vector<5xf32> to vector<5x1xf32>
    %3 = vector.broadcast %2 : vector<5x1xf32> to vector<5x8xf32>
    %4 = arith.subf %0, %3 : vector<5x8xf32>
    %5 = math.exp %4 : vector<5x8xf32>
    %cst_1 = arith.constant dense<0.000000e+00> : vector<5xf32>
    %6 = vector.multi_reduction <add>, %5, %cst_1 [1] : vector<5x8xf32> to vector<5xf32>
    %7 = vector.shape_cast %6 : vector<5xf32> to vector<5x1xf32>
    %8 = vector.broadcast %7 : vector<5x1xf32> to vector<5x8xf32>
    %9 = arith.divf %5, %8 : vector<5x8xf32>
    %c0_2 = arith.constant 0 : index
    %c0_3 = arith.constant 0 : index
    %10 = vector.load %arg1[%c0_2, %c0_3] : memref<5x8xf32, #tpu.memory_space<vmem>>, vector<5x8xf32>
    tpu.vector_store %arg1[%c0_2, %c0_3], %9 {strides = array<i32>} : memref<5x8xf32, #tpu.memory_space<vmem>>, vector<5x8xf32>,
    return
  }
}

module attributes {stable_mosaic.version = 11 : i64} {
  func.func @_matmul_kernel(%arg0: i32, %arg1: i32, %arg2: memref<256x27xbf16, #tpu.memory_space<vmem>>, %arg3: memref<27x128xbf16, #tpu.memory_space<vmem>>, %arg4: memref<256x128xf32, #tpu.memory_space<vmem>>) attributes {dimension_semantics = [#tpu.dimension_semantics<parallel>, #tpu.dimension_semantics<parallel>], iteration_bounds = array<i64: 2, 1>, scalar_prefetch = 0 : i64, scratch_operands = 0 : i64, tpu.core_type = #tpu.core_type<tc>, window_params = [{transform_indices = @transform_0, window_bounds = array<i64: 256, 27>}, {transform_indices = @transform_1, window_bounds = array<i64: 27, 128>}, {transform_indices = @transform_2, window_bounds = array<i64: 256, 128>}]} {
    %c0 = arith.constant 0 : index
    %c0_0 = arith.constant 0 : index
    %0 = vector.load %arg2[%c0, %c0_0] : memref<256x27xbf16, #tpu.memory_space<vmem>>, vector<256x27xbf16>
    %c0_1 = arith.constant 0 : index
    %c0_2 = arith.constant 0 : index
    %1 = vector.load %arg3[%c0_1, %c0_2] : memref<27x128xbf16, #tpu.memory_space<vmem>>, vector<27x128xbf16>
    %cst = arith.constant dense<0.000000e+00> : vector<256x128xf32>
    %2 = tpu.matmul %0, %1, %cst {dimension_numbers = #tpu.dot_dimension_numbers<[1], [0], [0], [1], [0, 0, 1, 1], [], []>} : vector<256x27xbf16>, vector<27x128xbf16>, vector<256x128xf32> -> vector<256x128xf32>
    %c0_3 = arith.constant 0 : index
    %c0_4 = arith.constant 0 : index
    %3 = vector.load %arg4[%c0_3, %c0_4] : memref<256x128xf32, #tpu.memory_space<vmem>>, vector<256x128xf32>
    tpu.vector_store %arg4[%c0_3, %c0_4], %2 {strides = array<i32>} : memref<256x128xf32, #tpu.memory_space<vmem>>, vector<256x128xf32>,
    return
  }
  func.func @transform_0(%arg0: i32, %arg1: i32) -> (i32, i32) {
    %c0_i32 = arith.constant 0 : i32
    %c0_i32_0 = arith.constant 0 : i32
    return %arg0, %c0_i32 : i32, i32
  }
  func.func @transform_1(%arg0: i32, %arg1: i32) -> (i32, i32) {
    %c0_i32 = arith.constant 0 : i32
    %c0_i32_0 = arith.constant 0 : i32
    return %c0_i32, %arg1 : i32, i32
  }
  func.func @transform_2(%arg0: i32, %arg1: i32) -> (i32, i32) {
    %c0_i32 = arith.constant 0 : i32
    return %arg0, %arg1 : i32, i32
  }
}

module attributes {stable_mosaic.version = 11 : i64} {
  func.func @_bn_stats_kernel(%arg0: i32, %arg1: memref<12x512xf32, #tpu.memory_space<vmem>>, %arg2: memref<12x1xf32, #tpu.memory_space<vmem>>, %arg3: memref<12x1xf32, #tpu.memory_space<vmem>>) attributes {dimension_semantics = [#tpu.dimension_semantics<arbitrary>], iteration_bounds = array<i64: 1>, scalar_prefetch = 0 : i64, scratch_operands = 0 : i64, tpu.core_type = #tpu.core_type<tc>, window_params = [{transform_indices = @transform_0, window_bounds = array<i64: 12, 512>}, {pipeline_mode = #tpu.pipeline_mode<synchronous>, transform_indices = @transform_1, window_bounds = array<i64: 12, 1>}, {pipeline_mode = #tpu.pipeline_mode<synchronous>, transform_indices = @transform_2, window_bounds = array<i64: 12, 1>}]} {
    %c0_i32 = arith.constant 0 : i32
    %0 = arith.cmpi eq, %arg0, %c0_i32 : i32
    %1 = arith.extui %0 : i1 to i32
    %c0_i32_0 = arith.constant 0 : i32
    %2 = arith.cmpi ne, %1, %c0_i32_0 : i32
    scf.if %2 {
      %cst_11 = arith.constant 0.000000e+00 : f32
      %15 = vector.broadcast %cst_11 : f32 to vector<12x1xf32>
      %c0_12 = arith.constant 0 : index
      %c0_13 = arith.constant 0 : index
      %16 = vector.load %arg2[%c0_12, %c0_13] : memref<12x1xf32, #tpu.memory_space<vmem>>, vector<12x1xf32>
      tpu.vector_store %arg2[%c0_12, %c0_13], %15 {strides = array<i32>} : memref<12x1xf32, #tpu.memory_space<vmem>>, vector<12x1xf32>,
      %cst_14 = arith.constant 0.000000e+00 : f32
      %17 = vector.broadcast %cst_14 : f32 to vector<12x1xf32>
      %c0_15 = arith.constant 0 : index
      %c0_16 = arith.constant 0 : index
      %18 = vector.load %arg3[%c0_15, %c0_16] : memref<12x1xf32, #tpu.memory_space<vmem>>, vector<12x1xf32>
      tpu.vector_store %arg3[%c0_15, %c0_16], %17 {strides = array<i32>} : memref<12x1xf32, #tpu.memory_space<vmem>>, vector<12x1xf32>,
    } else {
    }
    %c0 = arith.constant 0 : index
    %c0_1 = arith.constant 0 : index
    %3 = vector.load %arg1[%c0, %c0_1] : memref<12x512xf32, #tpu.memory_space<vmem>>, vector<12x512xf32>
    %c0_2 = arith.constant 0 : index
    %c0_3 = arith.constant 0 : index
    %4 = vector.load %arg2[%c0_2, %c0_3] : memref<12x1xf32, #tpu.memory_space<vmem>>, vector<12x1xf32>
    %cst = arith.constant dense<0.000000e+00> : vector<12xf32>
    %5 = vector.multi_reduction <add>, %3, %cst [1] : vector<12x512xf32> to vector<12xf32>
    %6 = vector.shape_cast %5 : vector<12xf32> to vector<12x1xf32>
    %7 = arith.addf %4, %6 : vector<12x1xf32>
    %c0_4 = arith.constant 0 : index
    %c0_5 = arith.constant 0 : index
    %8 = vector.load %arg2[%c0_4, %c0_5] : memref<12x1xf32, #tpu.memory_space<vmem>>, vector<12x1xf32>
    tpu.vector_store %arg2[%c0_4, %c0_5], %7 {strides = array<i32>} : memref<12x1xf32, #tpu.memory_space<vmem>>, vector<12x1xf32>,
    %c0_6 = arith.constant 0 : index
    %c0_7 = arith.constant 0 : index
    %9 = vector.load %arg3[%c0_6, %c0_7] : memref<12x1xf32, #tpu.memory_space<vmem>>, vector<12x1xf32>
    %10 = arith.mulf %3, %3 : vector<12x512xf32>
    %cst_8 = arith.constant dense<0.000000e+00> : vector<12xf32>
    %11 = vector.multi_reduction <add>, %10, %cst_8 [1] : vector<12x512xf32> to vector<12xf32>
    %12 = vector.shape_cast %11 : vector<12xf32> to vector<12x1xf32>
    %13 = arith.addf %9, %12 : vector<12x1xf32>
    %c0_9 = arith.constant 0 : index
    %c0_10 = arith.constant 0 : index
    %14 = vector.load %arg3[%c0_9, %c0_10] : memref<12x1xf32, #tpu.memory_space<vmem>>, vector<12x1xf32>
    tpu.vector_store %arg3[%c0_9, %c0_10], %13 {strides = array<i32>} : memref<12x1xf32, #tpu.memory_space<vmem>>, vector<12x1xf32>,
    return
  }
  func.func @transform_0(%arg0: i32) -> (i32, i32) {
    %c0_i32 = arith.constant 0 : i32
    %c0_i32_0 = arith.constant 0 : i32
    return %c0_i32, %arg0 : i32, i32
  }
  func.func @transform_1(%arg0: i32) -> (i32, i32) {
    %c0_i32 = arith.constant 0 : i32
    %c0_i32_0 = arith.constant 0 : i32
    %c0_i32_1 = arith.constant 0 : i32
    return %c0_i32, %c0_i32_0 : i32, i32
  }
  func.func @transform_2(%arg0: i32) -> (i32, i32) {
    %c0_i32 = arith.constant 0 : i32
    %c0_i32_0 = arith.constant 0 : i32
    %c0_i32_1 = arith.constant 0 : i32
    return %c0_i32, %c0_i32_0 : i32, i32
  }
}

module attributes {stable_mosaic.version = 11 : i64} {
  func.func @_bn_apply_kernel(%arg0: i32, %arg1: memref<12x512xf32, #tpu.memory_space<vmem>>, %arg2: memref<12x1xf32, #tpu.memory_space<vmem>>, %arg3: memref<12x1xf32, #tpu.memory_space<vmem>>, %arg4: memref<12x512xf32, #tpu.memory_space<vmem>>) attributes {dimension_semantics = [#tpu.dimension_semantics<parallel>], iteration_bounds = array<i64: 1>, scalar_prefetch = 0 : i64, scratch_operands = 0 : i64, tpu.core_type = #tpu.core_type<tc>, window_params = [{transform_indices = @transform_0, window_bounds = array<i64: 12, 512>}, {pipeline_mode = #tpu.pipeline_mode<synchronous>, transform_indices = @transform_1, window_bounds = array<i64: 12, 1>}, {pipeline_mode = #tpu.pipeline_mode<synchronous>, transform_indices = @transform_2, window_bounds = array<i64: 12, 1>}, {transform_indices = @transform_3, window_bounds = array<i64: 12, 512>}]} {
    %c0 = arith.constant 0 : index
    %c0_0 = arith.constant 0 : index
    %0 = vector.load %arg1[%c0, %c0_0] : memref<12x512xf32, #tpu.memory_space<vmem>>, vector<12x512xf32>
    %c0_1 = arith.constant 0 : index
    %c0_2 = arith.constant 0 : index
    %1 = vector.load %arg2[%c0_1, %c0_2] : memref<12x1xf32, #tpu.memory_space<vmem>>, vector<12x1xf32>
    %2 = vector.broadcast %1 : vector<12x1xf32> to vector<12x512xf32>
    %3 = arith.subf %0, %2 : vector<12x512xf32>
    %c0_3 = arith.constant 0 : index
    %c0_4 = arith.constant 0 : index
    %4 = vector.load %arg3[%c0_3, %c0_4] : memref<12x1xf32, #tpu.memory_space<vmem>>, vector<12x1xf32>
    %5 = vector.broadcast %4 : vector<12x1xf32> to vector<12x512xf32>
    %6 = arith.mulf %3, %5 : vector<12x512xf32>
    %c0_5 = arith.constant 0 : index
    %c0_6 = arith.constant 0 : index
    %7 = vector.load %arg4[%c0_5, %c0_6] : memref<12x512xf32, #tpu.memory_space<vmem>>, vector<12x512xf32>
    tpu.vector_store %arg4[%c0_5, %c0_6], %6 {strides = array<i32>} : memref<12x512xf32, #tpu.memory_space<vmem>>, vector<12x512xf32>,
    return
  }
  func.func @transform_0(%arg0: i32) -> (i32, i32) {
    %c0_i32 = arith.constant 0 : i32
    %c0_i32_0 = arith.constant 0 : i32
    return %c0_i32, %arg0 : i32, i32
  }
  func.func @transform_1(%arg0: i32) -> (i32, i32) {
    %c0_i32 = arith.constant 0 : i32
    %c0_i32_0 = arith.constant 0 : i32
    %c0_i32_1 = arith.constant 0 : i32
    return %c0_i32, %c0_i32_0 : i32, i32
  }
  func.func @transform_2(%arg0: i32) -> (i32, i32) {
    %c0_i32 = arith.constant 0 : i32
    %c0_i32_0 = arith.constant 0 : i32
    %c0_i32_1 = arith.constant 0 : i32
    return %c0_i32, %c0_i32_0 : i32, i32
  }
  func.func @transform_3(%arg0: i32) -> (i32, i32) {
    %c0_i32 = arith.constant 0 : i32
    %c0_i32_0 = arith.constant 0 : i32
    return %c0_i32, %arg0 : i32, i32
  }
}

module attributes {stable_mosaic.version = 11 : i64} {
  func.func @_matmul_kernel(%arg0: i32, %arg1: i32, %arg2: memref<128x12xbf16, #tpu.memory_space<vmem>>, %arg3: memref<12x128xbf16, #tpu.memory_space<vmem>>, %arg4: memref<128x128xf32, #tpu.memory_space<vmem>>) attributes {dimension_semantics = [#tpu.dimension_semantics<parallel>, #tpu.dimension_semantics<parallel>], iteration_bounds = array<i64: 1, 1>, scalar_prefetch = 0 : i64, scratch_operands = 0 : i64, tpu.core_type = #tpu.core_type<tc>, window_params = [{transform_indices = @transform_0, window_bounds = array<i64: 128, 12>}, {transform_indices = @transform_1, window_bounds = array<i64: 12, 128>}, {transform_indices = @transform_2, window_bounds = array<i64: 128, 128>}]} {
    %c0 = arith.constant 0 : index
    %c0_0 = arith.constant 0 : index
    %0 = vector.load %arg2[%c0, %c0_0] : memref<128x12xbf16, #tpu.memory_space<vmem>>, vector<128x12xbf16>
    %c0_1 = arith.constant 0 : index
    %c0_2 = arith.constant 0 : index
    %1 = vector.load %arg3[%c0_1, %c0_2] : memref<12x128xbf16, #tpu.memory_space<vmem>>, vector<12x128xbf16>
    %cst = arith.constant dense<0.000000e+00> : vector<128x128xf32>
    %2 = tpu.matmul %0, %1, %cst {dimension_numbers = #tpu.dot_dimension_numbers<[1], [0], [0], [1], [0, 0, 1, 1], [], []>} : vector<128x12xbf16>, vector<12x128xbf16>, vector<128x128xf32> -> vector<128x128xf32>
    %c0_3 = arith.constant 0 : index
    %c0_4 = arith.constant 0 : index
    %3 = vector.load %arg4[%c0_3, %c0_4] : memref<128x128xf32, #tpu.memory_space<vmem>>, vector<128x128xf32>
    tpu.vector_store %arg4[%c0_3, %c0_4], %2 {strides = array<i32>} : memref<128x128xf32, #tpu.memory_space<vmem>>, vector<128x128xf32>,
    return
  }
  func.func @transform_0(%arg0: i32, %arg1: i32) -> (i32, i32) {
    %c0_i32 = arith.constant 0 : i32
    %c0_i32_0 = arith.constant 0 : i32
    return %arg0, %c0_i32 : i32, i32
  }
  func.func @transform_1(%arg0: i32, %arg1: i32) -> (i32, i32) {
    %c0_i32 = arith.constant 0 : i32
    %c0_i32_0 = arith.constant 0 : i32
    return %c0_i32, %arg1 : i32, i32
  }
  func.func @transform_2(%arg0: i32, %arg1: i32) -> (i32, i32) {
    %c0_i32 = arith.constant 0 : i32
    return %arg0, %arg1 : i32, i32
  }
}

module attributes {stable_mosaic.version = 11 : i64} {
  func.func @_bn_apply_kernel(%arg0: i32, %arg1: memref<16x128xf32, #tpu.memory_space<vmem>>, %arg2: memref<16x1xf32, #tpu.memory_space<vmem>>, %arg3: memref<16x1xf32, #tpu.memory_space<vmem>>, %arg4: memref<16x128xf32, #tpu.memory_space<vmem>>) attributes {dimension_semantics = [#tpu.dimension_semantics<parallel>], iteration_bounds = array<i64: 1>, scalar_prefetch = 0 : i64, scratch_operands = 0 : i64, tpu.core_type = #tpu.core_type<tc>, window_params = [{transform_indices = @transform_0, window_bounds = array<i64: 16, 128>}, {pipeline_mode = #tpu.pipeline_mode<synchronous>, transform_indices = @transform_1, window_bounds = array<i64: 16, 1>}, {pipeline_mode = #tpu.pipeline_mode<synchronous>, transform_indices = @transform_2, window_bounds = array<i64: 16, 1>}, {transform_indices = @transform_3, window_bounds = array<i64: 16, 128>}]} {
    %c0 = arith.constant 0 : index
    %c0_0 = arith.constant 0 : index
    %0 = vector.load %arg1[%c0, %c0_0] : memref<16x128xf32, #tpu.memory_space<vmem>>, vector<16x128xf32>
    %c0_1 = arith.constant 0 : index
    %c0_2 = arith.constant 0 : index
    %1 = vector.load %arg2[%c0_1, %c0_2] : memref<16x1xf32, #tpu.memory_space<vmem>>, vector<16x1xf32>
    %2 = vector.broadcast %1 : vector<16x1xf32> to vector<16x128xf32>
    %3 = arith.subf %0, %2 : vector<16x128xf32>
    %c0_3 = arith.constant 0 : index
    %c0_4 = arith.constant 0 : index
    %4 = vector.load %arg3[%c0_3, %c0_4] : memref<16x1xf32, #tpu.memory_space<vmem>>, vector<16x1xf32>
    %5 = vector.broadcast %4 : vector<16x1xf32> to vector<16x128xf32>
    %6 = arith.mulf %3, %5 : vector<16x128xf32>
    %c0_5 = arith.constant 0 : index
    %c0_6 = arith.constant 0 : index
    %7 = vector.load %arg4[%c0_5, %c0_6] : memref<16x128xf32, #tpu.memory_space<vmem>>, vector<16x128xf32>
    tpu.vector_store %arg4[%c0_5, %c0_6], %6 {strides = array<i32>} : memref<16x128xf32, #tpu.memory_space<vmem>>, vector<16x128xf32>,
    return
  }
  func.func @transform_0(%arg0: i32) -> (i32, i32) {
    %c0_i32 = arith.constant 0 : i32
    %c0_i32_0 = arith.constant 0 : i32
    return %c0_i32, %arg0 : i32, i32
  }
  func.func @transform_1(%arg0: i32) -> (i32, i32) {
    %c0_i32 = arith.constant 0 : i32
    %c0_i32_0 = arith.constant 0 : i32
    %c0_i32_1 = arith.constant 0 : i32
    return %c0_i32, %c0_i32_0 : i32, i32
  }
  func.func @transform_2(%arg0: i32) -> (i32, i32) {
    %c0_i32 = arith.constant 0 : i32
    %c0_i32_0 = arith.constant 0 : i32
    %c0_i32_1 = arith.constant 0 : i32
    return %c0_i32, %c0_i32_0 : i32, i32
  }
  func.func @transform_3(%arg0: i32) -> (i32, i32) {
    %c0_i32 = arith.constant 0 : i32
    %c0_i32_0 = arith.constant 0 : i32
    return %c0_i32, %arg0 : i32, i32
  }
}

module attributes {stable_mosaic.version = 11 : i64} {
  func.func @_bn_stats_kernel(%arg0: i32, %arg1: memref<16x128xf32, #tpu.memory_space<vmem>>, %arg2: memref<16x1xf32, #tpu.memory_space<vmem>>, %arg3: memref<16x1xf32, #tpu.memory_space<vmem>>) attributes {dimension_semantics = [#tpu.dimension_semantics<arbitrary>], iteration_bounds = array<i64: 1>, scalar_prefetch = 0 : i64, scratch_operands = 0 : i64, tpu.core_type = #tpu.core_type<tc>, window_params = [{transform_indices = @transform_0, window_bounds = array<i64: 16, 128>}, {pipeline_mode = #tpu.pipeline_mode<synchronous>, transform_indices = @transform_1, window_bounds = array<i64: 16, 1>}, {pipeline_mode = #tpu.pipeline_mode<synchronous>, transform_indices = @transform_2, window_bounds = array<i64: 16, 1>}]} {
    %c0_i32 = arith.constant 0 : i32
    %0 = arith.cmpi eq, %arg0, %c0_i32 : i32
    %1 = arith.extui %0 : i1 to i32
    %c0_i32_0 = arith.constant 0 : i32
    %2 = arith.cmpi ne, %1, %c0_i32_0 : i32
    scf.if %2 {
      %cst_11 = arith.constant 0.000000e+00 : f32
      %15 = vector.broadcast %cst_11 : f32 to vector<16x1xf32>
      %c0_12 = arith.constant 0 : index
      %c0_13 = arith.constant 0 : index
      %16 = vector.load %arg2[%c0_12, %c0_13] : memref<16x1xf32, #tpu.memory_space<vmem>>, vector<16x1xf32>
      tpu.vector_store %arg2[%c0_12, %c0_13], %15 {strides = array<i32>} : memref<16x1xf32, #tpu.memory_space<vmem>>, vector<16x1xf32>,
      %cst_14 = arith.constant 0.000000e+00 : f32
      %17 = vector.broadcast %cst_14 : f32 to vector<16x1xf32>
      %c0_15 = arith.constant 0 : index
      %c0_16 = arith.constant 0 : index
      %18 = vector.load %arg3[%c0_15, %c0_16] : memref<16x1xf32, #tpu.memory_space<vmem>>, vector<16x1xf32>
      tpu.vector_store %arg3[%c0_15, %c0_16], %17 {strides = array<i32>} : memref<16x1xf32, #tpu.memory_space<vmem>>, vector<16x1xf32>,
    } else {
    }
    %c0 = arith.constant 0 : index
    %c0_1 = arith.constant 0 : index
    %3 = vector.load %arg1[%c0, %c0_1] : memref<16x128xf32, #tpu.memory_space<vmem>>, vector<16x128xf32>
    %c0_2 = arith.constant 0 : index
    %c0_3 = arith.constant 0 : index
    %4 = vector.load %arg2[%c0_2, %c0_3] : memref<16x1xf32, #tpu.memory_space<vmem>>, vector<16x1xf32>
    %cst = arith.constant dense<0.000000e+00> : vector<16xf32>
    %5 = vector.multi_reduction <add>, %3, %cst [1] : vector<16x128xf32> to vector<16xf32>
    %6 = vector.shape_cast %5 : vector<16xf32> to vector<16x1xf32>
    %7 = arith.addf %4, %6 : vector<16x1xf32>
    %c0_4 = arith.constant 0 : index
    %c0_5 = arith.constant 0 : index
    %8 = vector.load %arg2[%c0_4, %c0_5] : memref<16x1xf32, #tpu.memory_space<vmem>>, vector<16x1xf32>
    tpu.vector_store %arg2[%c0_4, %c0_5], %7 {strides = array<i32>} : memref<16x1xf32, #tpu.memory_space<vmem>>, vector<16x1xf32>,
    %c0_6 = arith.constant 0 : index
    %c0_7 = arith.constant 0 : index
    %9 = vector.load %arg3[%c0_6, %c0_7] : memref<16x1xf32, #tpu.memory_space<vmem>>, vector<16x1xf32>
    %10 = arith.mulf %3, %3 : vector<16x128xf32>
    %cst_8 = arith.constant dense<0.000000e+00> : vector<16xf32>
    %11 = vector.multi_reduction <add>, %10, %cst_8 [1] : vector<16x128xf32> to vector<16xf32>
    %12 = vector.shape_cast %11 : vector<16xf32> to vector<16x1xf32>
    %13 = arith.addf %9, %12 : vector<16x1xf32>
    %c0_9 = arith.constant 0 : index
    %c0_10 = arith.constant 0 : index
    %14 = vector.load %arg3[%c0_9, %c0_10] : memref<16x1xf32, #tpu.memory_space<vmem>>, vector<16x1xf32>
    tpu.vector_store %arg3[%c0_9, %c0_10], %13 {strides = array<i32>} : memref<16x1xf32, #tpu.memory_space<vmem>>, vector<16x1xf32>,
    return
  }
  func.func @transform_0(%arg0: i32) -> (i32, i32) {
    %c0_i32 = arith.constant 0 : i32
    %c0_i32_0 = arith.constant 0 : i32
    return %c0_i32, %arg0 : i32, i32
  }
  func.func @transform_1(%arg0: i32) -> (i32, i32) {
    %c0_i32 = arith.constant 0 : i32
    %c0_i32_0 = arith.constant 0 : i32
    %c0_i32_1 = arith.constant 0 : i32
    return %c0_i32, %c0_i32_0 : i32, i32
  }
  func.func @transform_2(%arg0: i32) -> (i32, i32) {
    %c0_i32 = arith.constant 0 : i32
    %c0_i32_0 = arith.constant 0 : i32
    %c0_i32_1 = arith.constant 0 : i32
    return %c0_i32, %c0_i32_0 : i32, i32
  }
}

module attributes {stable_mosaic.version = 11 : i64} {
  func.func @_maxpool_kernel(%arg0: i32, %arg1: i32, %arg2: memref<9x32x128xf32, #tpu.memory_space<vmem>>, %arg3: memref<32x128xf32, #tpu.memory_space<vmem>>) attributes {dimension_semantics = [#tpu.dimension_semantics<parallel>, #tpu.dimension_semantics<parallel>], iteration_bounds = array<i64: 1, 1>, scalar_prefetch = 0 : i64, scratch_operands = 0 : i64, tpu.core_type = #tpu.core_type<tc>, window_params = [{transform_indices = @transform_0, window_bounds = array<i64: 9, 32, 128>}, {transform_indices = @transform_1, window_bounds = array<i64: 32, 128>}]} {
    %c0 = arith.constant 0 : index
    %c0_0 = arith.constant 0 : index
    %c0_1 = arith.constant 0 : index
    %0 = vector.load %arg2[%c0, %c0_0, %c0_1] : memref<9x32x128xf32, #tpu.memory_space<vmem>>, vector<9x32x128xf32>
    %1 = vector.extract_strided_slice %0 {offsets = [0, 0, 0], sizes = [1, 32, 128], strides = [1, 1, 1]} : vector<9x32x128xf32> to vector<1x32x128xf32>
    %2 = vector.shape_cast %1 : vector<1x32x128xf32> to vector<32x128xf32>
    %3 = vector.extract_strided_slice %0 {offsets = [1, 0, 0], sizes = [1, 32, 128], strides = [1, 1, 1]} : vector<9x32x128xf32> to vector<1x32x128xf32>
    %4 = vector.shape_cast %3 : vector<1x32x128xf32> to vector<32x128xf32>
    %5 = arith.maximumf %2, %4 : vector<32x128xf32>
    %6 = vector.extract_strided_slice %0 {offsets = [2, 0, 0], sizes = [1, 32, 128], strides = [1, 1, 1]} : vector<9x32x128xf32> to vector<1x32x128xf32>
    %7 = vector.shape_cast %6 : vector<1x32x128xf32> to vector<32x128xf32>
    %8 = arith.maximumf %5, %7 : vector<32x128xf32>
    %9 = vector.extract_strided_slice %0 {offsets = [3, 0, 0], sizes = [1, 32, 128], strides = [1, 1, 1]} : vector<9x32x128xf32> to vector<1x32x128xf32>
    %10 = vector.shape_cast %9 : vector<1x32x128xf32> to vector<32x128xf32>
    %11 = arith.maximumf %8, %10 : vector<32x128xf32>
    %12 = vector.extract_strided_slice %0 {offsets = [4, 0, 0], sizes = [1, 32, 128], strides = [1, 1, 1]} : vector<9x32x128xf32> to vector<1x32x128xf32>
    %13 = vector.shape_cast %12 : vector<1x32x128xf32> to vector<32x128xf32>
    %14 = arith.maximumf %11, %13 : vector<32x128xf32>
    %15 = vector.extract_strided_slice %0 {offsets = [5, 0, 0], sizes = [1, 32, 128], strides = [1, 1, 1]} : vector<9x32x128xf32> to vector<1x32x128xf32>
    %16 = vector.shape_cast %15 : vector<1x32x128xf32> to vector<32x128xf32>
    %17 = arith.maximumf %14, %16 : vector<32x128xf32>
    %18 = vector.extract_strided_slice %0 {offsets = [6, 0, 0], sizes = [1, 32, 128], strides = [1, 1, 1]} : vector<9x32x128xf32> to vector<1x32x128xf32>
    %19 = vector.shape_cast %18 : vector<1x32x128xf32> to vector<32x128xf32>
    %20 = arith.maximumf %17, %19 : vector<32x128xf32>
    %21 = vector.extract_strided_slice %0 {offsets = [7, 0, 0], sizes = [1, 32, 128], strides = [1, 1, 1]} : vector<9x32x128xf32> to vector<1x32x128xf32>
    %22 = vector.shape_cast %21 : vector<1x32x128xf32> to vector<32x128xf32>
    %23 = arith.maximumf %20, %22 : vector<32x128xf32>
    %24 = vector.extract_strided_slice %0 {offsets = [8, 0, 0], sizes = [1, 32, 128], strides = [1, 1, 1]} : vector<9x32x128xf32> to vector<1x32x128xf32>
    %25 = vector.shape_cast %24 : vector<1x32x128xf32> to vector<32x128xf32>
    %26 = arith.maximumf %23, %25 : vector<32x128xf32>
    %c0_2 = arith.constant 0 : index
    %c0_3 = arith.constant 0 : index
    %27 = vector.load %arg3[%c0_2, %c0_3] : memref<32x128xf32, #tpu.memory_space<vmem>>, vector<32x128xf32>
    tpu.vector_store %arg3[%c0_2, %c0_3], %26 {strides = array<i32>} : memref<32x128xf32, #tpu.memory_space<vmem>>, vector<32x128xf32>,
    return
  }
  func.func @transform_0(%arg0: i32, %arg1: i32) -> (i32, i32, i32) {
    %c0_i32 = arith.constant 0 : i32
    %c0_i32_0 = arith.constant 0 : i32
    return %c0_i32, %arg0, %arg1 : i32, i32, i32
  }
  func.func @transform_1(%arg0: i32, %arg1: i32) -> (i32, i32) {
    %c0_i32 = arith.constant 0 : i32
    return %arg0, %arg1 : i32, i32
  }
}

module attributes {stable_mosaic.version = 11 : i64} {
  func.func @_avgpool_kernel(%arg0: i32, %arg1: i32, %arg2: memref<9x32x128xf32, #tpu.memory_space<vmem>>, %arg3: memref<1x128xf32, #tpu.memory_space<vmem>>, %arg4: memref<32x128xf32, #tpu.memory_space<vmem>>) attributes {dimension_semantics = [#tpu.dimension_semantics<parallel>, #tpu.dimension_semantics<parallel>], iteration_bounds = array<i64: 1, 1>, scalar_prefetch = 0 : i64, scratch_operands = 0 : i64, tpu.core_type = #tpu.core_type<tc>, window_params = [{transform_indices = @transform_0, window_bounds = array<i64: 9, 32, 128>}, {transform_indices = @transform_1, window_bounds = array<i64: 1, 128>}, {transform_indices = @transform_2, window_bounds = array<i64: 32, 128>}]} {
    %c0 = arith.constant 0 : index
    %c0_0 = arith.constant 0 : index
    %c0_1 = arith.constant 0 : index
    %0 = vector.load %arg2[%c0, %c0_0, %c0_1] : memref<9x32x128xf32, #tpu.memory_space<vmem>>, vector<9x32x128xf32>
    %1 = vector.extract_strided_slice %0 {offsets = [0, 0, 0], sizes = [1, 32, 128], strides = [1, 1, 1]} : vector<9x32x128xf32> to vector<1x32x128xf32>
    %2 = vector.shape_cast %1 : vector<1x32x128xf32> to vector<32x128xf32>
    %3 = vector.extract_strided_slice %0 {offsets = [1, 0, 0], sizes = [1, 32, 128], strides = [1, 1, 1]} : vector<9x32x128xf32> to vector<1x32x128xf32>
    %4 = vector.shape_cast %3 : vector<1x32x128xf32> to vector<32x128xf32>
    %5 = arith.addf %2, %4 : vector<32x128xf32>
    %6 = vector.extract_strided_slice %0 {offsets = [2, 0, 0], sizes = [1, 32, 128], strides = [1, 1, 1]} : vector<9x32x128xf32> to vector<1x32x128xf32>
    %7 = vector.shape_cast %6 : vector<1x32x128xf32> to vector<32x128xf32>
    %8 = arith.addf %5, %7 : vector<32x128xf32>
    %9 = vector.extract_strided_slice %0 {offsets = [3, 0, 0], sizes = [1, 32, 128], strides = [1, 1, 1]} : vector<9x32x128xf32> to vector<1x32x128xf32>
    %10 = vector.shape_cast %9 : vector<1x32x128xf32> to vector<32x128xf32>
    %11 = arith.addf %8, %10 : vector<32x128xf32>
    %12 = vector.extract_strided_slice %0 {offsets = [4, 0, 0], sizes = [1, 32, 128], strides = [1, 1, 1]} : vector<9x32x128xf32> to vector<1x32x128xf32>
    %13 = vector.shape_cast %12 : vector<1x32x128xf32> to vector<32x128xf32>
    %14 = arith.addf %11, %13 : vector<32x128xf32>
    %15 = vector.extract_strided_slice %0 {offsets = [5, 0, 0], sizes = [1, 32, 128], strides = [1, 1, 1]} : vector<9x32x128xf32> to vector<1x32x128xf32>
    %16 = vector.shape_cast %15 : vector<1x32x128xf32> to vector<32x128xf32>
    %17 = arith.addf %14, %16 : vector<32x128xf32>
    %18 = vector.extract_strided_slice %0 {offsets = [6, 0, 0], sizes = [1, 32, 128], strides = [1, 1, 1]} : vector<9x32x128xf32> to vector<1x32x128xf32>
    %19 = vector.shape_cast %18 : vector<1x32x128xf32> to vector<32x128xf32>
    %20 = arith.addf %17, %19 : vector<32x128xf32>
    %21 = vector.extract_strided_slice %0 {offsets = [7, 0, 0], sizes = [1, 32, 128], strides = [1, 1, 1]} : vector<9x32x128xf32> to vector<1x32x128xf32>
    %22 = vector.shape_cast %21 : vector<1x32x128xf32> to vector<32x128xf32>
    %23 = arith.addf %20, %22 : vector<32x128xf32>
    %24 = vector.extract_strided_slice %0 {offsets = [8, 0, 0], sizes = [1, 32, 128], strides = [1, 1, 1]} : vector<9x32x128xf32> to vector<1x32x128xf32>
    %25 = vector.shape_cast %24 : vector<1x32x128xf32> to vector<32x128xf32>
    %26 = arith.addf %23, %25 : vector<32x128xf32>
    %c0_2 = arith.constant 0 : index
    %c0_3 = arith.constant 0 : index
    %27 = vector.load %arg3[%c0_2, %c0_3] : memref<1x128xf32, #tpu.memory_space<vmem>>, vector<1x128xf32>
    %28 = vector.broadcast %27 : vector<1x128xf32> to vector<32x128xf32>
    %29 = arith.mulf %26, %28 : vector<32x128xf32>
    %c0_4 = arith.constant 0 : index
    %c0_5 = arith.constant 0 : index
    %30 = vector.load %arg4[%c0_4, %c0_5] : memref<32x128xf32, #tpu.memory_space<vmem>>, vector<32x128xf32>
    tpu.vector_store %arg4[%c0_4, %c0_5], %29 {strides = array<i32>} : memref<32x128xf32, #tpu.memory_space<vmem>>, vector<32x128xf32>,
    return
  }
  func.func @transform_0(%arg0: i32, %arg1: i32) -> (i32, i32, i32) {
    %c0_i32 = arith.constant 0 : i32
    %c0_i32_0 = arith.constant 0 : i32
    return %c0_i32, %arg0, %arg1 : i32, i32, i32
  }
  func.func @transform_1(%arg0: i32, %arg1: i32) -> (i32, i32) {
    %c0_i32 = arith.constant 0 : i32
    %c0_i32_0 = arith.constant 0 : i32
    return %c0_i32, %arg1 : i32, i32
  }
  func.func @transform_2(%arg0: i32, %arg1: i32) -> (i32, i32) {
    %c0_i32 = arith.constant 0 : i32
    return %arg0, %arg1 : i32, i32
  }
}

module attributes {stable_mosaic.version = 11 : i64} {
  func.func @_matmul_kernel(%arg0: i32, %arg1: i32, %arg2: memref<32x16xbf16, #tpu.memory_space<vmem>>, %arg3: memref<16x128xbf16, #tpu.memory_space<vmem>>, %arg4: memref<32x128xf32, #tpu.memory_space<vmem>>) attributes {dimension_semantics = [#tpu.dimension_semantics<parallel>, #tpu.dimension_semantics<parallel>], iteration_bounds = array<i64: 1, 1>, scalar_prefetch = 0 : i64, scratch_operands = 0 : i64, tpu.core_type = #tpu.core_type<tc>, window_params = [{transform_indices = @transform_0, window_bounds = array<i64: 32, 16>}, {transform_indices = @transform_1, window_bounds = array<i64: 16, 128>}, {transform_indices = @transform_2, window_bounds = array<i64: 32, 128>}]} {
    %c0 = arith.constant 0 : index
    %c0_0 = arith.constant 0 : index
    %0 = vector.load %arg2[%c0, %c0_0] : memref<32x16xbf16, #tpu.memory_space<vmem>>, vector<32x16xbf16>
    %c0_1 = arith.constant 0 : index
    %c0_2 = arith.constant 0 : index
    %1 = vector.load %arg3[%c0_1, %c0_2] : memref<16x128xbf16, #tpu.memory_space<vmem>>, vector<16x128xbf16>
    %cst = arith.constant dense<0.000000e+00> : vector<32x128xf32>
    %2 = tpu.matmul %0, %1, %cst {dimension_numbers = #tpu.dot_dimension_numbers<[1], [0], [0], [1], [0, 0, 1, 1], [], []>} : vector<32x16xbf16>, vector<16x128xbf16>, vector<32x128xf32> -> vector<32x128xf32>
    %c0_3 = arith.constant 0 : index
    %c0_4 = arith.constant 0 : index
    %3 = vector.load %arg4[%c0_3, %c0_4] : memref<32x128xf32, #tpu.memory_space<vmem>>, vector<32x128xf32>
    tpu.vector_store %arg4[%c0_3, %c0_4], %2 {strides = array<i32>} : memref<32x128xf32, #tpu.memory_space<vmem>>, vector<32x128xf32>,
    return
  }
  func.func @transform_0(%arg0: i32, %arg1: i32) -> (i32, i32) {
    %c0_i32 = arith.constant 0 : i32
    %c0_i32_0 = arith.constant 0 : i32
    return %arg0, %c0_i32 : i32, i32
  }
  func.func @transform_1(%arg0: i32, %arg1: i32) -> (i32, i32) {
    %c0_i32 = arith.constant 0 : i32
    %c0_i32_0 = arith.constant 0 : i32
    return %c0_i32, %arg1 : i32, i32
  }
  func.func @transform_2(%arg0: i32, %arg1: i32) -> (i32, i32) {
    %c0_i32 = arith.constant 0 : i32
    return %arg0, %arg1 : i32, i32
  }
}

module attributes {stable_mosaic.version = 11 : i64} {
  func.func @_dw_kernel(%arg0: i32, %arg1: memref<9x16x128xf32, #tpu.memory_space<vmem>>, %arg2: memref<16x9xf32, #tpu.memory_space<vmem>>, %arg3: memref<16x128xf32, #tpu.memory_space<vmem>>) attributes {dimension_semantics = [#tpu.dimension_semantics<parallel>], iteration_bounds = array<i64: 1>, scalar_prefetch = 0 : i64, scratch_operands = 0 : i64, tpu.core_type = #tpu.core_type<tc>, window_params = [{transform_indices = @transform_0, window_bounds = array<i64: 9, 16, 128>}, {pipeline_mode = #tpu.pipeline_mode<synchronous>, transform_indices = @transform_1, window_bounds = array<i64: 16, 9>}, {transform_indices = @transform_2, window_bounds = array<i64: 16, 128>}]} {
    %c0 = arith.constant 0 : index
    %c0_0 = arith.constant 0 : index
    %c0_1 = arith.constant 0 : index
    %0 = vector.load %arg1[%c0, %c0_0, %c0_1] : memref<9x16x128xf32, #tpu.memory_space<vmem>>, vector<9x16x128xf32>
    %c0_2 = arith.constant 0 : index
    %c0_3 = arith.constant 0 : index
    %1 = vector.load %arg2[%c0_2, %c0_3] : memref<16x9xf32, #tpu.memory_space<vmem>>, vector<16x9xf32>
    %2 = vector.extract_strided_slice %0 {offsets = [0, 0, 0], sizes = [1, 16, 128], strides = [1, 1, 1]} : vector<9x16x128xf32> to vector<1x16x128xf32>
    %3 = vector.shape_cast %2 : vector<1x16x128xf32> to vector<16x128xf32>
    %4 = vector.extract_strided_slice %1 {offsets = [0, 0], sizes = [16, 1], strides = [1, 1]} : vector<16x9xf32> to vector<16x1xf32>
    %5 = vector.broadcast %4 : vector<16x1xf32> to vector<16x128xf32>
    %6 = arith.mulf %3, %5 : vector<16x128xf32>
    %7 = vector.extract_strided_slice %0 {offsets = [1, 0, 0], sizes = [1, 16, 128], strides = [1, 1, 1]} : vector<9x16x128xf32> to vector<1x16x128xf32>
    %8 = vector.shape_cast %7 : vector<1x16x128xf32> to vector<16x128xf32>
    %9 = vector.extract_strided_slice %1 {offsets = [0, 1], sizes = [16, 1], strides = [1, 1]} : vector<16x9xf32> to vector<16x1xf32>
    %10 = vector.broadcast %9 : vector<16x1xf32> to vector<16x128xf32>
    %11 = arith.mulf %8, %10 : vector<16x128xf32>
    %12 = arith.addf %6, %11 : vector<16x128xf32>
    %13 = vector.extract_strided_slice %0 {offsets = [2, 0, 0], sizes = [1, 16, 128], strides = [1, 1, 1]} : vector<9x16x128xf32> to vector<1x16x128xf32>
    %14 = vector.shape_cast %13 : vector<1x16x128xf32> to vector<16x128xf32>
    %15 = vector.extract_strided_slice %1 {offsets = [0, 2], sizes = [16, 1], strides = [1, 1]} : vector<16x9xf32> to vector<16x1xf32>
    %16 = vector.broadcast %15 : vector<16x1xf32> to vector<16x128xf32>
    %17 = arith.mulf %14, %16 : vector<16x128xf32>
    %18 = arith.addf %12, %17 : vector<16x128xf32>
    %19 = vector.extract_strided_slice %0 {offsets = [3, 0, 0], sizes = [1, 16, 128], strides = [1, 1, 1]} : vector<9x16x128xf32> to vector<1x16x128xf32>
    %20 = vector.shape_cast %19 : vector<1x16x128xf32> to vector<16x128xf32>
    %21 = vector.extract_strided_slice %1 {offsets = [0, 3], sizes = [16, 1], strides = [1, 1]} : vector<16x9xf32> to vector<16x1xf32>
    %22 = vector.broadcast %21 : vector<16x1xf32> to vector<16x128xf32>
    %23 = arith.mulf %20, %22 : vector<16x128xf32>
    %24 = arith.addf %18, %23 : vector<16x128xf32>
    %25 = vector.extract_strided_slice %0 {offsets = [4, 0, 0], sizes = [1, 16, 128], strides = [1, 1, 1]} : vector<9x16x128xf32> to vector<1x16x128xf32>
    %26 = vector.shape_cast %25 : vector<1x16x128xf32> to vector<16x128xf32>
    %27 = vector.extract_strided_slice %1 {offsets = [0, 4], sizes = [16, 1], strides = [1, 1]} : vector<16x9xf32> to vector<16x1xf32>
    %28 = vector.broadcast %27 : vector<16x1xf32> to vector<16x128xf32>
    %29 = arith.mulf %26, %28 : vector<16x128xf32>
    %30 = arith.addf %24, %29 : vector<16x128xf32>
    %31 = vector.extract_strided_slice %0 {offsets = [5, 0, 0], sizes = [1, 16, 128], strides = [1, 1, 1]} : vector<9x16x128xf32> to vector<1x16x128xf32>
    %32 = vector.shape_cast %31 : vector<1x16x128xf32> to vector<16x128xf32>
    %33 = vector.extract_strided_slice %1 {offsets = [0, 5], sizes = [16, 1], strides = [1, 1]} : vector<16x9xf32> to vector<16x1xf32>
    %34 = vector.broadcast %33 : vector<16x1xf32> to vector<16x128xf32>
    %35 = arith.mulf %32, %34 : vector<16x128xf32>
    %36 = arith.addf %30, %35 : vector<16x128xf32>
    %37 = vector.extract_strided_slice %0 {offsets = [6, 0, 0], sizes = [1, 16, 128], strides = [1, 1, 1]} : vector<9x16x128xf32> to vector<1x16x128xf32>
    %38 = vector.shape_cast %37 : vector<1x16x128xf32> to vector<16x128xf32>
    %39 = vector.extract_strided_slice %1 {offsets = [0, 6], sizes = [16, 1], strides = [1, 1]} : vector<16x9xf32> to vector<16x1xf32>
    %40 = vector.broadcast %39 : vector<16x1xf32> to vector<16x128xf32>
    %41 = arith.mulf %38, %40 : vector<16x128xf32>
    %42 = arith.addf %36, %41 : vector<16x128xf32>
    %43 = vector.extract_strided_slice %0 {offsets = [7, 0, 0], sizes = [1, 16, 128], strides = [1, 1, 1]} : vector<9x16x128xf32> to vector<1x16x128xf32>
    %44 = vector.shape_cast %43 : vector<1x16x128xf32> to vector<16x128xf32>
    %45 = vector.extract_strided_slice %1 {offsets = [0, 7], sizes = [16, 1], strides = [1, 1]} : vector<16x9xf32> to vector<16x1xf32>
    %46 = vector.broadcast %45 : vector<16x1xf32> to vector<16x128xf32>
    %47 = arith.mulf %44, %46 : vector<16x128xf32>
    %48 = arith.addf %42, %47 : vector<16x128xf32>
    %49 = vector.extract_strided_slice %0 {offsets = [8, 0, 0], sizes = [1, 16, 128], strides = [1, 1, 1]} : vector<9x16x128xf32> to vector<1x16x128xf32>
    %50 = vector.shape_cast %49 : vector<1x16x128xf32> to vector<16x128xf32>
    %51 = vector.extract_strided_slice %1 {offsets = [0, 8], sizes = [16, 1], strides = [1, 1]} : vector<16x9xf32> to vector<16x1xf32>
    %52 = vector.broadcast %51 : vector<16x1xf32> to vector<16x128xf32>
    %53 = arith.mulf %50, %52 : vector<16x128xf32>
    %54 = arith.addf %48, %53 : vector<16x128xf32>
    %c0_4 = arith.constant 0 : index
    %c0_5 = arith.constant 0 : index
    %55 = vector.load %arg3[%c0_4, %c0_5] : memref<16x128xf32, #tpu.memory_space<vmem>>, vector<16x128xf32>
    tpu.vector_store %arg3[%c0_4, %c0_5], %54 {strides = array<i32>} : memref<16x128xf32, #tpu.memory_space<vmem>>, vector<16x128xf32>,
    return
  }
  func.func @transform_0(%arg0: i32) -> (i32, i32, i32) {
    %c0_i32 = arith.constant 0 : i32
    %c0_i32_0 = arith.constant 0 : i32
    %c0_i32_1 = arith.constant 0 : i32
    return %c0_i32, %c0_i32_0, %arg0 : i32, i32, i32
  }
  func.func @transform_1(%arg0: i32) -> (i32, i32) {
    %c0_i32 = arith.constant 0 : i32
    %c0_i32_0 = arith.constant 0 : i32
    %c0_i32_1 = arith.constant 0 : i32
    return %c0_i32, %c0_i32_0 : i32, i32
  }
  func.func @transform_2(%arg0: i32) -> (i32, i32) {
    %c0_i32 = arith.constant 0 : i32
    %c0_i32_0 = arith.constant 0 : i32
    return %c0_i32, %arg0 : i32, i32
  }
}

module attributes {stable_mosaic.version = 11 : i64} {
  func.func @_dw_kernel(%arg0: i32, %arg1: memref<25x16x128xf32, #tpu.memory_space<vmem>>, %arg2: memref<16x25xf32, #tpu.memory_space<vmem>>, %arg3: memref<16x128xf32, #tpu.memory_space<vmem>>) attributes {dimension_semantics = [#tpu.dimension_semantics<parallel>], iteration_bounds = array<i64: 1>, scalar_prefetch = 0 : i64, scratch_operands = 0 : i64, tpu.core_type = #tpu.core_type<tc>, window_params = [{transform_indices = @transform_0, window_bounds = array<i64: 25, 16, 128>}, {pipeline_mode = #tpu.pipeline_mode<synchronous>, transform_indices = @transform_1, window_bounds = array<i64: 16, 25>}, {transform_indices = @transform_2, window_bounds = array<i64: 16, 128>}]} {
    %c0 = arith.constant 0 : index
    %c0_0 = arith.constant 0 : index
    %c0_1 = arith.constant 0 : index
    %0 = vector.load %arg1[%c0, %c0_0, %c0_1] : memref<25x16x128xf32, #tpu.memory_space<vmem>>, vector<25x16x128xf32>
    %c0_2 = arith.constant 0 : index
    %c0_3 = arith.constant 0 : index
    %1 = vector.load %arg2[%c0_2, %c0_3] : memref<16x25xf32, #tpu.memory_space<vmem>>, vector<16x25xf32>
    %2 = vector.extract_strided_slice %0 {offsets = [0, 0, 0], sizes = [1, 16, 128], strides = [1, 1, 1]} : vector<25x16x128xf32> to vector<1x16x128xf32>
    %3 = vector.shape_cast %2 : vector<1x16x128xf32> to vector<16x128xf32>
    %4 = vector.extract_strided_slice %1 {offsets = [0, 0], sizes = [16, 1], strides = [1, 1]} : vector<16x25xf32> to vector<16x1xf32>
    %5 = vector.broadcast %4 : vector<16x1xf32> to vector<16x128xf32>
    %6 = arith.mulf %3, %5 : vector<16x128xf32>
    %7 = vector.extract_strided_slice %0 {offsets = [1, 0, 0], sizes = [1, 16, 128], strides = [1, 1, 1]} : vector<25x16x128xf32> to vector<1x16x128xf32>
    %8 = vector.shape_cast %7 : vector<1x16x128xf32> to vector<16x128xf32>
    %9 = vector.extract_strided_slice %1 {offsets = [0, 1], sizes = [16, 1], strides = [1, 1]} : vector<16x25xf32> to vector<16x1xf32>
    %10 = vector.broadcast %9 : vector<16x1xf32> to vector<16x128xf32>
    %11 = arith.mulf %8, %10 : vector<16x128xf32>
    %12 = arith.addf %6, %11 : vector<16x128xf32>
    %13 = vector.extract_strided_slice %0 {offsets = [2, 0, 0], sizes = [1, 16, 128], strides = [1, 1, 1]} : vector<25x16x128xf32> to vector<1x16x128xf32>
    %14 = vector.shape_cast %13 : vector<1x16x128xf32> to vector<16x128xf32>
    %15 = vector.extract_strided_slice %1 {offsets = [0, 2], sizes = [16, 1], strides = [1, 1]} : vector<16x25xf32> to vector<16x1xf32>
    %16 = vector.broadcast %15 : vector<16x1xf32> to vector<16x128xf32>
    %17 = arith.mulf %14, %16 : vector<16x128xf32>
    %18 = arith.addf %12, %17 : vector<16x128xf32>
    %19 = vector.extract_strided_slice %0 {offsets = [3, 0, 0], sizes = [1, 16, 128], strides = [1, 1, 1]} : vector<25x16x128xf32> to vector<1x16x128xf32>
    %20 = vector.shape_cast %19 : vector<1x16x128xf32> to vector<16x128xf32>
    %21 = vector.extract_strided_slice %1 {offsets = [0, 3], sizes = [16, 1], strides = [1, 1]} : vector<16x25xf32> to vector<16x1xf32>
    %22 = vector.broadcast %21 : vector<16x1xf32> to vector<16x128xf32>
    %23 = arith.mulf %20, %22 : vector<16x128xf32>
    %24 = arith.addf %18, %23 : vector<16x128xf32>
    %25 = vector.extract_strided_slice %0 {offsets = [4, 0, 0], sizes = [1, 16, 128], strides = [1, 1, 1]} : vector<25x16x128xf32> to vector<1x16x128xf32>
    %26 = vector.shape_cast %25 : vector<1x16x128xf32> to vector<16x128xf32>
    %27 = vector.extract_strided_slice %1 {offsets = [0, 4], sizes = [16, 1], strides = [1, 1]} : vector<16x25xf32> to vector<16x1xf32>
    %28 = vector.broadcast %27 : vector<16x1xf32> to vector<16x128xf32>
    %29 = arith.mulf %26, %28 : vector<16x128xf32>
    %30 = arith.addf %24, %29 : vector<16x128xf32>
    %31 = vector.extract_strided_slice %0 {offsets = [5, 0, 0], sizes = [1, 16, 128], strides = [1, 1, 1]} : vector<25x16x128xf32> to vector<1x16x128xf32>
    %32 = vector.shape_cast %31 : vector<1x16x128xf32> to vector<16x128xf32>
    %33 = vector.extract_strided_slice %1 {offsets = [0, 5], sizes = [16, 1], strides = [1, 1]} : vector<16x25xf32> to vector<16x1xf32>
    %34 = vector.broadcast %33 : vector<16x1xf32> to vector<16x128xf32>
    %35 = arith.mulf %32, %34 : vector<16x128xf32>
    %36 = arith.addf %30, %35 : vector<16x128xf32>
    %37 = vector.extract_strided_slice %0 {offsets = [6, 0, 0], sizes = [1, 16, 128], strides = [1, 1, 1]} : vector<25x16x128xf32> to vector<1x16x128xf32>
    %38 = vector.shape_cast %37 : vector<1x16x128xf32> to vector<16x128xf32>
    %39 = vector.extract_strided_slice %1 {offsets = [0, 6], sizes = [16, 1], strides = [1, 1]} : vector<16x25xf32> to vector<16x1xf32>
    %40 = vector.broadcast %39 : vector<16x1xf32> to vector<16x128xf32>
    %41 = arith.mulf %38, %40 : vector<16x128xf32>
    %42 = arith.addf %36, %41 : vector<16x128xf32>
    %43 = vector.extract_strided_slice %0 {offsets = [7, 0, 0], sizes = [1, 16, 128], strides = [1, 1, 1]} : vector<25x16x128xf32> to vector<1x16x128xf32>
    %44 = vector.shape_cast %43 : vector<1x16x128xf32> to vector<16x128xf32>
    %45 = vector.extract_strided_slice %1 {offsets = [0, 7], sizes = [16, 1], strides = [1, 1]} : vector<16x25xf32> to vector<16x1xf32>
    %46 = vector.broadcast %45 : vector<16x1xf32> to vector<16x128xf32>
    %47 = arith.mulf %44, %46 : vector<16x128xf32>
    %48 = arith.addf %42, %47 : vector<16x128xf32>
    %49 = vector.extract_strided_slice %0 {offsets = [8, 0, 0], sizes = [1, 16, 128], strides = [1, 1, 1]} : vector<25x16x128xf32> to vector<1x16x128xf32>
    %50 = vector.shape_cast %49 : vector<1x16x128xf32> to vector<16x128xf32>
    %51 = vector.extract_strided_slice %1 {offsets = [0, 8], sizes = [16, 1], strides = [1, 1]} : vector<16x25xf32> to vector<16x1xf32>
    %52 = vector.broadcast %51 : vector<16x1xf32> to vector<16x128xf32>
    %53 = arith.mulf %50, %52 : vector<16x128xf32>
    %54 = arith.addf %48, %53 : vector<16x128xf32>
    %55 = vector.extract_strided_slice %0 {offsets = [9, 0, 0], sizes = [1, 16, 128], strides = [1, 1, 1]} : vector<25x16x128xf32> to vector<1x16x128xf32>
    %56 = vector.shape_cast %55 : vector<1x16x128xf32> to vector<16x128xf32>
    %57 = vector.extract_strided_slice %1 {offsets = [0, 9], sizes = [16, 1], strides = [1, 1]} : vector<16x25xf32> to vector<16x1xf32>
    %58 = vector.broadcast %57 : vector<16x1xf32> to vector<16x128xf32>
    %59 = arith.mulf %56, %58 : vector<16x128xf32>
    %60 = arith.addf %54, %59 : vector<16x128xf32>
    %61 = vector.extract_strided_slice %0 {offsets = [10, 0, 0], sizes = [1, 16, 128], strides = [1, 1, 1]} : vector<25x16x128xf32> to vector<1x16x128xf32>
    %62 = vector.shape_cast %61 : vector<1x16x128xf32> to vector<16x128xf32>
    %63 = vector.extract_strided_slice %1 {offsets = [0, 10], sizes = [16, 1], strides = [1, 1]} : vector<16x25xf32> to vector<16x1xf32>
    %64 = vector.broadcast %63 : vector<16x1xf32> to vector<16x128xf32>
    %65 = arith.mulf %62, %64 : vector<16x128xf32>
    %66 = arith.addf %60, %65 : vector<16x128xf32>
    %67 = vector.extract_strided_slice %0 {offsets = [11, 0, 0], sizes = [1, 16, 128], strides = [1, 1, 1]} : vector<25x16x128xf32> to vector<1x16x128xf32>
    %68 = vector.shape_cast %67 : vector<1x16x128xf32> to vector<16x128xf32>
    %69 = vector.extract_strided_slice %1 {offsets = [0, 11], sizes = [16, 1], strides = [1, 1]} : vector<16x25xf32> to vector<16x1xf32>
    %70 = vector.broadcast %69 : vector<16x1xf32> to vector<16x128xf32>
    %71 = arith.mulf %68, %70 : vector<16x128xf32>
    %72 = arith.addf %66, %71 : vector<16x128xf32>
    %73 = vector.extract_strided_slice %0 {offsets = [12, 0, 0], sizes = [1, 16, 128], strides = [1, 1, 1]} : vector<25x16x128xf32> to vector<1x16x128xf32>
    %74 = vector.shape_cast %73 : vector<1x16x128xf32> to vector<16x128xf32>
    %75 = vector.extract_strided_slice %1 {offsets = [0, 12], sizes = [16, 1], strides = [1, 1]} : vector<16x25xf32> to vector<16x1xf32>
    %76 = vector.broadcast %75 : vector<16x1xf32> to vector<16x128xf32>
    %77 = arith.mulf %74, %76 : vector<16x128xf32>
    %78 = arith.addf %72, %77 : vector<16x128xf32>
    %79 = vector.extract_strided_slice %0 {offsets = [13, 0, 0], sizes = [1, 16, 128], strides = [1, 1, 1]} : vector<25x16x128xf32> to vector<1x16x128xf32>
    %80 = vector.shape_cast %79 : vector<1x16x128xf32> to vector<16x128xf32>
    %81 = vector.extract_strided_slice %1 {offsets = [0, 13], sizes = [16, 1], strides = [1, 1]} : vector<16x25xf32> to vector<16x1xf32>
    %82 = vector.broadcast %81 : vector<16x1xf32> to vector<16x128xf32>
    %83 = arith.mulf %80, %82 : vector<16x128xf32>
    %84 = arith.addf %78, %83 : vector<16x128xf32>
    %85 = vector.extract_strided_slice %0 {offsets = [14, 0, 0], sizes = [1, 16, 128], strides = [1, 1, 1]} : vector<25x16x128xf32> to vector<1x16x128xf32>
    %86 = vector.shape_cast %85 : vector<1x16x128xf32> to vector<16x128xf32>
    %87 = vector.extract_strided_slice %1 {offsets = [0, 14], sizes = [16, 1], strides = [1, 1]} : vector<16x25xf32> to vector<16x1xf32>
    %88 = vector.broadcast %87 : vector<16x1xf32> to vector<16x128xf32>
    %89 = arith.mulf %86, %88 : vector<16x128xf32>
    %90 = arith.addf %84, %89 : vector<16x128xf32>
    %91 = vector.extract_strided_slice %0 {offsets = [15, 0, 0], sizes = [1, 16, 128], strides = [1, 1, 1]} : vector<25x16x128xf32> to vector<1x16x128xf32>
    %92 = vector.shape_cast %91 : vector<1x16x128xf32> to vector<16x128xf32>
    %93 = vector.extract_strided_slice %1 {offsets = [0, 15], sizes = [16, 1], strides = [1, 1]} : vector<16x25xf32> to vector<16x1xf32>
    %94 = vector.broadcast %93 : vector<16x1xf32> to vector<16x128xf32>
    %95 = arith.mulf %92, %94 : vector<16x128xf32>
    %96 = arith.addf %90, %95 : vector<16x128xf32>
    %97 = vector.extract_strided_slice %0 {offsets = [16, 0, 0], sizes = [1, 16, 128], strides = [1, 1, 1]} : vector<25x16x128xf32> to vector<1x16x128xf32>
    %98 = vector.shape_cast %97 : vector<1x16x128xf32> to vector<16x128xf32>
    %99 = vector.extract_strided_slice %1 {offsets = [0, 16], sizes = [16, 1], strides = [1, 1]} : vector<16x25xf32> to vector<16x1xf32>
    %100 = vector.broadcast %99 : vector<16x1xf32> to vector<16x128xf32>
    %101 = arith.mulf %98, %100 : vector<16x128xf32>
    %102 = arith.addf %96, %101 : vector<16x128xf32>
    %103 = vector.extract_strided_slice %0 {offsets = [17, 0, 0], sizes = [1, 16, 128], strides = [1, 1, 1]} : vector<25x16x128xf32> to vector<1x16x128xf32>
    %104 = vector.shape_cast %103 : vector<1x16x128xf32> to vector<16x128xf32>
    %105 = vector.extract_strided_slice %1 {offsets = [0, 17], sizes = [16, 1], strides = [1, 1]} : vector<16x25xf32> to vector<16x1xf32>
    %106 = vector.broadcast %105 : vector<16x1xf32> to vector<16x128xf32>
    %107 = arith.mulf %104, %106 : vector<16x128xf32>
    %108 = arith.addf %102, %107 : vector<16x128xf32>
    %109 = vector.extract_strided_slice %0 {offsets = [18, 0, 0], sizes = [1, 16, 128], strides = [1, 1, 1]} : vector<25x16x128xf32> to vector<1x16x128xf32>
    %110 = vector.shape_cast %109 : vector<1x16x128xf32> to vector<16x128xf32>
    %111 = vector.extract_strided_slice %1 {offsets = [0, 18], sizes = [16, 1], strides = [1, 1]} : vector<16x25xf32> to vector<16x1xf32>
    %112 = vector.broadcast %111 : vector<16x1xf32> to vector<16x128xf32>
    %113 = arith.mulf %110, %112 : vector<16x128xf32>
    %114 = arith.addf %108, %113 : vector<16x128xf32>
    %115 = vector.extract_strided_slice %0 {offsets = [19, 0, 0], sizes = [1, 16, 128], strides = [1, 1, 1]} : vector<25x16x128xf32> to vector<1x16x128xf32>
    %116 = vector.shape_cast %115 : vector<1x16x128xf32> to vector<16x128xf32>
    %117 = vector.extract_strided_slice %1 {offsets = [0, 19], sizes = [16, 1], strides = [1, 1]} : vector<16x25xf32> to vector<16x1xf32>
    %118 = vector.broadcast %117 : vector<16x1xf32> to vector<16x128xf32>
    %119 = arith.mulf %116, %118 : vector<16x128xf32>
    %120 = arith.addf %114, %119 : vector<16x128xf32>
    %121 = vector.extract_strided_slice %0 {offsets = [20, 0, 0], sizes = [1, 16, 128], strides = [1, 1, 1]} : vector<25x16x128xf32> to vector<1x16x128xf32>
    %122 = vector.shape_cast %121 : vector<1x16x128xf32> to vector<16x128xf32>
    %123 = vector.extract_strided_slice %1 {offsets = [0, 20], sizes = [16, 1], strides = [1, 1]} : vector<16x25xf32> to vector<16x1xf32>
    %124 = vector.broadcast %123 : vector<16x1xf32> to vector<16x128xf32>
    %125 = arith.mulf %122, %124 : vector<16x128xf32>
    %126 = arith.addf %120, %125 : vector<16x128xf32>
    %127 = vector.extract_strided_slice %0 {offsets = [21, 0, 0], sizes = [1, 16, 128], strides = [1, 1, 1]} : vector<25x16x128xf32> to vector<1x16x128xf32>
    %128 = vector.shape_cast %127 : vector<1x16x128xf32> to vector<16x128xf32>
    %129 = vector.extract_strided_slice %1 {offsets = [0, 21], sizes = [16, 1], strides = [1, 1]} : vector<16x25xf32> to vector<16x1xf32>
    %130 = vector.broadcast %129 : vector<16x1xf32> to vector<16x128xf32>
    %131 = arith.mulf %128, %130 : vector<16x128xf32>
    %132 = arith.addf %126, %131 : vector<16x128xf32>
    %133 = vector.extract_strided_slice %0 {offsets = [22, 0, 0], sizes = [1, 16, 128], strides = [1, 1, 1]} : vector<25x16x128xf32> to vector<1x16x128xf32>
    %134 = vector.shape_cast %133 : vector<1x16x128xf32> to vector<16x128xf32>
    %135 = vector.extract_strided_slice %1 {offsets = [0, 22], sizes = [16, 1], strides = [1, 1]} : vector<16x25xf32> to vector<16x1xf32>
    %136 = vector.broadcast %135 : vector<16x1xf32> to vector<16x128xf32>
    %137 = arith.mulf %134, %136 : vector<16x128xf32>
    %138 = arith.addf %132, %137 : vector<16x128xf32>
    %139 = vector.extract_strided_slice %0 {offsets = [23, 0, 0], sizes = [1, 16, 128], strides = [1, 1, 1]} : vector<25x16x128xf32> to vector<1x16x128xf32>
    %140 = vector.shape_cast %139 : vector<1x16x128xf32> to vector<16x128xf32>
    %141 = vector.extract_strided_slice %1 {offsets = [0, 23], sizes = [16, 1], strides = [1, 1]} : vector<16x25xf32> to vector<16x1xf32>
    %142 = vector.broadcast %141 : vector<16x1xf32> to vector<16x128xf32>
    %143 = arith.mulf %140, %142 : vector<16x128xf32>
    %144 = arith.addf %138, %143 : vector<16x128xf32>
    %145 = vector.extract_strided_slice %0 {offsets = [24, 0, 0], sizes = [1, 16, 128], strides = [1, 1, 1]} : vector<25x16x128xf32> to vector<1x16x128xf32>
    %146 = vector.shape_cast %145 : vector<1x16x128xf32> to vector<16x128xf32>
    %147 = vector.extract_strided_slice %1 {offsets = [0, 24], sizes = [16, 1], strides = [1, 1]} : vector<16x25xf32> to vector<16x1xf32>
    %148 = vector.broadcast %147 : vector<16x1xf32> to vector<16x128xf32>
    %149 = arith.mulf %146, %148 : vector<16x128xf32>
    %150 = arith.addf %144, %149 : vector<16x128xf32>
    %c0_4 = arith.constant 0 : index
    %c0_5 = arith.constant 0 : index
    %151 = vector.load %arg3[%c0_4, %c0_5] : memref<16x128xf32, #tpu.memory_space<vmem>>, vector<16x128xf32>
    tpu.vector_store %arg3[%c0_4, %c0_5], %150 {strides = array<i32>} : memref<16x128xf32, #tpu.memory_space<vmem>>, vector<16x128xf32>,
    return
  }
  func.func @transform_0(%arg0: i32) -> (i32, i32, i32) {
    %c0_i32 = arith.constant 0 : i32
    %c0_i32_0 = arith.constant 0 : i32
    %c0_i32_1 = arith.constant 0 : i32
    return %c0_i32, %c0_i32_0, %arg0 : i32, i32, i32
  }
  func.func @transform_1(%arg0: i32) -> (i32, i32) {
    %c0_i32 = arith.constant 0 : i32
    %c0_i32_0 = arith.constant 0 : i32
    %c0_i32_1 = arith.constant 0 : i32
    return %c0_i32, %c0_i32_0 : i32, i32
  }
  func.func @transform_2(%arg0: i32) -> (i32, i32) {
    %c0_i32 = arith.constant 0 : i32
    %c0_i32_0 = arith.constant 0 : i32
    return %c0_i32, %arg0 : i32, i32
  }
}

module attributes {stable_mosaic.version = 11 : i64} {
  func.func @_matmul_kernel(%arg0: i32, %arg1: i32, %arg2: memref<256x12xbf16, #tpu.memory_space<vmem>>, %arg3: memref<12x128xbf16, #tpu.memory_space<vmem>>, %arg4: memref<256x128xf32, #tpu.memory_space<vmem>>) attributes {dimension_semantics = [#tpu.dimension_semantics<parallel>, #tpu.dimension_semantics<parallel>], iteration_bounds = array<i64: 2, 1>, scalar_prefetch = 0 : i64, scratch_operands = 0 : i64, tpu.core_type = #tpu.core_type<tc>, window_params = [{transform_indices = @transform_0, window_bounds = array<i64: 256, 12>}, {transform_indices = @transform_1, window_bounds = array<i64: 12, 128>}, {transform_indices = @transform_2, window_bounds = array<i64: 256, 128>}]} {
    %c0 = arith.constant 0 : index
    %c0_0 = arith.constant 0 : index
    %0 = vector.load %arg2[%c0, %c0_0] : memref<256x12xbf16, #tpu.memory_space<vmem>>, vector<256x12xbf16>
    %c0_1 = arith.constant 0 : index
    %c0_2 = arith.constant 0 : index
    %1 = vector.load %arg3[%c0_1, %c0_2] : memref<12x128xbf16, #tpu.memory_space<vmem>>, vector<12x128xbf16>
    %cst = arith.constant dense<0.000000e+00> : vector<256x128xf32>
    %2 = tpu.matmul %0, %1, %cst {dimension_numbers = #tpu.dot_dimension_numbers<[1], [0], [0], [1], [0, 0, 1, 1], [], []>} : vector<256x12xbf16>, vector<12x128xbf16>, vector<256x128xf32> -> vector<256x128xf32>
    %c0_3 = arith.constant 0 : index
    %c0_4 = arith.constant 0 : index
    %3 = vector.load %arg4[%c0_3, %c0_4] : memref<256x128xf32, #tpu.memory_space<vmem>>, vector<256x128xf32>
    tpu.vector_store %arg4[%c0_3, %c0_4], %2 {strides = array<i32>} : memref<256x128xf32, #tpu.memory_space<vmem>>, vector<256x128xf32>,
    return
  }
  func.func @transform_0(%arg0: i32, %arg1: i32) -> (i32, i32) {
    %c0_i32 = arith.constant 0 : i32
    %c0_i32_0 = arith.constant 0 : i32
    return %arg0, %c0_i32 : i32, i32
  }
  func.func @transform_1(%arg0: i32, %arg1: i32) -> (i32, i32) {
    %c0_i32 = arith.constant 0 : i32
    %c0_i32_0 = arith.constant 0 : i32
    return %c0_i32, %arg1 : i32, i32
  }
  func.func @transform_2(%arg0: i32, %arg1: i32) -> (i32, i32) {
    %c0_i32 = arith.constant 0 : i32
    return %arg0, %arg1 : i32, i32
  }
}

module attributes {stable_mosaic.version = 11 : i64} {
  func.func @_bn_stats_kernel(%arg0: i32, %arg1: memref<8x512xf32, #tpu.memory_space<vmem>>, %arg2: memref<8x1xf32, #tpu.memory_space<vmem>>, %arg3: memref<8x1xf32, #tpu.memory_space<vmem>>) attributes {dimension_semantics = [#tpu.dimension_semantics<arbitrary>], iteration_bounds = array<i64: 1>, scalar_prefetch = 0 : i64, scratch_operands = 0 : i64, tpu.core_type = #tpu.core_type<tc>, window_params = [{transform_indices = @transform_0, window_bounds = array<i64: 8, 512>}, {pipeline_mode = #tpu.pipeline_mode<synchronous>, transform_indices = @transform_1, window_bounds = array<i64: 8, 1>}, {pipeline_mode = #tpu.pipeline_mode<synchronous>, transform_indices = @transform_2, window_bounds = array<i64: 8, 1>}]} {
    %c0_i32 = arith.constant 0 : i32
    %0 = arith.cmpi eq, %arg0, %c0_i32 : i32
    %1 = arith.extui %0 : i1 to i32
    %c0_i32_0 = arith.constant 0 : i32
    %2 = arith.cmpi ne, %1, %c0_i32_0 : i32
    scf.if %2 {
      %cst_11 = arith.constant 0.000000e+00 : f32
      %15 = vector.broadcast %cst_11 : f32 to vector<8x1xf32>
      %c0_12 = arith.constant 0 : index
      %c0_13 = arith.constant 0 : index
      %16 = vector.load %arg2[%c0_12, %c0_13] : memref<8x1xf32, #tpu.memory_space<vmem>>, vector<8x1xf32>
      tpu.vector_store %arg2[%c0_12, %c0_13], %15 {strides = array<i32>} : memref<8x1xf32, #tpu.memory_space<vmem>>, vector<8x1xf32>,
      %cst_14 = arith.constant 0.000000e+00 : f32
      %17 = vector.broadcast %cst_14 : f32 to vector<8x1xf32>
      %c0_15 = arith.constant 0 : index
      %c0_16 = arith.constant 0 : index
      %18 = vector.load %arg3[%c0_15, %c0_16] : memref<8x1xf32, #tpu.memory_space<vmem>>, vector<8x1xf32>
      tpu.vector_store %arg3[%c0_15, %c0_16], %17 {strides = array<i32>} : memref<8x1xf32, #tpu.memory_space<vmem>>, vector<8x1xf32>,
    } else {
    }
    %c0 = arith.constant 0 : index
    %c0_1 = arith.constant 0 : index
    %3 = vector.load %arg1[%c0, %c0_1] : memref<8x512xf32, #tpu.memory_space<vmem>>, vector<8x512xf32>
    %c0_2 = arith.constant 0 : index
    %c0_3 = arith.constant 0 : index
    %4 = vector.load %arg2[%c0_2, %c0_3] : memref<8x1xf32, #tpu.memory_space<vmem>>, vector<8x1xf32>
    %cst = arith.constant dense<0.000000e+00> : vector<8xf32>
    %5 = vector.multi_reduction <add>, %3, %cst [1] : vector<8x512xf32> to vector<8xf32>
    %6 = vector.shape_cast %5 : vector<8xf32> to vector<8x1xf32>
    %7 = arith.addf %4, %6 : vector<8x1xf32>
    %c0_4 = arith.constant 0 : index
    %c0_5 = arith.constant 0 : index
    %8 = vector.load %arg2[%c0_4, %c0_5] : memref<8x1xf32, #tpu.memory_space<vmem>>, vector<8x1xf32>
    tpu.vector_store %arg2[%c0_4, %c0_5], %7 {strides = array<i32>} : memref<8x1xf32, #tpu.memory_space<vmem>>, vector<8x1xf32>,
    %c0_6 = arith.constant 0 : index
    %c0_7 = arith.constant 0 : index
    %9 = vector.load %arg3[%c0_6, %c0_7] : memref<8x1xf32, #tpu.memory_space<vmem>>, vector<8x1xf32>
    %10 = arith.mulf %3, %3 : vector<8x512xf32>
    %cst_8 = arith.constant dense<0.000000e+00> : vector<8xf32>
    %11 = vector.multi_reduction <add>, %10, %cst_8 [1] : vector<8x512xf32> to vector<8xf32>
    %12 = vector.shape_cast %11 : vector<8xf32> to vector<8x1xf32>
    %13 = arith.addf %9, %12 : vector<8x1xf32>
    %c0_9 = arith.constant 0 : index
    %c0_10 = arith.constant 0 : index
    %14 = vector.load %arg3[%c0_9, %c0_10] : memref<8x1xf32, #tpu.memory_space<vmem>>, vector<8x1xf32>
    tpu.vector_store %arg3[%c0_9, %c0_10], %13 {strides = array<i32>} : memref<8x1xf32, #tpu.memory_space<vmem>>, vector<8x1xf32>,
    return
  }
  func.func @transform_0(%arg0: i32) -> (i32, i32) {
    %c0_i32 = arith.constant 0 : i32
    %c0_i32_0 = arith.constant 0 : i32
    return %c0_i32, %arg0 : i32, i32
  }
  func.func @transform_1(%arg0: i32) -> (i32, i32) {
    %c0_i32 = arith.constant 0 : i32
    %c0_i32_0 = arith.constant 0 : i32
    %c0_i32_1 = arith.constant 0 : i32
    return %c0_i32, %c0_i32_0 : i32, i32
  }
  func.func @transform_2(%arg0: i32) -> (i32, i32) {
    %c0_i32 = arith.constant 0 : i32
    %c0_i32_0 = arith.constant 0 : i32
    %c0_i32_1 = arith.constant 0 : i32
    return %c0_i32, %c0_i32_0 : i32, i32
  }
}

module attributes {stable_mosaic.version = 11 : i64} {
  func.func @_bn_apply_kernel(%arg0: i32, %arg1: memref<8x512xf32, #tpu.memory_space<vmem>>, %arg2: memref<8x1xf32, #tpu.memory_space<vmem>>, %arg3: memref<8x1xf32, #tpu.memory_space<vmem>>, %arg4: memref<8x512xf32, #tpu.memory_space<vmem>>) attributes {dimension_semantics = [#tpu.dimension_semantics<parallel>], iteration_bounds = array<i64: 1>, scalar_prefetch = 0 : i64, scratch_operands = 0 : i64, tpu.core_type = #tpu.core_type<tc>, window_params = [{transform_indices = @transform_0, window_bounds = array<i64: 8, 512>}, {pipeline_mode = #tpu.pipeline_mode<synchronous>, transform_indices = @transform_1, window_bounds = array<i64: 8, 1>}, {pipeline_mode = #tpu.pipeline_mode<synchronous>, transform_indices = @transform_2, window_bounds = array<i64: 8, 1>}, {transform_indices = @transform_3, window_bounds = array<i64: 8, 512>}]} {
    %c0 = arith.constant 0 : index
    %c0_0 = arith.constant 0 : index
    %0 = vector.load %arg1[%c0, %c0_0] : memref<8x512xf32, #tpu.memory_space<vmem>>, vector<8x512xf32>
    %c0_1 = arith.constant 0 : index
    %c0_2 = arith.constant 0 : index
    %1 = vector.load %arg2[%c0_1, %c0_2] : memref<8x1xf32, #tpu.memory_space<vmem>>, vector<8x1xf32>
    %2 = vector.broadcast %1 : vector<8x1xf32> to vector<8x512xf32>
    %3 = arith.subf %0, %2 : vector<8x512xf32>
    %c0_3 = arith.constant 0 : index
    %c0_4 = arith.constant 0 : index
    %4 = vector.load %arg3[%c0_3, %c0_4] : memref<8x1xf32, #tpu.memory_space<vmem>>, vector<8x1xf32>
    %5 = vector.broadcast %4 : vector<8x1xf32> to vector<8x512xf32>
    %6 = arith.mulf %3, %5 : vector<8x512xf32>
    %c0_5 = arith.constant 0 : index
    %c0_6 = arith.constant 0 : index
    %7 = vector.load %arg4[%c0_5, %c0_6] : memref<8x512xf32, #tpu.memory_space<vmem>>, vector<8x512xf32>
    tpu.vector_store %arg4[%c0_5, %c0_6], %6 {strides = array<i32>} : memref<8x512xf32, #tpu.memory_space<vmem>>, vector<8x512xf32>,
    return
  }
  func.func @transform_0(%arg0: i32) -> (i32, i32) {
    %c0_i32 = arith.constant 0 : i32
    %c0_i32_0 = arith.constant 0 : i32
    return %c0_i32, %arg0 : i32, i32
  }
  func.func @transform_1(%arg0: i32) -> (i32, i32) {
    %c0_i32 = arith.constant 0 : i32
    %c0_i32_0 = arith.constant 0 : i32
    %c0_i32_1 = arith.constant 0 : i32
    return %c0_i32, %c0_i32_0 : i32, i32
  }
  func.func @transform_2(%arg0: i32) -> (i32, i32) {
    %c0_i32 = arith.constant 0 : i32
    %c0_i32_0 = arith.constant 0 : i32
    %c0_i32_1 = arith.constant 0 : i32
    return %c0_i32, %c0_i32_0 : i32, i32
  }
  func.func @transform_3(%arg0: i32) -> (i32, i32) {
    %c0_i32 = arith.constant 0 : i32
    %c0_i32_0 = arith.constant 0 : i32
    return %c0_i32, %arg0 : i32, i32
  }
}

module attributes {stable_mosaic.version = 11 : i64} {
  func.func @_maxpool_kernel(%arg0: i32, %arg1: i32, %arg2: memref<9x16x128xf32, #tpu.memory_space<vmem>>, %arg3: memref<16x128xf32, #tpu.memory_space<vmem>>) attributes {dimension_semantics = [#tpu.dimension_semantics<parallel>, #tpu.dimension_semantics<parallel>], iteration_bounds = array<i64: 1, 1>, scalar_prefetch = 0 : i64, scratch_operands = 0 : i64, tpu.core_type = #tpu.core_type<tc>, window_params = [{transform_indices = @transform_0, window_bounds = array<i64: 9, 16, 128>}, {transform_indices = @transform_1, window_bounds = array<i64: 16, 128>}]} {
    %c0 = arith.constant 0 : index
    %c0_0 = arith.constant 0 : index
    %c0_1 = arith.constant 0 : index
    %0 = vector.load %arg2[%c0, %c0_0, %c0_1] : memref<9x16x128xf32, #tpu.memory_space<vmem>>, vector<9x16x128xf32>
    %1 = vector.extract_strided_slice %0 {offsets = [0, 0, 0], sizes = [1, 16, 128], strides = [1, 1, 1]} : vector<9x16x128xf32> to vector<1x16x128xf32>
    %2 = vector.shape_cast %1 : vector<1x16x128xf32> to vector<16x128xf32>
    %3 = vector.extract_strided_slice %0 {offsets = [1, 0, 0], sizes = [1, 16, 128], strides = [1, 1, 1]} : vector<9x16x128xf32> to vector<1x16x128xf32>
    %4 = vector.shape_cast %3 : vector<1x16x128xf32> to vector<16x128xf32>
    %5 = arith.maximumf %2, %4 : vector<16x128xf32>
    %6 = vector.extract_strided_slice %0 {offsets = [2, 0, 0], sizes = [1, 16, 128], strides = [1, 1, 1]} : vector<9x16x128xf32> to vector<1x16x128xf32>
    %7 = vector.shape_cast %6 : vector<1x16x128xf32> to vector<16x128xf32>
    %8 = arith.maximumf %5, %7 : vector<16x128xf32>
    %9 = vector.extract_strided_slice %0 {offsets = [3, 0, 0], sizes = [1, 16, 128], strides = [1, 1, 1]} : vector<9x16x128xf32> to vector<1x16x128xf32>
    %10 = vector.shape_cast %9 : vector<1x16x128xf32> to vector<16x128xf32>
    %11 = arith.maximumf %8, %10 : vector<16x128xf32>
    %12 = vector.extract_strided_slice %0 {offsets = [4, 0, 0], sizes = [1, 16, 128], strides = [1, 1, 1]} : vector<9x16x128xf32> to vector<1x16x128xf32>
    %13 = vector.shape_cast %12 : vector<1x16x128xf32> to vector<16x128xf32>
    %14 = arith.maximumf %11, %13 : vector<16x128xf32>
    %15 = vector.extract_strided_slice %0 {offsets = [5, 0, 0], sizes = [1, 16, 128], strides = [1, 1, 1]} : vector<9x16x128xf32> to vector<1x16x128xf32>
    %16 = vector.shape_cast %15 : vector<1x16x128xf32> to vector<16x128xf32>
    %17 = arith.maximumf %14, %16 : vector<16x128xf32>
    %18 = vector.extract_strided_slice %0 {offsets = [6, 0, 0], sizes = [1, 16, 128], strides = [1, 1, 1]} : vector<9x16x128xf32> to vector<1x16x128xf32>
    %19 = vector.shape_cast %18 : vector<1x16x128xf32> to vector<16x128xf32>
    %20 = arith.maximumf %17, %19 : vector<16x128xf32>
    %21 = vector.extract_strided_slice %0 {offsets = [7, 0, 0], sizes = [1, 16, 128], strides = [1, 1, 1]} : vector<9x16x128xf32> to vector<1x16x128xf32>
    %22 = vector.shape_cast %21 : vector<1x16x128xf32> to vector<16x128xf32>
    %23 = arith.maximumf %20, %22 : vector<16x128xf32>
    %24 = vector.extract_strided_slice %0 {offsets = [8, 0, 0], sizes = [1, 16, 128], strides = [1, 1, 1]} : vector<9x16x128xf32> to vector<1x16x128xf32>
    %25 = vector.shape_cast %24 : vector<1x16x128xf32> to vector<16x128xf32>
    %26 = arith.maximumf %23, %25 : vector<16x128xf32>
    %c0_2 = arith.constant 0 : index
    %c0_3 = arith.constant 0 : index
    %27 = vector.load %arg3[%c0_2, %c0_3] : memref<16x128xf32, #tpu.memory_space<vmem>>, vector<16x128xf32>
    tpu.vector_store %arg3[%c0_2, %c0_3], %26 {strides = array<i32>} : memref<16x128xf32, #tpu.memory_space<vmem>>, vector<16x128xf32>,
    return
  }
  func.func @transform_0(%arg0: i32, %arg1: i32) -> (i32, i32, i32) {
    %c0_i32 = arith.constant 0 : i32
    %c0_i32_0 = arith.constant 0 : i32
    return %c0_i32, %arg0, %arg1 : i32, i32, i32
  }
  func.func @transform_1(%arg0: i32, %arg1: i32) -> (i32, i32) {
    %c0_i32 = arith.constant 0 : i32
    return %arg0, %arg1 : i32, i32
  }
}

module attributes {stable_mosaic.version = 11 : i64} {
  func.func @_bn_stats_kernel(%arg0: i32, %arg1: memref<8x128xf32, #tpu.memory_space<vmem>>, %arg2: memref<8x1xf32, #tpu.memory_space<vmem>>, %arg3: memref<8x1xf32, #tpu.memory_space<vmem>>) attributes {dimension_semantics = [#tpu.dimension_semantics<arbitrary>], iteration_bounds = array<i64: 1>, scalar_prefetch = 0 : i64, scratch_operands = 0 : i64, tpu.core_type = #tpu.core_type<tc>, window_params = [{transform_indices = @transform_0, window_bounds = array<i64: 8, 128>}, {pipeline_mode = #tpu.pipeline_mode<synchronous>, transform_indices = @transform_1, window_bounds = array<i64: 8, 1>}, {pipeline_mode = #tpu.pipeline_mode<synchronous>, transform_indices = @transform_2, window_bounds = array<i64: 8, 1>}]} {
    %c0_i32 = arith.constant 0 : i32
    %0 = arith.cmpi eq, %arg0, %c0_i32 : i32
    %1 = arith.extui %0 : i1 to i32
    %c0_i32_0 = arith.constant 0 : i32
    %2 = arith.cmpi ne, %1, %c0_i32_0 : i32
    scf.if %2 {
      %cst_11 = arith.constant 0.000000e+00 : f32
      %15 = vector.broadcast %cst_11 : f32 to vector<8x1xf32>
      %c0_12 = arith.constant 0 : index
      %c0_13 = arith.constant 0 : index
      %16 = vector.load %arg2[%c0_12, %c0_13] : memref<8x1xf32, #tpu.memory_space<vmem>>, vector<8x1xf32>
      tpu.vector_store %arg2[%c0_12, %c0_13], %15 {strides = array<i32>} : memref<8x1xf32, #tpu.memory_space<vmem>>, vector<8x1xf32>,
      %cst_14 = arith.constant 0.000000e+00 : f32
      %17 = vector.broadcast %cst_14 : f32 to vector<8x1xf32>
      %c0_15 = arith.constant 0 : index
      %c0_16 = arith.constant 0 : index
      %18 = vector.load %arg3[%c0_15, %c0_16] : memref<8x1xf32, #tpu.memory_space<vmem>>, vector<8x1xf32>
      tpu.vector_store %arg3[%c0_15, %c0_16], %17 {strides = array<i32>} : memref<8x1xf32, #tpu.memory_space<vmem>>, vector<8x1xf32>,
    } else {
    }
    %c0 = arith.constant 0 : index
    %c0_1 = arith.constant 0 : index
    %3 = vector.load %arg1[%c0, %c0_1] : memref<8x128xf32, #tpu.memory_space<vmem>>, vector<8x128xf32>
    %c0_2 = arith.constant 0 : index
    %c0_3 = arith.constant 0 : index
    %4 = vector.load %arg2[%c0_2, %c0_3] : memref<8x1xf32, #tpu.memory_space<vmem>>, vector<8x1xf32>
    %cst = arith.constant dense<0.000000e+00> : vector<8xf32>
    %5 = vector.multi_reduction <add>, %3, %cst [1] : vector<8x128xf32> to vector<8xf32>
    %6 = vector.shape_cast %5 : vector<8xf32> to vector<8x1xf32>
    %7 = arith.addf %4, %6 : vector<8x1xf32>
    %c0_4 = arith.constant 0 : index
    %c0_5 = arith.constant 0 : index
    %8 = vector.load %arg2[%c0_4, %c0_5] : memref<8x1xf32, #tpu.memory_space<vmem>>, vector<8x1xf32>
    tpu.vector_store %arg2[%c0_4, %c0_5], %7 {strides = array<i32>} : memref<8x1xf32, #tpu.memory_space<vmem>>, vector<8x1xf32>,
    %c0_6 = arith.constant 0 : index
    %c0_7 = arith.constant 0 : index
    %9 = vector.load %arg3[%c0_6, %c0_7] : memref<8x1xf32, #tpu.memory_space<vmem>>, vector<8x1xf32>
    %10 = arith.mulf %3, %3 : vector<8x128xf32>
    %cst_8 = arith.constant dense<0.000000e+00> : vector<8xf32>
    %11 = vector.multi_reduction <add>, %10, %cst_8 [1] : vector<8x128xf32> to vector<8xf32>
    %12 = vector.shape_cast %11 : vector<8xf32> to vector<8x1xf32>
    %13 = arith.addf %9, %12 : vector<8x1xf32>
    %c0_9 = arith.constant 0 : index
    %c0_10 = arith.constant 0 : index
    %14 = vector.load %arg3[%c0_9, %c0_10] : memref<8x1xf32, #tpu.memory_space<vmem>>, vector<8x1xf32>
    tpu.vector_store %arg3[%c0_9, %c0_10], %13 {strides = array<i32>} : memref<8x1xf32, #tpu.memory_space<vmem>>, vector<8x1xf32>,
    return
  }
  func.func @transform_0(%arg0: i32) -> (i32, i32) {
    %c0_i32 = arith.constant 0 : i32
    %c0_i32_0 = arith.constant 0 : i32
    return %c0_i32, %arg0 : i32, i32
  }
  func.func @transform_1(%arg0: i32) -> (i32, i32) {
    %c0_i32 = arith.constant 0 : i32
    %c0_i32_0 = arith.constant 0 : i32
    %c0_i32_1 = arith.constant 0 : i32
    return %c0_i32, %c0_i32_0 : i32, i32
  }
  func.func @transform_2(%arg0: i32) -> (i32, i32) {
    %c0_i32 = arith.constant 0 : i32
    %c0_i32_0 = arith.constant 0 : i32
    %c0_i32_1 = arith.constant 0 : i32
    return %c0_i32, %c0_i32_0 : i32, i32
  }
}

module attributes {stable_mosaic.version = 11 : i64} {
  func.func @_bn_apply_kernel(%arg0: i32, %arg1: memref<8x128xf32, #tpu.memory_space<vmem>>, %arg2: memref<8x1xf32, #tpu.memory_space<vmem>>, %arg3: memref<8x1xf32, #tpu.memory_space<vmem>>, %arg4: memref<8x128xf32, #tpu.memory_space<vmem>>) attributes {dimension_semantics = [#tpu.dimension_semantics<parallel>], iteration_bounds = array<i64: 1>, scalar_prefetch = 0 : i64, scratch_operands = 0 : i64, tpu.core_type = #tpu.core_type<tc>, window_params = [{transform_indices = @transform_0, window_bounds = array<i64: 8, 128>}, {pipeline_mode = #tpu.pipeline_mode<synchronous>, transform_indices = @transform_1, window_bounds = array<i64: 8, 1>}, {pipeline_mode = #tpu.pipeline_mode<synchronous>, transform_indices = @transform_2, window_bounds = array<i64: 8, 1>}, {transform_indices = @transform_3, window_bounds = array<i64: 8, 128>}]} {
    %c0 = arith.constant 0 : index
    %c0_0 = arith.constant 0 : index
    %0 = vector.load %arg1[%c0, %c0_0] : memref<8x128xf32, #tpu.memory_space<vmem>>, vector<8x128xf32>
    %c0_1 = arith.constant 0 : index
    %c0_2 = arith.constant 0 : index
    %1 = vector.load %arg2[%c0_1, %c0_2] : memref<8x1xf32, #tpu.memory_space<vmem>>, vector<8x1xf32>
    %2 = vector.broadcast %1 : vector<8x1xf32> to vector<8x128xf32>
    %3 = arith.subf %0, %2 : vector<8x128xf32>
    %c0_3 = arith.constant 0 : index
    %c0_4 = arith.constant 0 : index
    %4 = vector.load %arg3[%c0_3, %c0_4] : memref<8x1xf32, #tpu.memory_space<vmem>>, vector<8x1xf32>
    %5 = vector.broadcast %4 : vector<8x1xf32> to vector<8x128xf32>
    %6 = arith.mulf %3, %5 : vector<8x128xf32>
    %c0_5 = arith.constant 0 : index
    %c0_6 = arith.constant 0 : index
    %7 = vector.load %arg4[%c0_5, %c0_6] : memref<8x128xf32, #tpu.memory_space<vmem>>, vector<8x128xf32>
    tpu.vector_store %arg4[%c0_5, %c0_6], %6 {strides = array<i32>} : memref<8x128xf32, #tpu.memory_space<vmem>>, vector<8x128xf32>,
    return
  }
  func.func @transform_0(%arg0: i32) -> (i32, i32) {
    %c0_i32 = arith.constant 0 : i32
    %c0_i32_0 = arith.constant 0 : i32
    return %c0_i32, %arg0 : i32, i32
  }
  func.func @transform_1(%arg0: i32) -> (i32, i32) {
    %c0_i32 = arith.constant 0 : i32
    %c0_i32_0 = arith.constant 0 : i32
    %c0_i32_1 = arith.constant 0 : i32
    return %c0_i32, %c0_i32_0 : i32, i32
  }
  func.func @transform_2(%arg0: i32) -> (i32, i32) {
    %c0_i32 = arith.constant 0 : i32
    %c0_i32_0 = arith.constant 0 : i32
    %c0_i32_1 = arith.constant 0 : i32
    return %c0_i32, %c0_i32_0 : i32, i32
  }
  func.func @transform_3(%arg0: i32) -> (i32, i32) {
    %c0_i32 = arith.constant 0 : i32
    %c0_i32_0 = arith.constant 0 : i32
    return %c0_i32, %arg0 : i32, i32
  }
}

module attributes {stable_mosaic.version = 11 : i64} {
  func.func @_avgpool_kernel(%arg0: i32, %arg1: i32, %arg2: memref<9x16x128xf32, #tpu.memory_space<vmem>>, %arg3: memref<1x128xf32, #tpu.memory_space<vmem>>, %arg4: memref<16x128xf32, #tpu.memory_space<vmem>>) attributes {dimension_semantics = [#tpu.dimension_semantics<parallel>, #tpu.dimension_semantics<parallel>], iteration_bounds = array<i64: 1, 1>, scalar_prefetch = 0 : i64, scratch_operands = 0 : i64, tpu.core_type = #tpu.core_type<tc>, window_params = [{transform_indices = @transform_0, window_bounds = array<i64: 9, 16, 128>}, {transform_indices = @transform_1, window_bounds = array<i64: 1, 128>}, {transform_indices = @transform_2, window_bounds = array<i64: 16, 128>}]} {
    %c0 = arith.constant 0 : index
    %c0_0 = arith.constant 0 : index
    %c0_1 = arith.constant 0 : index
    %0 = vector.load %arg2[%c0, %c0_0, %c0_1] : memref<9x16x128xf32, #tpu.memory_space<vmem>>, vector<9x16x128xf32>
    %1 = vector.extract_strided_slice %0 {offsets = [0, 0, 0], sizes = [1, 16, 128], strides = [1, 1, 1]} : vector<9x16x128xf32> to vector<1x16x128xf32>
    %2 = vector.shape_cast %1 : vector<1x16x128xf32> to vector<16x128xf32>
    %3 = vector.extract_strided_slice %0 {offsets = [1, 0, 0], sizes = [1, 16, 128], strides = [1, 1, 1]} : vector<9x16x128xf32> to vector<1x16x128xf32>
    %4 = vector.shape_cast %3 : vector<1x16x128xf32> to vector<16x128xf32>
    %5 = arith.addf %2, %4 : vector<16x128xf32>
    %6 = vector.extract_strided_slice %0 {offsets = [2, 0, 0], sizes = [1, 16, 128], strides = [1, 1, 1]} : vector<9x16x128xf32> to vector<1x16x128xf32>
    %7 = vector.shape_cast %6 : vector<1x16x128xf32> to vector<16x128xf32>
    %8 = arith.addf %5, %7 : vector<16x128xf32>
    %9 = vector.extract_strided_slice %0 {offsets = [3, 0, 0], sizes = [1, 16, 128], strides = [1, 1, 1]} : vector<9x16x128xf32> to vector<1x16x128xf32>
    %10 = vector.shape_cast %9 : vector<1x16x128xf32> to vector<16x128xf32>
    %11 = arith.addf %8, %10 : vector<16x128xf32>
    %12 = vector.extract_strided_slice %0 {offsets = [4, 0, 0], sizes = [1, 16, 128], strides = [1, 1, 1]} : vector<9x16x128xf32> to vector<1x16x128xf32>
    %13 = vector.shape_cast %12 : vector<1x16x128xf32> to vector<16x128xf32>
    %14 = arith.addf %11, %13 : vector<16x128xf32>
    %15 = vector.extract_strided_slice %0 {offsets = [5, 0, 0], sizes = [1, 16, 128], strides = [1, 1, 1]} : vector<9x16x128xf32> to vector<1x16x128xf32>
    %16 = vector.shape_cast %15 : vector<1x16x128xf32> to vector<16x128xf32>
    %17 = arith.addf %14, %16 : vector<16x128xf32>
    %18 = vector.extract_strided_slice %0 {offsets = [6, 0, 0], sizes = [1, 16, 128], strides = [1, 1, 1]} : vector<9x16x128xf32> to vector<1x16x128xf32>
    %19 = vector.shape_cast %18 : vector<1x16x128xf32> to vector<16x128xf32>
    %20 = arith.addf %17, %19 : vector<16x128xf32>
    %21 = vector.extract_strided_slice %0 {offsets = [7, 0, 0], sizes = [1, 16, 128], strides = [1, 1, 1]} : vector<9x16x128xf32> to vector<1x16x128xf32>
    %22 = vector.shape_cast %21 : vector<1x16x128xf32> to vector<16x128xf32>
    %23 = arith.addf %20, %22 : vector<16x128xf32>
    %24 = vector.extract_strided_slice %0 {offsets = [8, 0, 0], sizes = [1, 16, 128], strides = [1, 1, 1]} : vector<9x16x128xf32> to vector<1x16x128xf32>
    %25 = vector.shape_cast %24 : vector<1x16x128xf32> to vector<16x128xf32>
    %26 = arith.addf %23, %25 : vector<16x128xf32>
    %c0_2 = arith.constant 0 : index
    %c0_3 = arith.constant 0 : index
    %27 = vector.load %arg3[%c0_2, %c0_3] : memref<1x128xf32, #tpu.memory_space<vmem>>, vector<1x128xf32>
    %28 = vector.broadcast %27 : vector<1x128xf32> to vector<16x128xf32>
    %29 = arith.mulf %26, %28 : vector<16x128xf32>
    %c0_4 = arith.constant 0 : index
    %c0_5 = arith.constant 0 : index
    %30 = vector.load %arg4[%c0_4, %c0_5] : memref<16x128xf32, #tpu.memory_space<vmem>>, vector<16x128xf32>
    tpu.vector_store %arg4[%c0_4, %c0_5], %29 {strides = array<i32>} : memref<16x128xf32, #tpu.memory_space<vmem>>, vector<16x128xf32>,
    return
  }
  func.func @transform_0(%arg0: i32, %arg1: i32) -> (i32, i32, i32) {
    %c0_i32 = arith.constant 0 : i32
    %c0_i32_0 = arith.constant 0 : i32
    return %c0_i32, %arg0, %arg1 : i32, i32, i32
  }
  func.func @transform_1(%arg0: i32, %arg1: i32) -> (i32, i32) {
    %c0_i32 = arith.constant 0 : i32
    %c0_i32_0 = arith.constant 0 : i32
    return %c0_i32, %arg1 : i32, i32
  }
  func.func @transform_2(%arg0: i32, %arg1: i32) -> (i32, i32) {
    %c0_i32 = arith.constant 0 : i32
    return %arg0, %arg1 : i32, i32
  }
}

module attributes {stable_mosaic.version = 11 : i64} {
  func.func @_matmul_kernel(%arg0: i32, %arg1: i32, %arg2: memref<128x8xbf16, #tpu.memory_space<vmem>>, %arg3: memref<8x128xbf16, #tpu.memory_space<vmem>>, %arg4: memref<128x128xf32, #tpu.memory_space<vmem>>) attributes {dimension_semantics = [#tpu.dimension_semantics<parallel>, #tpu.dimension_semantics<parallel>], iteration_bounds = array<i64: 1, 1>, scalar_prefetch = 0 : i64, scratch_operands = 0 : i64, tpu.core_type = #tpu.core_type<tc>, window_params = [{transform_indices = @transform_0, window_bounds = array<i64: 128, 8>}, {transform_indices = @transform_1, window_bounds = array<i64: 8, 128>}, {transform_indices = @transform_2, window_bounds = array<i64: 128, 128>}]} {
    %c0 = arith.constant 0 : index
    %c0_0 = arith.constant 0 : index
    %0 = vector.load %arg2[%c0, %c0_0] : memref<128x8xbf16, #tpu.memory_space<vmem>>, vector<128x8xbf16>
    %c0_1 = arith.constant 0 : index
    %c0_2 = arith.constant 0 : index
    %1 = vector.load %arg3[%c0_1, %c0_2] : memref<8x128xbf16, #tpu.memory_space<vmem>>, vector<8x128xbf16>
    %cst = arith.constant dense<0.000000e+00> : vector<128x128xf32>
    %2 = tpu.matmul %0, %1, %cst {dimension_numbers = #tpu.dot_dimension_numbers<[1], [0], [0], [1], [0, 0, 1, 1], [], []>} : vector<128x8xbf16>, vector<8x128xbf16>, vector<128x128xf32> -> vector<128x128xf32>
    %c0_3 = arith.constant 0 : index
    %c0_4 = arith.constant 0 : index
    %3 = vector.load %arg4[%c0_3, %c0_4] : memref<128x128xf32, #tpu.memory_space<vmem>>, vector<128x128xf32>
    tpu.vector_store %arg4[%c0_3, %c0_4], %2 {strides = array<i32>} : memref<128x128xf32, #tpu.memory_space<vmem>>, vector<128x128xf32>,
    return
  }
  func.func @transform_0(%arg0: i32, %arg1: i32) -> (i32, i32) {
    %c0_i32 = arith.constant 0 : i32
    %c0_i32_0 = arith.constant 0 : i32
    return %arg0, %c0_i32 : i32, i32
  }
  func.func @transform_1(%arg0: i32, %arg1: i32) -> (i32, i32) {
    %c0_i32 = arith.constant 0 : i32
    %c0_i32_0 = arith.constant 0 : i32
    return %c0_i32, %arg1 : i32, i32
  }
  func.func @transform_2(%arg0: i32, %arg1: i32) -> (i32, i32) {
    %c0_i32 = arith.constant 0 : i32
    return %arg0, %arg1 : i32, i32
  }
}

module attributes {stable_mosaic.version = 11 : i64} {
  func.func @_dw_kernel(%arg0: i32, %arg1: memref<9x8x128xf32, #tpu.memory_space<vmem>>, %arg2: memref<8x9xf32, #tpu.memory_space<vmem>>, %arg3: memref<8x128xf32, #tpu.memory_space<vmem>>) attributes {dimension_semantics = [#tpu.dimension_semantics<parallel>], iteration_bounds = array<i64: 1>, scalar_prefetch = 0 : i64, scratch_operands = 0 : i64, tpu.core_type = #tpu.core_type<tc>, window_params = [{transform_indices = @transform_0, window_bounds = array<i64: 9, 8, 128>}, {pipeline_mode = #tpu.pipeline_mode<synchronous>, transform_indices = @transform_1, window_bounds = array<i64: 8, 9>}, {transform_indices = @transform_2, window_bounds = array<i64: 8, 128>}]} {
    %c0 = arith.constant 0 : index
    %c0_0 = arith.constant 0 : index
    %c0_1 = arith.constant 0 : index
    %0 = vector.load %arg1[%c0, %c0_0, %c0_1] : memref<9x8x128xf32, #tpu.memory_space<vmem>>, vector<9x8x128xf32>
    %c0_2 = arith.constant 0 : index
    %c0_3 = arith.constant 0 : index
    %1 = vector.load %arg2[%c0_2, %c0_3] : memref<8x9xf32, #tpu.memory_space<vmem>>, vector<8x9xf32>
    %2 = vector.extract_strided_slice %0 {offsets = [0, 0, 0], sizes = [1, 8, 128], strides = [1, 1, 1]} : vector<9x8x128xf32> to vector<1x8x128xf32>
    %3 = vector.shape_cast %2 : vector<1x8x128xf32> to vector<8x128xf32>
    %4 = vector.extract_strided_slice %1 {offsets = [0, 0], sizes = [8, 1], strides = [1, 1]} : vector<8x9xf32> to vector<8x1xf32>
    %5 = vector.broadcast %4 : vector<8x1xf32> to vector<8x128xf32>
    %6 = arith.mulf %3, %5 : vector<8x128xf32>
    %7 = vector.extract_strided_slice %0 {offsets = [1, 0, 0], sizes = [1, 8, 128], strides = [1, 1, 1]} : vector<9x8x128xf32> to vector<1x8x128xf32>
    %8 = vector.shape_cast %7 : vector<1x8x128xf32> to vector<8x128xf32>
    %9 = vector.extract_strided_slice %1 {offsets = [0, 1], sizes = [8, 1], strides = [1, 1]} : vector<8x9xf32> to vector<8x1xf32>
    %10 = vector.broadcast %9 : vector<8x1xf32> to vector<8x128xf32>
    %11 = arith.mulf %8, %10 : vector<8x128xf32>
    %12 = arith.addf %6, %11 : vector<8x128xf32>
    %13 = vector.extract_strided_slice %0 {offsets = [2, 0, 0], sizes = [1, 8, 128], strides = [1, 1, 1]} : vector<9x8x128xf32> to vector<1x8x128xf32>
    %14 = vector.shape_cast %13 : vector<1x8x128xf32> to vector<8x128xf32>
    %15 = vector.extract_strided_slice %1 {offsets = [0, 2], sizes = [8, 1], strides = [1, 1]} : vector<8x9xf32> to vector<8x1xf32>
    %16 = vector.broadcast %15 : vector<8x1xf32> to vector<8x128xf32>
    %17 = arith.mulf %14, %16 : vector<8x128xf32>
    %18 = arith.addf %12, %17 : vector<8x128xf32>
    %19 = vector.extract_strided_slice %0 {offsets = [3, 0, 0], sizes = [1, 8, 128], strides = [1, 1, 1]} : vector<9x8x128xf32> to vector<1x8x128xf32>
    %20 = vector.shape_cast %19 : vector<1x8x128xf32> to vector<8x128xf32>
    %21 = vector.extract_strided_slice %1 {offsets = [0, 3], sizes = [8, 1], strides = [1, 1]} : vector<8x9xf32> to vector<8x1xf32>
    %22 = vector.broadcast %21 : vector<8x1xf32> to vector<8x128xf32>
    %23 = arith.mulf %20, %22 : vector<8x128xf32>
    %24 = arith.addf %18, %23 : vector<8x128xf32>
    %25 = vector.extract_strided_slice %0 {offsets = [4, 0, 0], sizes = [1, 8, 128], strides = [1, 1, 1]} : vector<9x8x128xf32> to vector<1x8x128xf32>
    %26 = vector.shape_cast %25 : vector<1x8x128xf32> to vector<8x128xf32>
    %27 = vector.extract_strided_slice %1 {offsets = [0, 4], sizes = [8, 1], strides = [1, 1]} : vector<8x9xf32> to vector<8x1xf32>
    %28 = vector.broadcast %27 : vector<8x1xf32> to vector<8x128xf32>
    %29 = arith.mulf %26, %28 : vector<8x128xf32>
    %30 = arith.addf %24, %29 : vector<8x128xf32>
    %31 = vector.extract_strided_slice %0 {offsets = [5, 0, 0], sizes = [1, 8, 128], strides = [1, 1, 1]} : vector<9x8x128xf32> to vector<1x8x128xf32>
    %32 = vector.shape_cast %31 : vector<1x8x128xf32> to vector<8x128xf32>
    %33 = vector.extract_strided_slice %1 {offsets = [0, 5], sizes = [8, 1], strides = [1, 1]} : vector<8x9xf32> to vector<8x1xf32>
    %34 = vector.broadcast %33 : vector<8x1xf32> to vector<8x128xf32>
    %35 = arith.mulf %32, %34 : vector<8x128xf32>
    %36 = arith.addf %30, %35 : vector<8x128xf32>
    %37 = vector.extract_strided_slice %0 {offsets = [6, 0, 0], sizes = [1, 8, 128], strides = [1, 1, 1]} : vector<9x8x128xf32> to vector<1x8x128xf32>
    %38 = vector.shape_cast %37 : vector<1x8x128xf32> to vector<8x128xf32>
    %39 = vector.extract_strided_slice %1 {offsets = [0, 6], sizes = [8, 1], strides = [1, 1]} : vector<8x9xf32> to vector<8x1xf32>
    %40 = vector.broadcast %39 : vector<8x1xf32> to vector<8x128xf32>
    %41 = arith.mulf %38, %40 : vector<8x128xf32>
    %42 = arith.addf %36, %41 : vector<8x128xf32>
    %43 = vector.extract_strided_slice %0 {offsets = [7, 0, 0], sizes = [1, 8, 128], strides = [1, 1, 1]} : vector<9x8x128xf32> to vector<1x8x128xf32>
    %44 = vector.shape_cast %43 : vector<1x8x128xf32> to vector<8x128xf32>
    %45 = vector.extract_strided_slice %1 {offsets = [0, 7], sizes = [8, 1], strides = [1, 1]} : vector<8x9xf32> to vector<8x1xf32>
    %46 = vector.broadcast %45 : vector<8x1xf32> to vector<8x128xf32>
    %47 = arith.mulf %44, %46 : vector<8x128xf32>
    %48 = arith.addf %42, %47 : vector<8x128xf32>
    %49 = vector.extract_strided_slice %0 {offsets = [8, 0, 0], sizes = [1, 8, 128], strides = [1, 1, 1]} : vector<9x8x128xf32> to vector<1x8x128xf32>
    %50 = vector.shape_cast %49 : vector<1x8x128xf32> to vector<8x128xf32>
    %51 = vector.extract_strided_slice %1 {offsets = [0, 8], sizes = [8, 1], strides = [1, 1]} : vector<8x9xf32> to vector<8x1xf32>
    %52 = vector.broadcast %51 : vector<8x1xf32> to vector<8x128xf32>
    %53 = arith.mulf %50, %52 : vector<8x128xf32>
    %54 = arith.addf %48, %53 : vector<8x128xf32>
    %c0_4 = arith.constant 0 : index
    %c0_5 = arith.constant 0 : index
    %55 = vector.load %arg3[%c0_4, %c0_5] : memref<8x128xf32, #tpu.memory_space<vmem>>, vector<8x128xf32>
    tpu.vector_store %arg3[%c0_4, %c0_5], %54 {strides = array<i32>} : memref<8x128xf32, #tpu.memory_space<vmem>>, vector<8x128xf32>,
    return
  }
  func.func @transform_0(%arg0: i32) -> (i32, i32, i32) {
    %c0_i32 = arith.constant 0 : i32
    %c0_i32_0 = arith.constant 0 : i32
    %c0_i32_1 = arith.constant 0 : i32
    return %c0_i32, %c0_i32_0, %arg0 : i32, i32, i32
  }
  func.func @transform_1(%arg0: i32) -> (i32, i32) {
    %c0_i32 = arith.constant 0 : i32
    %c0_i32_0 = arith.constant 0 : i32
    %c0_i32_1 = arith.constant 0 : i32
    return %c0_i32, %c0_i32_0 : i32, i32
  }
  func.func @transform_2(%arg0: i32) -> (i32, i32) {
    %c0_i32 = arith.constant 0 : i32
    %c0_i32_0 = arith.constant 0 : i32
    return %c0_i32, %arg0 : i32, i32
  }
}

module attributes {stable_mosaic.version = 11 : i64} {
  func.func @_dw_kernel(%arg0: i32, %arg1: memref<25x8x128xf32, #tpu.memory_space<vmem>>, %arg2: memref<8x25xf32, #tpu.memory_space<vmem>>, %arg3: memref<8x128xf32, #tpu.memory_space<vmem>>) attributes {dimension_semantics = [#tpu.dimension_semantics<parallel>], iteration_bounds = array<i64: 1>, scalar_prefetch = 0 : i64, scratch_operands = 0 : i64, tpu.core_type = #tpu.core_type<tc>, window_params = [{transform_indices = @transform_0, window_bounds = array<i64: 25, 8, 128>}, {pipeline_mode = #tpu.pipeline_mode<synchronous>, transform_indices = @transform_1, window_bounds = array<i64: 8, 25>}, {transform_indices = @transform_2, window_bounds = array<i64: 8, 128>}]} {
    %c0 = arith.constant 0 : index
    %c0_0 = arith.constant 0 : index
    %c0_1 = arith.constant 0 : index
    %0 = vector.load %arg1[%c0, %c0_0, %c0_1] : memref<25x8x128xf32, #tpu.memory_space<vmem>>, vector<25x8x128xf32>
    %c0_2 = arith.constant 0 : index
    %c0_3 = arith.constant 0 : index
    %1 = vector.load %arg2[%c0_2, %c0_3] : memref<8x25xf32, #tpu.memory_space<vmem>>, vector<8x25xf32>
    %2 = vector.extract_strided_slice %0 {offsets = [0, 0, 0], sizes = [1, 8, 128], strides = [1, 1, 1]} : vector<25x8x128xf32> to vector<1x8x128xf32>
    %3 = vector.shape_cast %2 : vector<1x8x128xf32> to vector<8x128xf32>
    %4 = vector.extract_strided_slice %1 {offsets = [0, 0], sizes = [8, 1], strides = [1, 1]} : vector<8x25xf32> to vector<8x1xf32>
    %5 = vector.broadcast %4 : vector<8x1xf32> to vector<8x128xf32>
    %6 = arith.mulf %3, %5 : vector<8x128xf32>
    %7 = vector.extract_strided_slice %0 {offsets = [1, 0, 0], sizes = [1, 8, 128], strides = [1, 1, 1]} : vector<25x8x128xf32> to vector<1x8x128xf32>
    %8 = vector.shape_cast %7 : vector<1x8x128xf32> to vector<8x128xf32>
    %9 = vector.extract_strided_slice %1 {offsets = [0, 1], sizes = [8, 1], strides = [1, 1]} : vector<8x25xf32> to vector<8x1xf32>
    %10 = vector.broadcast %9 : vector<8x1xf32> to vector<8x128xf32>
    %11 = arith.mulf %8, %10 : vector<8x128xf32>
    %12 = arith.addf %6, %11 : vector<8x128xf32>
    %13 = vector.extract_strided_slice %0 {offsets = [2, 0, 0], sizes = [1, 8, 128], strides = [1, 1, 1]} : vector<25x8x128xf32> to vector<1x8x128xf32>
    %14 = vector.shape_cast %13 : vector<1x8x128xf32> to vector<8x128xf32>
    %15 = vector.extract_strided_slice %1 {offsets = [0, 2], sizes = [8, 1], strides = [1, 1]} : vector<8x25xf32> to vector<8x1xf32>
    %16 = vector.broadcast %15 : vector<8x1xf32> to vector<8x128xf32>
    %17 = arith.mulf %14, %16 : vector<8x128xf32>
    %18 = arith.addf %12, %17 : vector<8x128xf32>
    %19 = vector.extract_strided_slice %0 {offsets = [3, 0, 0], sizes = [1, 8, 128], strides = [1, 1, 1]} : vector<25x8x128xf32> to vector<1x8x128xf32>
    %20 = vector.shape_cast %19 : vector<1x8x128xf32> to vector<8x128xf32>
    %21 = vector.extract_strided_slice %1 {offsets = [0, 3], sizes = [8, 1], strides = [1, 1]} : vector<8x25xf32> to vector<8x1xf32>
    %22 = vector.broadcast %21 : vector<8x1xf32> to vector<8x128xf32>
    %23 = arith.mulf %20, %22 : vector<8x128xf32>
    %24 = arith.addf %18, %23 : vector<8x128xf32>
    %25 = vector.extract_strided_slice %0 {offsets = [4, 0, 0], sizes = [1, 8, 128], strides = [1, 1, 1]} : vector<25x8x128xf32> to vector<1x8x128xf32>
    %26 = vector.shape_cast %25 : vector<1x8x128xf32> to vector<8x128xf32>
    %27 = vector.extract_strided_slice %1 {offsets = [0, 4], sizes = [8, 1], strides = [1, 1]} : vector<8x25xf32> to vector<8x1xf32>
    %28 = vector.broadcast %27 : vector<8x1xf32> to vector<8x128xf32>
    %29 = arith.mulf %26, %28 : vector<8x128xf32>
    %30 = arith.addf %24, %29 : vector<8x128xf32>
    %31 = vector.extract_strided_slice %0 {offsets = [5, 0, 0], sizes = [1, 8, 128], strides = [1, 1, 1]} : vector<25x8x128xf32> to vector<1x8x128xf32>
    %32 = vector.shape_cast %31 : vector<1x8x128xf32> to vector<8x128xf32>
    %33 = vector.extract_strided_slice %1 {offsets = [0, 5], sizes = [8, 1], strides = [1, 1]} : vector<8x25xf32> to vector<8x1xf32>
    %34 = vector.broadcast %33 : vector<8x1xf32> to vector<8x128xf32>
    %35 = arith.mulf %32, %34 : vector<8x128xf32>
    %36 = arith.addf %30, %35 : vector<8x128xf32>
    %37 = vector.extract_strided_slice %0 {offsets = [6, 0, 0], sizes = [1, 8, 128], strides = [1, 1, 1]} : vector<25x8x128xf32> to vector<1x8x128xf32>
    %38 = vector.shape_cast %37 : vector<1x8x128xf32> to vector<8x128xf32>
    %39 = vector.extract_strided_slice %1 {offsets = [0, 6], sizes = [8, 1], strides = [1, 1]} : vector<8x25xf32> to vector<8x1xf32>
    %40 = vector.broadcast %39 : vector<8x1xf32> to vector<8x128xf32>
    %41 = arith.mulf %38, %40 : vector<8x128xf32>
    %42 = arith.addf %36, %41 : vector<8x128xf32>
    %43 = vector.extract_strided_slice %0 {offsets = [7, 0, 0], sizes = [1, 8, 128], strides = [1, 1, 1]} : vector<25x8x128xf32> to vector<1x8x128xf32>
    %44 = vector.shape_cast %43 : vector<1x8x128xf32> to vector<8x128xf32>
    %45 = vector.extract_strided_slice %1 {offsets = [0, 7], sizes = [8, 1], strides = [1, 1]} : vector<8x25xf32> to vector<8x1xf32>
    %46 = vector.broadcast %45 : vector<8x1xf32> to vector<8x128xf32>
    %47 = arith.mulf %44, %46 : vector<8x128xf32>
    %48 = arith.addf %42, %47 : vector<8x128xf32>
    %49 = vector.extract_strided_slice %0 {offsets = [8, 0, 0], sizes = [1, 8, 128], strides = [1, 1, 1]} : vector<25x8x128xf32> to vector<1x8x128xf32>
    %50 = vector.shape_cast %49 : vector<1x8x128xf32> to vector<8x128xf32>
    %51 = vector.extract_strided_slice %1 {offsets = [0, 8], sizes = [8, 1], strides = [1, 1]} : vector<8x25xf32> to vector<8x1xf32>
    %52 = vector.broadcast %51 : vector<8x1xf32> to vector<8x128xf32>
    %53 = arith.mulf %50, %52 : vector<8x128xf32>
    %54 = arith.addf %48, %53 : vector<8x128xf32>
    %55 = vector.extract_strided_slice %0 {offsets = [9, 0, 0], sizes = [1, 8, 128], strides = [1, 1, 1]} : vector<25x8x128xf32> to vector<1x8x128xf32>
    %56 = vector.shape_cast %55 : vector<1x8x128xf32> to vector<8x128xf32>
    %57 = vector.extract_strided_slice %1 {offsets = [0, 9], sizes = [8, 1], strides = [1, 1]} : vector<8x25xf32> to vector<8x1xf32>
    %58 = vector.broadcast %57 : vector<8x1xf32> to vector<8x128xf32>
    %59 = arith.mulf %56, %58 : vector<8x128xf32>
    %60 = arith.addf %54, %59 : vector<8x128xf32>
    %61 = vector.extract_strided_slice %0 {offsets = [10, 0, 0], sizes = [1, 8, 128], strides = [1, 1, 1]} : vector<25x8x128xf32> to vector<1x8x128xf32>
    %62 = vector.shape_cast %61 : vector<1x8x128xf32> to vector<8x128xf32>
    %63 = vector.extract_strided_slice %1 {offsets = [0, 10], sizes = [8, 1], strides = [1, 1]} : vector<8x25xf32> to vector<8x1xf32>
    %64 = vector.broadcast %63 : vector<8x1xf32> to vector<8x128xf32>
    %65 = arith.mulf %62, %64 : vector<8x128xf32>
    %66 = arith.addf %60, %65 : vector<8x128xf32>
    %67 = vector.extract_strided_slice %0 {offsets = [11, 0, 0], sizes = [1, 8, 128], strides = [1, 1, 1]} : vector<25x8x128xf32> to vector<1x8x128xf32>
    %68 = vector.shape_cast %67 : vector<1x8x128xf32> to vector<8x128xf32>
    %69 = vector.extract_strided_slice %1 {offsets = [0, 11], sizes = [8, 1], strides = [1, 1]} : vector<8x25xf32> to vector<8x1xf32>
    %70 = vector.broadcast %69 : vector<8x1xf32> to vector<8x128xf32>
    %71 = arith.mulf %68, %70 : vector<8x128xf32>
    %72 = arith.addf %66, %71 : vector<8x128xf32>
    %73 = vector.extract_strided_slice %0 {offsets = [12, 0, 0], sizes = [1, 8, 128], strides = [1, 1, 1]} : vector<25x8x128xf32> to vector<1x8x128xf32>
    %74 = vector.shape_cast %73 : vector<1x8x128xf32> to vector<8x128xf32>
    %75 = vector.extract_strided_slice %1 {offsets = [0, 12], sizes = [8, 1], strides = [1, 1]} : vector<8x25xf32> to vector<8x1xf32>
    %76 = vector.broadcast %75 : vector<8x1xf32> to vector<8x128xf32>
    %77 = arith.mulf %74, %76 : vector<8x128xf32>
    %78 = arith.addf %72, %77 : vector<8x128xf32>
    %79 = vector.extract_strided_slice %0 {offsets = [13, 0, 0], sizes = [1, 8, 128], strides = [1, 1, 1]} : vector<25x8x128xf32> to vector<1x8x128xf32>
    %80 = vector.shape_cast %79 : vector<1x8x128xf32> to vector<8x128xf32>
    %81 = vector.extract_strided_slice %1 {offsets = [0, 13], sizes = [8, 1], strides = [1, 1]} : vector<8x25xf32> to vector<8x1xf32>
    %82 = vector.broadcast %81 : vector<8x1xf32> to vector<8x128xf32>
    %83 = arith.mulf %80, %82 : vector<8x128xf32>
    %84 = arith.addf %78, %83 : vector<8x128xf32>
    %85 = vector.extract_strided_slice %0 {offsets = [14, 0, 0], sizes = [1, 8, 128], strides = [1, 1, 1]} : vector<25x8x128xf32> to vector<1x8x128xf32>
    %86 = vector.shape_cast %85 : vector<1x8x128xf32> to vector<8x128xf32>
    %87 = vector.extract_strided_slice %1 {offsets = [0, 14], sizes = [8, 1], strides = [1, 1]} : vector<8x25xf32> to vector<8x1xf32>
    %88 = vector.broadcast %87 : vector<8x1xf32> to vector<8x128xf32>
    %89 = arith.mulf %86, %88 : vector<8x128xf32>
    %90 = arith.addf %84, %89 : vector<8x128xf32>
    %91 = vector.extract_strided_slice %0 {offsets = [15, 0, 0], sizes = [1, 8, 128], strides = [1, 1, 1]} : vector<25x8x128xf32> to vector<1x8x128xf32>
    %92 = vector.shape_cast %91 : vector<1x8x128xf32> to vector<8x128xf32>
    %93 = vector.extract_strided_slice %1 {offsets = [0, 15], sizes = [8, 1], strides = [1, 1]} : vector<8x25xf32> to vector<8x1xf32>
    %94 = vector.broadcast %93 : vector<8x1xf32> to vector<8x128xf32>
    %95 = arith.mulf %92, %94 : vector<8x128xf32>
    %96 = arith.addf %90, %95 : vector<8x128xf32>
    %97 = vector.extract_strided_slice %0 {offsets = [16, 0, 0], sizes = [1, 8, 128], strides = [1, 1, 1]} : vector<25x8x128xf32> to vector<1x8x128xf32>
    %98 = vector.shape_cast %97 : vector<1x8x128xf32> to vector<8x128xf32>
    %99 = vector.extract_strided_slice %1 {offsets = [0, 16], sizes = [8, 1], strides = [1, 1]} : vector<8x25xf32> to vector<8x1xf32>
    %100 = vector.broadcast %99 : vector<8x1xf32> to vector<8x128xf32>
    %101 = arith.mulf %98, %100 : vector<8x128xf32>
    %102 = arith.addf %96, %101 : vector<8x128xf32>
    %103 = vector.extract_strided_slice %0 {offsets = [17, 0, 0], sizes = [1, 8, 128], strides = [1, 1, 1]} : vector<25x8x128xf32> to vector<1x8x128xf32>
    %104 = vector.shape_cast %103 : vector<1x8x128xf32> to vector<8x128xf32>
    %105 = vector.extract_strided_slice %1 {offsets = [0, 17], sizes = [8, 1], strides = [1, 1]} : vector<8x25xf32> to vector<8x1xf32>
    %106 = vector.broadcast %105 : vector<8x1xf32> to vector<8x128xf32>
    %107 = arith.mulf %104, %106 : vector<8x128xf32>
    %108 = arith.addf %102, %107 : vector<8x128xf32>
    %109 = vector.extract_strided_slice %0 {offsets = [18, 0, 0], sizes = [1, 8, 128], strides = [1, 1, 1]} : vector<25x8x128xf32> to vector<1x8x128xf32>
    %110 = vector.shape_cast %109 : vector<1x8x128xf32> to vector<8x128xf32>
    %111 = vector.extract_strided_slice %1 {offsets = [0, 18], sizes = [8, 1], strides = [1, 1]} : vector<8x25xf32> to vector<8x1xf32>
    %112 = vector.broadcast %111 : vector<8x1xf32> to vector<8x128xf32>
    %113 = arith.mulf %110, %112 : vector<8x128xf32>
    %114 = arith.addf %108, %113 : vector<8x128xf32>
    %115 = vector.extract_strided_slice %0 {offsets = [19, 0, 0], sizes = [1, 8, 128], strides = [1, 1, 1]} : vector<25x8x128xf32> to vector<1x8x128xf32>
    %116 = vector.shape_cast %115 : vector<1x8x128xf32> to vector<8x128xf32>
    %117 = vector.extract_strided_slice %1 {offsets = [0, 19], sizes = [8, 1], strides = [1, 1]} : vector<8x25xf32> to vector<8x1xf32>
    %118 = vector.broadcast %117 : vector<8x1xf32> to vector<8x128xf32>
    %119 = arith.mulf %116, %118 : vector<8x128xf32>
    %120 = arith.addf %114, %119 : vector<8x128xf32>
    %121 = vector.extract_strided_slice %0 {offsets = [20, 0, 0], sizes = [1, 8, 128], strides = [1, 1, 1]} : vector<25x8x128xf32> to vector<1x8x128xf32>
    %122 = vector.shape_cast %121 : vector<1x8x128xf32> to vector<8x128xf32>
    %123 = vector.extract_strided_slice %1 {offsets = [0, 20], sizes = [8, 1], strides = [1, 1]} : vector<8x25xf32> to vector<8x1xf32>
    %124 = vector.broadcast %123 : vector<8x1xf32> to vector<8x128xf32>
    %125 = arith.mulf %122, %124 : vector<8x128xf32>
    %126 = arith.addf %120, %125 : vector<8x128xf32>
    %127 = vector.extract_strided_slice %0 {offsets = [21, 0, 0], sizes = [1, 8, 128], strides = [1, 1, 1]} : vector<25x8x128xf32> to vector<1x8x128xf32>
    %128 = vector.shape_cast %127 : vector<1x8x128xf32> to vector<8x128xf32>
    %129 = vector.extract_strided_slice %1 {offsets = [0, 21], sizes = [8, 1], strides = [1, 1]} : vector<8x25xf32> to vector<8x1xf32>
    %130 = vector.broadcast %129 : vector<8x1xf32> to vector<8x128xf32>
    %131 = arith.mulf %128, %130 : vector<8x128xf32>
    %132 = arith.addf %126, %131 : vector<8x128xf32>
    %133 = vector.extract_strided_slice %0 {offsets = [22, 0, 0], sizes = [1, 8, 128], strides = [1, 1, 1]} : vector<25x8x128xf32> to vector<1x8x128xf32>
    %134 = vector.shape_cast %133 : vector<1x8x128xf32> to vector<8x128xf32>
    %135 = vector.extract_strided_slice %1 {offsets = [0, 22], sizes = [8, 1], strides = [1, 1]} : vector<8x25xf32> to vector<8x1xf32>
    %136 = vector.broadcast %135 : vector<8x1xf32> to vector<8x128xf32>
    %137 = arith.mulf %134, %136 : vector<8x128xf32>
    %138 = arith.addf %132, %137 : vector<8x128xf32>
    %139 = vector.extract_strided_slice %0 {offsets = [23, 0, 0], sizes = [1, 8, 128], strides = [1, 1, 1]} : vector<25x8x128xf32> to vector<1x8x128xf32>
    %140 = vector.shape_cast %139 : vector<1x8x128xf32> to vector<8x128xf32>
    %141 = vector.extract_strided_slice %1 {offsets = [0, 23], sizes = [8, 1], strides = [1, 1]} : vector<8x25xf32> to vector<8x1xf32>
    %142 = vector.broadcast %141 : vector<8x1xf32> to vector<8x128xf32>
    %143 = arith.mulf %140, %142 : vector<8x128xf32>
    %144 = arith.addf %138, %143 : vector<8x128xf32>
    %145 = vector.extract_strided_slice %0 {offsets = [24, 0, 0], sizes = [1, 8, 128], strides = [1, 1, 1]} : vector<25x8x128xf32> to vector<1x8x128xf32>
    %146 = vector.shape_cast %145 : vector<1x8x128xf32> to vector<8x128xf32>
    %147 = vector.extract_strided_slice %1 {offsets = [0, 24], sizes = [8, 1], strides = [1, 1]} : vector<8x25xf32> to vector<8x1xf32>
    %148 = vector.broadcast %147 : vector<8x1xf32> to vector<8x128xf32>
    %149 = arith.mulf %146, %148 : vector<8x128xf32>
    %150 = arith.addf %144, %149 : vector<8x128xf32>
    %c0_4 = arith.constant 0 : index
    %c0_5 = arith.constant 0 : index
    %151 = vector.load %arg3[%c0_4, %c0_5] : memref<8x128xf32, #tpu.memory_space<vmem>>, vector<8x128xf32>
    tpu.vector_store %arg3[%c0_4, %c0_5], %150 {strides = array<i32>} : memref<8x128xf32, #tpu.memory_space<vmem>>, vector<8x128xf32>,
    return
  }
  func.func @transform_0(%arg0: i32) -> (i32, i32, i32) {
    %c0_i32 = arith.constant 0 : i32
    %c0_i32_0 = arith.constant 0 : i32
    %c0_i32_1 = arith.constant 0 : i32
    return %c0_i32, %c0_i32_0, %arg0 : i32, i32, i32
  }
  func.func @transform_1(%arg0: i32) -> (i32, i32) {
    %c0_i32 = arith.constant 0 : i32
    %c0_i32_0 = arith.constant 0 : i32
    %c0_i32_1 = arith.constant 0 : i32
    return %c0_i32, %c0_i32_0 : i32, i32
  }
  func.func @transform_2(%arg0: i32) -> (i32, i32) {
    %c0_i32 = arith.constant 0 : i32
    %c0_i32_0 = arith.constant 0 : i32
    return %c0_i32, %arg0 : i32, i32
  }
}

module attributes {stable_mosaic.version = 11 : i64} {
  func.func @_wsum_kernel(%arg0: i32, %arg1: memref<14xf32, #tpu.memory_space<smem>>, %arg2: memref<8x128xf32, #tpu.memory_space<vmem>>, %arg3: memref<8x128xf32, #tpu.memory_space<vmem>>, %arg4: memref<8x128xf32, #tpu.memory_space<vmem>>, %arg5: memref<8x128xf32, #tpu.memory_space<vmem>>, %arg6: memref<8x128xf32, #tpu.memory_space<vmem>>, %arg7: memref<8x128xf32, #tpu.memory_space<vmem>>, %arg8: memref<8x128xf32, #tpu.memory_space<vmem>>, %arg9: memref<8x128xf32, #tpu.memory_space<vmem>>, %arg10: memref<8x128xf32, #tpu.memory_space<vmem>>, %arg11: memref<8x128xf32, #tpu.memory_space<vmem>>, %arg12: memref<8x128xf32, #tpu.memory_space<vmem>>, %arg13: memref<8x128xf32, #tpu.memory_space<vmem>>, %arg14: memref<8x128xf32, #tpu.memory_space<vmem>>, %arg15: memref<8x128xf32, #tpu.memory_space<vmem>>, %arg16: memref<8x128xf32, #tpu.memory_space<vmem>>) attributes {dimension_semantics = [#tpu.dimension_semantics<parallel>], iteration_bounds = array<i64: 1>, scalar_prefetch = 1 : i64, scratch_operands = 0 : i64, tpu.core_type = #tpu.core_type<tc>, window_params = [{transform_indices = @transform_0, window_bounds = array<i64: 8, 128>}, {transform_indices = @transform_1, window_bounds = array<i64: 8, 128>}, {transform_indices = @transform_2, window_bounds = array<i64: 8, 128>}, {transform_indices = @transform_3, window_bounds = array<i64: 8, 128>}, {transform_indices = @transform_4, window_bounds = array<i64: 8, 128>}, {transform_indices = @transform_5, window_bounds = array<i64: 8, 128>}, {transform_indices = @transform_6, window_bounds = array<i64: 8, 128>}, {transform_indices = @transform_7, window_bounds = array<i64: 8, 128>}, {transform_indices = @transform_8, window_bounds = array<i64: 8, 128>}, {transform_indices = @transform_9, window_bounds = array<i64: 8, 128>}, {transform_indices = @transform_10, window_bounds = array<i64: 8, 128>}, {transform_indices = @transform_11, window_bounds = array<i64: 8, 128>}, {transform_indices = @transform_12, window_bounds = array<i64: 8, 128>}, {transform_indices = @transform_13, window_bounds = array<i64: 8, 128>}, {transform_indices = @transform_14, window_bounds = array<i64: 8, 128>}]} {
    %c0 = arith.constant 0 : index
    %0 = memref.load %arg1[%c0] : memref<14xf32, #tpu.memory_space<smem>>
    %c0_0 = arith.constant 0 : index
    %c0_1 = arith.constant 0 : index
    %1 = vector.load %arg2[%c0_0, %c0_1] : memref<8x128xf32, #tpu.memory_space<vmem>>, vector<8x128xf32>
    %2 = vector.broadcast %0 : f32 to vector<8x128xf32>
    %3 = arith.mulf %2, %1 : vector<8x128xf32>
    %c1 = arith.constant 1 : index
    %4 = memref.load %arg1[%c1] : memref<14xf32, #tpu.memory_space<smem>>
    %c0_2 = arith.constant 0 : index
    %c0_3 = arith.constant 0 : index
    %5 = vector.load %arg3[%c0_2, %c0_3] : memref<8x128xf32, #tpu.memory_space<vmem>>, vector<8x128xf32>
    %6 = vector.broadcast %4 : f32 to vector<8x128xf32>
    %7 = arith.mulf %6, %5 : vector<8x128xf32>
    %8 = arith.addf %3, %7 : vector<8x128xf32>
    %c2 = arith.constant 2 : index
    %9 = memref.load %arg1[%c2] : memref<14xf32, #tpu.memory_space<smem>>
    %c0_4 = arith.constant 0 : index
    %c0_5 = arith.constant 0 : index
    %10 = vector.load %arg4[%c0_4, %c0_5] : memref<8x128xf32, #tpu.memory_space<vmem>>, vector<8x128xf32>
    %11 = vector.broadcast %9 : f32 to vector<8x128xf32>
    %12 = arith.mulf %11, %10 : vector<8x128xf32>
    %13 = arith.addf %8, %12 : vector<8x128xf32>
    %c3 = arith.constant 3 : index
    %14 = memref.load %arg1[%c3] : memref<14xf32, #tpu.memory_space<smem>>
    %c0_6 = arith.constant 0 : index
    %c0_7 = arith.constant 0 : index
    %15 = vector.load %arg5[%c0_6, %c0_7] : memref<8x128xf32, #tpu.memory_space<vmem>>, vector<8x128xf32>
    %16 = vector.broadcast %14 : f32 to vector<8x128xf32>
    %17 = arith.mulf %16, %15 : vector<8x128xf32>
    %18 = arith.addf %13, %17 : vector<8x128xf32>
    %c4 = arith.constant 4 : index
    %19 = memref.load %arg1[%c4] : memref<14xf32, #tpu.memory_space<smem>>
    %c0_8 = arith.constant 0 : index
    %c0_9 = arith.constant 0 : index
    %20 = vector.load %arg6[%c0_8, %c0_9] : memref<8x128xf32, #tpu.memory_space<vmem>>, vector<8x128xf32>
    %21 = vector.broadcast %19 : f32 to vector<8x128xf32>
    %22 = arith.mulf %21, %20 : vector<8x128xf32>
    %23 = arith.addf %18, %22 : vector<8x128xf32>
    %c5 = arith.constant 5 : index
    %24 = memref.load %arg1[%c5] : memref<14xf32, #tpu.memory_space<smem>>
    %c0_10 = arith.constant 0 : index
    %c0_11 = arith.constant 0 : index
    %25 = vector.load %arg7[%c0_10, %c0_11] : memref<8x128xf32, #tpu.memory_space<vmem>>, vector<8x128xf32>
    %26 = vector.broadcast %24 : f32 to vector<8x128xf32>
    %27 = arith.mulf %26, %25 : vector<8x128xf32>
    %28 = arith.addf %23, %27 : vector<8x128xf32>
    %c6 = arith.constant 6 : index
    %29 = memref.load %arg1[%c6] : memref<14xf32, #tpu.memory_space<smem>>
    %c0_12 = arith.constant 0 : index
    %c0_13 = arith.constant 0 : index
    %30 = vector.load %arg8[%c0_12, %c0_13] : memref<8x128xf32, #tpu.memory_space<vmem>>, vector<8x128xf32>
    %31 = vector.broadcast %29 : f32 to vector<8x128xf32>
    %32 = arith.mulf %31, %30 : vector<8x128xf32>
    %33 = arith.addf %28, %32 : vector<8x128xf32>
    %c7 = arith.constant 7 : index
    %34 = memref.load %arg1[%c7] : memref<14xf32, #tpu.memory_space<smem>>
    %c0_14 = arith.constant 0 : index
    %c0_15 = arith.constant 0 : index
    %35 = vector.load %arg9[%c0_14, %c0_15] : memref<8x128xf32, #tpu.memory_space<vmem>>, vector<8x128xf32>
    %36 = vector.broadcast %34 : f32 to vector<8x128xf32>
    %37 = arith.mulf %36, %35 : vector<8x128xf32>
    %38 = arith.addf %33, %37 : vector<8x128xf32>
    %c8 = arith.constant 8 : index
    %39 = memref.load %arg1[%c8] : memref<14xf32, #tpu.memory_space<smem>>
    %c0_16 = arith.constant 0 : index
    %c0_17 = arith.constant 0 : index
    %40 = vector.load %arg10[%c0_16, %c0_17] : memref<8x128xf32, #tpu.memory_space<vmem>>, vector<8x128xf32>
    %41 = vector.broadcast %39 : f32 to vector<8x128xf32>
    %42 = arith.mulf %41, %40 : vector<8x128xf32>
    %43 = arith.addf %38, %42 : vector<8x128xf32>
    %c9 = arith.constant 9 : index
    %44 = memref.load %arg1[%c9] : memref<14xf32, #tpu.memory_space<smem>>
    %c0_18 = arith.constant 0 : index
    %c0_19 = arith.constant 0 : index
    %45 = vector.load %arg11[%c0_18, %c0_19] : memref<8x128xf32, #tpu.memory_space<vmem>>, vector<8x128xf32>
    %46 = vector.broadcast %44 : f32 to vector<8x128xf32>
    %47 = arith.mulf %46, %45 : vector<8x128xf32>
    %48 = arith.addf %43, %47 : vector<8x128xf32>
    %c10 = arith.constant 10 : index
    %49 = memref.load %arg1[%c10] : memref<14xf32, #tpu.memory_space<smem>>
    %c0_20 = arith.constant 0 : index
    %c0_21 = arith.constant 0 : index
    %50 = vector.load %arg12[%c0_20, %c0_21] : memref<8x128xf32, #tpu.memory_space<vmem>>, vector<8x128xf32>
    %51 = vector.broadcast %49 : f32 to vector<8x128xf32>
    %52 = arith.mulf %51, %50 : vector<8x128xf32>
    %53 = arith.addf %48, %52 : vector<8x128xf32>
    %c11 = arith.constant 11 : index
    %54 = memref.load %arg1[%c11] : memref<14xf32, #tpu.memory_space<smem>>
    %c0_22 = arith.constant 0 : index
    %c0_23 = arith.constant 0 : index
    %55 = vector.load %arg13[%c0_22, %c0_23] : memref<8x128xf32, #tpu.memory_space<vmem>>, vector<8x128xf32>
    %56 = vector.broadcast %54 : f32 to vector<8x128xf32>
    %57 = arith.mulf %56, %55 : vector<8x128xf32>
    %58 = arith.addf %53, %57 : vector<8x128xf32>
    %c12 = arith.constant 12 : index
    %59 = memref.load %arg1[%c12] : memref<14xf32, #tpu.memory_space<smem>>
    %c0_24 = arith.constant 0 : index
    %c0_25 = arith.constant 0 : index
    %60 = vector.load %arg14[%c0_24, %c0_25] : memref<8x128xf32, #tpu.memory_space<vmem>>, vector<8x128xf32>
    %61 = vector.broadcast %59 : f32 to vector<8x128xf32>
    %62 = arith.mulf %61, %60 : vector<8x128xf32>
    %63 = arith.addf %58, %62 : vector<8x128xf32>
    %c13 = arith.constant 13 : index
    %64 = memref.load %arg1[%c13] : memref<14xf32, #tpu.memory_space<smem>>
    %c0_26 = arith.constant 0 : index
    %c0_27 = arith.constant 0 : index
    %65 = vector.load %arg15[%c0_26, %c0_27] : memref<8x128xf32, #tpu.memory_space<vmem>>, vector<8x128xf32>
    %66 = vector.broadcast %64 : f32 to vector<8x128xf32>
    %67 = arith.mulf %66, %65 : vector<8x128xf32>
    %68 = arith.addf %63, %67 : vector<8x128xf32>
    %c0_28 = arith.constant 0 : index
    %c0_29 = arith.constant 0 : index
    %69 = vector.load %arg16[%c0_28, %c0_29] : memref<8x128xf32, #tpu.memory_space<vmem>>, vector<8x128xf32>
    tpu.vector_store %arg16[%c0_28, %c0_29], %68 {strides = array<i32>} : memref<8x128xf32, #tpu.memory_space<vmem>>, vector<8x128xf32>,
    return
  }
  func.func @transform_0(%arg0: i32, %arg1: memref<14xf32, #tpu.memory_space<smem>>) -> (i32, i32) {
    %c0_i32 = arith.constant 0 : i32
    %c0_i32_0 = arith.constant 0 : i32
    return %c0_i32, %arg0 : i32, i32
  }
  func.func @transform_1(%arg0: i32, %arg1: memref<14xf32, #tpu.memory_space<smem>>) -> (i32, i32) {
    %c0_i32 = arith.constant 0 : i32
    %c0_i32_0 = arith.constant 0 : i32
    return %c0_i32, %arg0 : i32, i32
  }
  func.func @transform_2(%arg0: i32, %arg1: memref<14xf32, #tpu.memory_space<smem>>) -> (i32, i32) {
    %c0_i32 = arith.constant 0 : i32
    %c0_i32_0 = arith.constant 0 : i32
    return %c0_i32, %arg0 : i32, i32
  }
  func.func @transform_3(%arg0: i32, %arg1: memref<14xf32, #tpu.memory_space<smem>>) -> (i32, i32) {
    %c0_i32 = arith.constant 0 : i32
    %c0_i32_0 = arith.constant 0 : i32
    return %c0_i32, %arg0 : i32, i32
  }
  func.func @transform_4(%arg0: i32, %arg1: memref<14xf32, #tpu.memory_space<smem>>) -> (i32, i32) {
    %c0_i32 = arith.constant 0 : i32
    %c0_i32_0 = arith.constant 0 : i32
    return %c0_i32, %arg0 : i32, i32
  }
  func.func @transform_5(%arg0: i32, %arg1: memref<14xf32, #tpu.memory_space<smem>>) -> (i32, i32) {
    %c0_i32 = arith.constant 0 : i32
    %c0_i32_0 = arith.constant 0 : i32
    return %c0_i32, %arg0 : i32, i32
  }
  func.func @transform_6(%arg0: i32, %arg1: memref<14xf32, #tpu.memory_space<smem>>) -> (i32, i32) {
    %c0_i32 = arith.constant 0 : i32
    %c0_i32_0 = arith.constant 0 : i32
    return %c0_i32, %arg0 : i32, i32
  }
  func.func @transform_7(%arg0: i32, %arg1: memref<14xf32, #tpu.memory_space<smem>>) -> (i32, i32) {
    %c0_i32 = arith.constant 0 : i32
    %c0_i32_0 = arith.constant 0 : i32
    return %c0_i32, %arg0 : i32, i32
  }
  func.func @transform_8(%arg0: i32, %arg1: memref<14xf32, #tpu.memory_space<smem>>) -> (i32, i32) {
    %c0_i32 = arith.constant 0 : i32
    %c0_i32_0 = arith.constant 0 : i32
    return %c0_i32, %arg0 : i32, i32
  }
  func.func @transform_9(%arg0: i32, %arg1: memref<14xf32, #tpu.memory_space<smem>>) -> (i32, i32) {
    %c0_i32 = arith.constant 0 : i32
    %c0_i32_0 = arith.constant 0 : i32
    return %c0_i32, %arg0 : i32, i32
  }
  func.func @transform_10(%arg0: i32, %arg1: memref<14xf32, #tpu.memory_space<smem>>) -> (i32, i32) {
    %c0_i32 = arith.constant 0 : i32
    %c0_i32_0 = arith.constant 0 : i32
    return %c0_i32, %arg0 : i32, i32
  }
  func.func @transform_11(%arg0: i32, %arg1: memref<14xf32, #tpu.memory_space<smem>>) -> (i32, i32) {
    %c0_i32 = arith.constant 0 : i32
    %c0_i32_0 = arith.constant 0 : i32
    return %c0_i32, %arg0 : i32, i32
  }
  func.func @transform_12(%arg0: i32, %arg1: memref<14xf32, #tpu.memory_space<smem>>) -> (i32, i32) {
    %c0_i32 = arith.constant 0 : i32
    %c0_i32_0 = arith.constant 0 : i32
    return %c0_i32, %arg0 : i32, i32
  }
  func.func @transform_13(%arg0: i32, %arg1: memref<14xf32, #tpu.memory_space<smem>>) -> (i32, i32) {
    %c0_i32 = arith.constant 0 : i32
    %c0_i32_0 = arith.constant 0 : i32
    return %c0_i32, %arg0 : i32, i32
  }
  func.func @transform_14(%arg0: i32, %arg1: memref<14xf32, #tpu.memory_space<smem>>) -> (i32, i32) {
    %c0_i32 = arith.constant 0 : i32
    %c0_i32_0 = arith.constant 0 : i32
    return %c0_i32, %arg0 : i32, i32
  }
}

module attributes {stable_mosaic.version = 11 : i64} {
  func.func @_wsum_kernel(%arg0: i32, %arg1: memref<21xf32, #tpu.memory_space<smem>>, %arg2: memref<8x128xf32, #tpu.memory_space<vmem>>, %arg3: memref<8x128xf32, #tpu.memory_space<vmem>>, %arg4: memref<8x128xf32, #tpu.memory_space<vmem>>, %arg5: memref<8x128xf32, #tpu.memory_space<vmem>>, %arg6: memref<8x128xf32, #tpu.memory_space<vmem>>, %arg7: memref<8x128xf32, #tpu.memory_space<vmem>>, %arg8: memref<8x128xf32, #tpu.memory_space<vmem>>, %arg9: memref<8x128xf32, #tpu.memory_space<vmem>>, %arg10: memref<8x128xf32, #tpu.memory_space<vmem>>, %arg11: memref<8x128xf32, #tpu.memory_space<vmem>>, %arg12: memref<8x128xf32, #tpu.memory_space<vmem>>, %arg13: memref<8x128xf32, #tpu.memory_space<vmem>>, %arg14: memref<8x128xf32, #tpu.memory_space<vmem>>, %arg15: memref<8x128xf32, #tpu.memory_space<vmem>>, %arg16: memref<8x128xf32, #tpu.memory_space<vmem>>, %arg17: memref<8x128xf32, #tpu.memory_space<vmem>>, %arg18: memref<8x128xf32, #tpu.memory_space<vmem>>, %arg19: memref<8x128xf32, #tpu.memory_space<vmem>>, %arg20: memref<8x128xf32, #tpu.memory_space<vmem>>, %arg21: memref<8x128xf32, #tpu.memory_space<vmem>>, %arg22: memref<8x128xf32, #tpu.memory_space<vmem>>, %arg23: memref<8x128xf32, #tpu.memory_space<vmem>>) attributes {dimension_semantics = [#tpu.dimension_semantics<parallel>], iteration_bounds = array<i64: 1>, scalar_prefetch = 1 : i64, scratch_operands = 0 : i64, tpu.core_type = #tpu.core_type<tc>, window_params = [{transform_indices = @transform_0, window_bounds = array<i64: 8, 128>}, {transform_indices = @transform_1, window_bounds = array<i64: 8, 128>}, {transform_indices = @transform_2, window_bounds = array<i64: 8, 128>}, {transform_indices = @transform_3, window_bounds = array<i64: 8, 128>}, {transform_indices = @transform_4, window_bounds = array<i64: 8, 128>}, {transform_indices = @transform_5, window_bounds = array<i64: 8, 128>}, {transform_indices = @transform_6, window_bounds = array<i64: 8, 128>}, {transform_indices = @transform_7, window_bounds = array<i64: 8, 128>}, {transform_indices = @transform_8, window_bounds = array<i64: 8, 128>}, {transform_indices = @transform_9, window_bounds = array<i64: 8, 128>}, {transform_indices = @transform_10, window_bounds = array<i64: 8, 128>}, {transform_indices = @transform_11, window_bounds = array<i64: 8, 128>}, {transform_indices = @transform_12, window_bounds = array<i64: 8, 128>}, {transform_indices = @transform_13, window_bounds = array<i64: 8, 128>}, {transform_indices = @transform_14, window_bounds = array<i64: 8, 128>}, {transform_indices = @transform_15, window_bounds = array<i64: 8, 128>}, {transform_indices = @transform_16, window_bounds = array<i64: 8, 128>}, {transform_indices = @transform_17, window_bounds = array<i64: 8, 128>}, {transform_indices = @transform_18, window_bounds = array<i64: 8, 128>}, {transform_indices = @transform_19, window_bounds = array<i64: 8, 128>}, {transform_indices = @transform_20, window_bounds = array<i64: 8, 128>}, {transform_indices = @transform_21, window_bounds = array<i64: 8, 128>}]} {
    %c0 = arith.constant 0 : index
    %0 = memref.load %arg1[%c0] : memref<21xf32, #tpu.memory_space<smem>>
    %c0_0 = arith.constant 0 : index
    %c0_1 = arith.constant 0 : index
    %1 = vector.load %arg2[%c0_0, %c0_1] : memref<8x128xf32, #tpu.memory_space<vmem>>, vector<8x128xf32>
    %2 = vector.broadcast %0 : f32 to vector<8x128xf32>
    %3 = arith.mulf %2, %1 : vector<8x128xf32>
    %c1 = arith.constant 1 : index
    %4 = memref.load %arg1[%c1] : memref<21xf32, #tpu.memory_space<smem>>
    %c0_2 = arith.constant 0 : index
    %c0_3 = arith.constant 0 : index
    %5 = vector.load %arg3[%c0_2, %c0_3] : memref<8x128xf32, #tpu.memory_space<vmem>>, vector<8x128xf32>
    %6 = vector.broadcast %4 : f32 to vector<8x128xf32>
    %7 = arith.mulf %6, %5 : vector<8x128xf32>
    %8 = arith.addf %3, %7 : vector<8x128xf32>
    %c2 = arith.constant 2 : index
    %9 = memref.load %arg1[%c2] : memref<21xf32, #tpu.memory_space<smem>>
    %c0_4 = arith.constant 0 : index
    %c0_5 = arith.constant 0 : index
    %10 = vector.load %arg4[%c0_4, %c0_5] : memref<8x128xf32, #tpu.memory_space<vmem>>, vector<8x128xf32>
    %11 = vector.broadcast %9 : f32 to vector<8x128xf32>
    %12 = arith.mulf %11, %10 : vector<8x128xf32>
    %13 = arith.addf %8, %12 : vector<8x128xf32>
    %c3 = arith.constant 3 : index
    %14 = memref.load %arg1[%c3] : memref<21xf32, #tpu.memory_space<smem>>
    %c0_6 = arith.constant 0 : index
    %c0_7 = arith.constant 0 : index
    %15 = vector.load %arg5[%c0_6, %c0_7] : memref<8x128xf32, #tpu.memory_space<vmem>>, vector<8x128xf32>
    %16 = vector.broadcast %14 : f32 to vector<8x128xf32>
    %17 = arith.mulf %16, %15 : vector<8x128xf32>
    %18 = arith.addf %13, %17 : vector<8x128xf32>
    %c4 = arith.constant 4 : index
    %19 = memref.load %arg1[%c4] : memref<21xf32, #tpu.memory_space<smem>>
    %c0_8 = arith.constant 0 : index
    %c0_9 = arith.constant 0 : index
    %20 = vector.load %arg6[%c0_8, %c0_9] : memref<8x128xf32, #tpu.memory_space<vmem>>, vector<8x128xf32>
    %21 = vector.broadcast %19 : f32 to vector<8x128xf32>
    %22 = arith.mulf %21, %20 : vector<8x128xf32>
    %23 = arith.addf %18, %22 : vector<8x128xf32>
    %c5 = arith.constant 5 : index
    %24 = memref.load %arg1[%c5] : memref<21xf32, #tpu.memory_space<smem>>
    %c0_10 = arith.constant 0 : index
    %c0_11 = arith.constant 0 : index
    %25 = vector.load %arg7[%c0_10, %c0_11] : memref<8x128xf32, #tpu.memory_space<vmem>>, vector<8x128xf32>
    %26 = vector.broadcast %24 : f32 to vector<8x128xf32>
    %27 = arith.mulf %26, %25 : vector<8x128xf32>
    %28 = arith.addf %23, %27 : vector<8x128xf32>
    %c6 = arith.constant 6 : index
    %29 = memref.load %arg1[%c6] : memref<21xf32, #tpu.memory_space<smem>>
    %c0_12 = arith.constant 0 : index
    %c0_13 = arith.constant 0 : index
    %30 = vector.load %arg8[%c0_12, %c0_13] : memref<8x128xf32, #tpu.memory_space<vmem>>, vector<8x128xf32>
    %31 = vector.broadcast %29 : f32 to vector<8x128xf32>
    %32 = arith.mulf %31, %30 : vector<8x128xf32>
    %33 = arith.addf %28, %32 : vector<8x128xf32>
    %c7 = arith.constant 7 : index
    %34 = memref.load %arg1[%c7] : memref<21xf32, #tpu.memory_space<smem>>
    %c0_14 = arith.constant 0 : index
    %c0_15 = arith.constant 0 : index
    %35 = vector.load %arg9[%c0_14, %c0_15] : memref<8x128xf32, #tpu.memory_space<vmem>>, vector<8x128xf32>
    %36 = vector.broadcast %34 : f32 to vector<8x128xf32>
    %37 = arith.mulf %36, %35 : vector<8x128xf32>
    %38 = arith.addf %33, %37 : vector<8x128xf32>
    %c8 = arith.constant 8 : index
    %39 = memref.load %arg1[%c8] : memref<21xf32, #tpu.memory_space<smem>>
    %c0_16 = arith.constant 0 : index
    %c0_17 = arith.constant 0 : index
    %40 = vector.load %arg10[%c0_16, %c0_17] : memref<8x128xf32, #tpu.memory_space<vmem>>, vector<8x128xf32>
    %41 = vector.broadcast %39 : f32 to vector<8x128xf32>
    %42 = arith.mulf %41, %40 : vector<8x128xf32>
    %43 = arith.addf %38, %42 : vector<8x128xf32>
    %c9 = arith.constant 9 : index
    %44 = memref.load %arg1[%c9] : memref<21xf32, #tpu.memory_space<smem>>
    %c0_18 = arith.constant 0 : index
    %c0_19 = arith.constant 0 : index
    %45 = vector.load %arg11[%c0_18, %c0_19] : memref<8x128xf32, #tpu.memory_space<vmem>>, vector<8x128xf32>
    %46 = vector.broadcast %44 : f32 to vector<8x128xf32>
    %47 = arith.mulf %46, %45 : vector<8x128xf32>
    %48 = arith.addf %43, %47 : vector<8x128xf32>
    %c10 = arith.constant 10 : index
    %49 = memref.load %arg1[%c10] : memref<21xf32, #tpu.memory_space<smem>>
    %c0_20 = arith.constant 0 : index
    %c0_21 = arith.constant 0 : index
    %50 = vector.load %arg12[%c0_20, %c0_21] : memref<8x128xf32, #tpu.memory_space<vmem>>, vector<8x128xf32>
    %51 = vector.broadcast %49 : f32 to vector<8x128xf32>
    %52 = arith.mulf %51, %50 : vector<8x128xf32>
    %53 = arith.addf %48, %52 : vector<8x128xf32>
    %c11 = arith.constant 11 : index
    %54 = memref.load %arg1[%c11] : memref<21xf32, #tpu.memory_space<smem>>
    %c0_22 = arith.constant 0 : index
    %c0_23 = arith.constant 0 : index
    %55 = vector.load %arg13[%c0_22, %c0_23] : memref<8x128xf32, #tpu.memory_space<vmem>>, vector<8x128xf32>
    %56 = vector.broadcast %54 : f32 to vector<8x128xf32>
    %57 = arith.mulf %56, %55 : vector<8x128xf32>
    %58 = arith.addf %53, %57 : vector<8x128xf32>
    %c12 = arith.constant 12 : index
    %59 = memref.load %arg1[%c12] : memref<21xf32, #tpu.memory_space<smem>>
    %c0_24 = arith.constant 0 : index
    %c0_25 = arith.constant 0 : index
    %60 = vector.load %arg14[%c0_24, %c0_25] : memref<8x128xf32, #tpu.memory_space<vmem>>, vector<8x128xf32>
    %61 = vector.broadcast %59 : f32 to vector<8x128xf32>
    %62 = arith.mulf %61, %60 : vector<8x128xf32>
    %63 = arith.addf %58, %62 : vector<8x128xf32>
    %c13 = arith.constant 13 : index
    %64 = memref.load %arg1[%c13] : memref<21xf32, #tpu.memory_space<smem>>
    %c0_26 = arith.constant 0 : index
    %c0_27 = arith.constant 0 : index
    %65 = vector.load %arg15[%c0_26, %c0_27] : memref<8x128xf32, #tpu.memory_space<vmem>>, vector<8x128xf32>
    %66 = vector.broadcast %64 : f32 to vector<8x128xf32>
    %67 = arith.mulf %66, %65 : vector<8x128xf32>
    %68 = arith.addf %63, %67 : vector<8x128xf32>
    %c14 = arith.constant 14 : index
    %69 = memref.load %arg1[%c14] : memref<21xf32, #tpu.memory_space<smem>>
    %c0_28 = arith.constant 0 : index
    %c0_29 = arith.constant 0 : index
    %70 = vector.load %arg16[%c0_28, %c0_29] : memref<8x128xf32, #tpu.memory_space<vmem>>, vector<8x128xf32>
    %71 = vector.broadcast %69 : f32 to vector<8x128xf32>
    %72 = arith.mulf %71, %70 : vector<8x128xf32>
    %73 = arith.addf %68, %72 : vector<8x128xf32>
    %c15 = arith.constant 15 : index
    %74 = memref.load %arg1[%c15] : memref<21xf32, #tpu.memory_space<smem>>
    %c0_30 = arith.constant 0 : index
    %c0_31 = arith.constant 0 : index
    %75 = vector.load %arg17[%c0_30, %c0_31] : memref<8x128xf32, #tpu.memory_space<vmem>>, vector<8x128xf32>
    %76 = vector.broadcast %74 : f32 to vector<8x128xf32>
    %77 = arith.mulf %76, %75 : vector<8x128xf32>
    %78 = arith.addf %73, %77 : vector<8x128xf32>
    %c16 = arith.constant 16 : index
    %79 = memref.load %arg1[%c16] : memref<21xf32, #tpu.memory_space<smem>>
    %c0_32 = arith.constant 0 : index
    %c0_33 = arith.constant 0 : index
    %80 = vector.load %arg18[%c0_32, %c0_33] : memref<8x128xf32, #tpu.memory_space<vmem>>, vector<8x128xf32>
    %81 = vector.broadcast %79 : f32 to vector<8x128xf32>
    %82 = arith.mulf %81, %80 : vector<8x128xf32>
    %83 = arith.addf %78, %82 : vector<8x128xf32>
    %c17 = arith.constant 17 : index
    %84 = memref.load %arg1[%c17] : memref<21xf32, #tpu.memory_space<smem>>
    %c0_34 = arith.constant 0 : index
    %c0_35 = arith.constant 0 : index
    %85 = vector.load %arg19[%c0_34, %c0_35] : memref<8x128xf32, #tpu.memory_space<vmem>>, vector<8x128xf32>
    %86 = vector.broadcast %84 : f32 to vector<8x128xf32>
    %87 = arith.mulf %86, %85 : vector<8x128xf32>
    %88 = arith.addf %83, %87 : vector<8x128xf32>
    %c18 = arith.constant 18 : index
    %89 = memref.load %arg1[%c18] : memref<21xf32, #tpu.memory_space<smem>>
    %c0_36 = arith.constant 0 : index
    %c0_37 = arith.constant 0 : index
    %90 = vector.load %arg20[%c0_36, %c0_37] : memref<8x128xf32, #tpu.memory_space<vmem>>, vector<8x128xf32>
    %91 = vector.broadcast %89 : f32 to vector<8x128xf32>
    %92 = arith.mulf %91, %90 : vector<8x128xf32>
    %93 = arith.addf %88, %92 : vector<8x128xf32>
    %c19 = arith.constant 19 : index
    %94 = memref.load %arg1[%c19] : memref<21xf32, #tpu.memory_space<smem>>
    %c0_38 = arith.constant 0 : index
    %c0_39 = arith.constant 0 : index
    %95 = vector.load %arg21[%c0_38, %c0_39] : memref<8x128xf32, #tpu.memory_space<vmem>>, vector<8x128xf32>
    %96 = vector.broadcast %94 : f32 to vector<8x128xf32>
    %97 = arith.mulf %96, %95 : vector<8x128xf32>
    %98 = arith.addf %93, %97 : vector<8x128xf32>
    %c20 = arith.constant 20 : index
    %99 = memref.load %arg1[%c20] : memref<21xf32, #tpu.memory_space<smem>>
    %c0_40 = arith.constant 0 : index
    %c0_41 = arith.constant 0 : index
    %100 = vector.load %arg22[%c0_40, %c0_41] : memref<8x128xf32, #tpu.memory_space<vmem>>, vector<8x128xf32>
    %101 = vector.broadcast %99 : f32 to vector<8x128xf32>
    %102 = arith.mulf %101, %100 : vector<8x128xf32>
    %103 = arith.addf %98, %102 : vector<8x128xf32>
    %c0_42 = arith.constant 0 : index
    %c0_43 = arith.constant 0 : index
    %104 = vector.load %arg23[%c0_42, %c0_43] : memref<8x128xf32, #tpu.memory_space<vmem>>, vector<8x128xf32>
    tpu.vector_store %arg23[%c0_42, %c0_43], %103 {strides = array<i32>} : memref<8x128xf32, #tpu.memory_space<vmem>>, vector<8x128xf32>,
    return
  }
  func.func @transform_0(%arg0: i32, %arg1: memref<21xf32, #tpu.memory_space<smem>>) -> (i32, i32) {
    %c0_i32 = arith.constant 0 : i32
    %c0_i32_0 = arith.constant 0 : i32
    return %c0_i32, %arg0 : i32, i32
  }
  func.func @transform_1(%arg0: i32, %arg1: memref<21xf32, #tpu.memory_space<smem>>) -> (i32, i32) {
    %c0_i32 = arith.constant 0 : i32
    %c0_i32_0 = arith.constant 0 : i32
    return %c0_i32, %arg0 : i32, i32
  }
  func.func @transform_2(%arg0: i32, %arg1: memref<21xf32, #tpu.memory_space<smem>>) -> (i32, i32) {
    %c0_i32 = arith.constant 0 : i32
    %c0_i32_0 = arith.constant 0 : i32
    return %c0_i32, %arg0 : i32, i32
  }
  func.func @transform_3(%arg0: i32, %arg1: memref<21xf32, #tpu.memory_space<smem>>) -> (i32, i32) {
    %c0_i32 = arith.constant 0 : i32
    %c0_i32_0 = arith.constant 0 : i32
    return %c0_i32, %arg0 : i32, i32
  }
  func.func @transform_4(%arg0: i32, %arg1: memref<21xf32, #tpu.memory_space<smem>>) -> (i32, i32) {
    %c0_i32 = arith.constant 0 : i32
    %c0_i32_0 = arith.constant 0 : i32
    return %c0_i32, %arg0 : i32, i32
  }
  func.func @transform_5(%arg0: i32, %arg1: memref<21xf32, #tpu.memory_space<smem>>) -> (i32, i32) {
    %c0_i32 = arith.constant 0 : i32
    %c0_i32_0 = arith.constant 0 : i32
    return %c0_i32, %arg0 : i32, i32
  }
  func.func @transform_6(%arg0: i32, %arg1: memref<21xf32, #tpu.memory_space<smem>>) -> (i32, i32) {
    %c0_i32 = arith.constant 0 : i32
    %c0_i32_0 = arith.constant 0 : i32
    return %c0_i32, %arg0 : i32, i32
  }
  func.func @transform_7(%arg0: i32, %arg1: memref<21xf32, #tpu.memory_space<smem>>) -> (i32, i32) {
    %c0_i32 = arith.constant 0 : i32
    %c0_i32_0 = arith.constant 0 : i32
    return %c0_i32, %arg0 : i32, i32
  }
  func.func @transform_8(%arg0: i32, %arg1: memref<21xf32, #tpu.memory_space<smem>>) -> (i32, i32) {
    %c0_i32 = arith.constant 0 : i32
    %c0_i32_0 = arith.constant 0 : i32
    return %c0_i32, %arg0 : i32, i32
  }
  func.func @transform_9(%arg0: i32, %arg1: memref<21xf32, #tpu.memory_space<smem>>) -> (i32, i32) {
    %c0_i32 = arith.constant 0 : i32
    %c0_i32_0 = arith.constant 0 : i32
    return %c0_i32, %arg0 : i32, i32
  }
  func.func @transform_10(%arg0: i32, %arg1: memref<21xf32, #tpu.memory_space<smem>>) -> (i32, i32) {
    %c0_i32 = arith.constant 0 : i32
    %c0_i32_0 = arith.constant 0 : i32
    return %c0_i32, %arg0 : i32, i32
  }
  func.func @transform_11(%arg0: i32, %arg1: memref<21xf32, #tpu.memory_space<smem>>) -> (i32, i32) {
    %c0_i32 = arith.constant 0 : i32
    %c0_i32_0 = arith.constant 0 : i32
    return %c0_i32, %arg0 : i32, i32
  }
  func.func @transform_12(%arg0: i32, %arg1: memref<21xf32, #tpu.memory_space<smem>>) -> (i32, i32) {
    %c0_i32 = arith.constant 0 : i32
    %c0_i32_0 = arith.constant 0 : i32
    return %c0_i32, %arg0 : i32, i32
  }
  func.func @transform_13(%arg0: i32, %arg1: memref<21xf32, #tpu.memory_space<smem>>) -> (i32, i32) {
    %c0_i32 = arith.constant 0 : i32
    %c0_i32_0 = arith.constant 0 : i32
    return %c0_i32, %arg0 : i32, i32
  }
  func.func @transform_14(%arg0: i32, %arg1: memref<21xf32, #tpu.memory_space<smem>>) -> (i32, i32) {
    %c0_i32 = arith.constant 0 : i32
    %c0_i32_0 = arith.constant 0 : i32
    return %c0_i32, %arg0 : i32, i32
  }
  func.func @transform_15(%arg0: i32, %arg1: memref<21xf32, #tpu.memory_space<smem>>) -> (i32, i32) {
    %c0_i32 = arith.constant 0 : i32
    %c0_i32_0 = arith.constant 0 : i32
    return %c0_i32, %arg0 : i32, i32
  }
  func.func @transform_16(%arg0: i32, %arg1: memref<21xf32, #tpu.memory_space<smem>>) -> (i32, i32) {
    %c0_i32 = arith.constant 0 : i32
    %c0_i32_0 = arith.constant 0 : i32
    return %c0_i32, %arg0 : i32, i32
  }
  func.func @transform_17(%arg0: i32, %arg1: memref<21xf32, #tpu.memory_space<smem>>) -> (i32, i32) {
    %c0_i32 = arith.constant 0 : i32
    %c0_i32_0 = arith.constant 0 : i32
    return %c0_i32, %arg0 : i32, i32
  }
  func.func @transform_18(%arg0: i32, %arg1: memref<21xf32, #tpu.memory_space<smem>>) -> (i32, i32) {
    %c0_i32 = arith.constant 0 : i32
    %c0_i32_0 = arith.constant 0 : i32
    return %c0_i32, %arg0 : i32, i32
  }
  func.func @transform_19(%arg0: i32, %arg1: memref<21xf32, #tpu.memory_space<smem>>) -> (i32, i32) {
    %c0_i32 = arith.constant 0 : i32
    %c0_i32_0 = arith.constant 0 : i32
    return %c0_i32, %arg0 : i32, i32
  }
  func.func @transform_20(%arg0: i32, %arg1: memref<21xf32, #tpu.memory_space<smem>>) -> (i32, i32) {
    %c0_i32 = arith.constant 0 : i32
    %c0_i32_0 = arith.constant 0 : i32
    return %c0_i32, %arg0 : i32, i32
  }
  func.func @transform_21(%arg0: i32, %arg1: memref<21xf32, #tpu.memory_space<smem>>) -> (i32, i32) {
    %c0_i32 = arith.constant 0 : i32
    %c0_i32_0 = arith.constant 0 : i32
    return %c0_i32, %arg0 : i32, i32
  }
}

module attributes {stable_mosaic.version = 11 : i64} {
  func.func @_matmul_kernel(%arg0: i32, %arg1: i32, %arg2: memref<128x16xbf16, #tpu.memory_space<vmem>>, %arg3: memref<16x128xbf16, #tpu.memory_space<vmem>>, %arg4: memref<128x128xf32, #tpu.memory_space<vmem>>) attributes {dimension_semantics = [#tpu.dimension_semantics<parallel>, #tpu.dimension_semantics<parallel>], iteration_bounds = array<i64: 1, 1>, scalar_prefetch = 0 : i64, scratch_operands = 0 : i64, tpu.core_type = #tpu.core_type<tc>, window_params = [{transform_indices = @transform_0, window_bounds = array<i64: 128, 16>}, {transform_indices = @transform_1, window_bounds = array<i64: 16, 128>}, {transform_indices = @transform_2, window_bounds = array<i64: 128, 128>}]} {
    %c0 = arith.constant 0 : index
    %c0_0 = arith.constant 0 : index
    %0 = vector.load %arg2[%c0, %c0_0] : memref<128x16xbf16, #tpu.memory_space<vmem>>, vector<128x16xbf16>
    %c0_1 = arith.constant 0 : index
    %c0_2 = arith.constant 0 : index
    %1 = vector.load %arg3[%c0_1, %c0_2] : memref<16x128xbf16, #tpu.memory_space<vmem>>, vector<16x128xbf16>
    %cst = arith.constant dense<0.000000e+00> : vector<128x128xf32>
    %2 = tpu.matmul %0, %1, %cst {dimension_numbers = #tpu.dot_dimension_numbers<[1], [0], [0], [1], [0, 0, 1, 1], [], []>} : vector<128x16xbf16>, vector<16x128xbf16>, vector<128x128xf32> -> vector<128x128xf32>
    %c0_3 = arith.constant 0 : index
    %c0_4 = arith.constant 0 : index
    %3 = vector.load %arg4[%c0_3, %c0_4] : memref<128x128xf32, #tpu.memory_space<vmem>>, vector<128x128xf32>
    tpu.vector_store %arg4[%c0_3, %c0_4], %2 {strides = array<i32>} : memref<128x128xf32, #tpu.memory_space<vmem>>, vector<128x128xf32>,
    return
  }
  func.func @transform_0(%arg0: i32, %arg1: i32) -> (i32, i32) {
    %c0_i32 = arith.constant 0 : i32
    %c0_i32_0 = arith.constant 0 : i32
    return %arg0, %c0_i32 : i32, i32
  }
  func.func @transform_1(%arg0: i32, %arg1: i32) -> (i32, i32) {
    %c0_i32 = arith.constant 0 : i32
    %c0_i32_0 = arith.constant 0 : i32
    return %c0_i32, %arg1 : i32, i32
  }
  func.func @transform_2(%arg0: i32, %arg1: i32) -> (i32, i32) {
    %c0_i32 = arith.constant 0 : i32
    return %arg0, %arg1 : i32, i32
  }
}

module attributes {stable_mosaic.version = 11 : i64} {
  func.func @_matmul_kernel(%arg0: i32, %arg1: i32, %arg2: memref<16x33xbf16, #tpu.memory_space<vmem>>, %arg3: memref<33x128xbf16, #tpu.memory_space<vmem>>, %arg4: memref<16x128xf32, #tpu.memory_space<vmem>>) attributes {dimension_semantics = [#tpu.dimension_semantics<parallel>, #tpu.dimension_semantics<parallel>], iteration_bounds = array<i64: 1, 1>, scalar_prefetch = 0 : i64, scratch_operands = 0 : i64, tpu.core_type = #tpu.core_type<tc>, window_params = [{transform_indices = @transform_0, window_bounds = array<i64: 16, 33>}, {transform_indices = @transform_1, window_bounds = array<i64: 33, 128>}, {transform_indices = @transform_2, window_bounds = array<i64: 16, 128>}]} {
    %c0 = arith.constant 0 : index
    %c0_0 = arith.constant 0 : index
    %0 = vector.load %arg2[%c0, %c0_0] : memref<16x33xbf16, #tpu.memory_space<vmem>>, vector<16x33xbf16>
    %c0_1 = arith.constant 0 : index
    %c0_2 = arith.constant 0 : index
    %1 = vector.load %arg3[%c0_1, %c0_2] : memref<33x128xbf16, #tpu.memory_space<vmem>>, vector<33x128xbf16>
    %cst = arith.constant dense<0.000000e+00> : vector<16x128xf32>
    %2 = tpu.matmul %0, %1, %cst {dimension_numbers = #tpu.dot_dimension_numbers<[1], [0], [0], [1], [0, 0, 1, 1], [], []>} : vector<16x33xbf16>, vector<33x128xbf16>, vector<16x128xf32> -> vector<16x128xf32>
    %c0_3 = arith.constant 0 : index
    %c0_4 = arith.constant 0 : index
    %3 = vector.load %arg4[%c0_3, %c0_4] : memref<16x128xf32, #tpu.memory_space<vmem>>, vector<16x128xf32>
    tpu.vector_store %arg4[%c0_3, %c0_4], %2 {strides = array<i32>} : memref<16x128xf32, #tpu.memory_space<vmem>>, vector<16x128xf32>,
    return
  }
  func.func @transform_0(%arg0: i32, %arg1: i32) -> (i32, i32) {
    %c0_i32 = arith.constant 0 : i32
    %c0_i32_0 = arith.constant 0 : i32
    return %arg0, %c0_i32 : i32, i32
  }
  func.func @transform_1(%arg0: i32, %arg1: i32) -> (i32, i32) {
    %c0_i32 = arith.constant 0 : i32
    %c0_i32_0 = arith.constant 0 : i32
    return %c0_i32, %arg1 : i32, i32
  }
  func.func @transform_2(%arg0: i32, %arg1: i32) -> (i32, i32) {
    %c0_i32 = arith.constant 0 : i32
    return %arg0, %arg1 : i32, i32
  }
}

</mosaic_0001>

<bundles_post_ra>
// kernel: _lambda_.357
= control target key start
LH: loop header
LB: loop body
LE: loop exit
PB: predicated region body
PF: predicated region fallthrough
CT: control target
= control target key end

     0   :  { %vm9_vm0 = vcmask 61440   ;;  %s62_s0 = inlined_call_operand.vmem [shape: f32[5,8], index: 0, kind: input, shape index: {}]   ;;  %s63_s1 = inlined_call_operand.vmem [shape: f32[5,8], index: 1, kind: output, shape index: {}]  }
   0x1   :  { %v8_v0 = vld [vmem:[%s62_s0] sm:$0x1f] }
   0x2   :  { %v10_v1 = vsel %vm9_vm0, %v8_v0, -inf }
   0x3   :  { %11 = vmax.xlane.f32.xlu0 %v10_v1 }
  0x76   :  { %v12_v2 = vpop.xlane.xlu0 %11 }
  0x77   :  { %v13_v3 = vsub.f32 %v8_v0, %v12_v2 }
  0x79   :  { %v14_v4 = vmul.f32 1.442695, %v13_v3 }
  0x7b   :  { %39 = vpow2.f32 %v14_v4 }
  0x81   :  { %v40_v5 = vpop.eup %39 }
  0x82   :  { %v16_v6 = vsel %vm9_vm0, %v40_v5, 0.0 }
  0x83   :  { %17 = vadd.xlane.f32.xlu0 %v16_v6 }
  0xf6   :  { %v18_v7 = vpop.xlane.xlu0 %17 }
  0xf7   :  { %41 = vrcp.f32 %v18_v7  ;;  %v30_v11 = vand.u32 2147483648, %v18_v7  ;;  %v28_v13 = vand.u32 2147483647, %v18_v7  ;;  %vm24_vm2 = vweird.f32 %v18_v7 }
  0xf9   :  { %v31_v15 = vor.u32 1.1754944e-38, %v30_v11  ;;  %vm29_vm4 = vcmp.eq.f32.partialorder %v28_v13, 8.507059e+37 }
  0xfd   :  { %v42_v8 = vpop.eup %41 }
  0xfe   :  { %v20_v9 = vmul.f32 %v42_v8, %v18_v7  ;;  %vm25_vm1 = vweird.f32 %v42_v8 }
  0xff   :  { %vm26_vm3 = vmor %vm24_vm2, %vm25_vm1 }
 0x100   :  { %v21_v10 = vsub.f32 1.0, %v20_v9 }
 0x102   :  { %v22_v12 = vmul.f32 %v42_v8, %v21_v10 }
 0x104   :  { %v23_v14 = vadd.f32 %v42_v8, %v22_v12 }
 0x106   :  { %v27_v16 = vsel %vm26_vm3, %v42_v8, %v23_v14 }
 0x107   :  { %v32_v17 = vsel %vm29_vm4, %v31_v15, %v27_v16 }
 0x108   :  { %v33_v18 = vmul.f32 %v40_v5, %v32_v17 }
 0x10a   :  { %34 = vst.msk [vmem:[%s63_s1] sm:$0x1f] %vm9_vm0, %v33_v18 }

// kernel: _lambda_.355
= control target key start
LH: loop header
LB: loop body
LE: loop exit
PB: predicated region body
PF: predicated region fallthrough
CT: control target
= control target key end

     0   :  { %vm14_vm0 = vcmask 7168   ;;  %vm35_vm1 = vcmask 1043456   ;;  %v88_v3 = vmov 0.0   ;;  %vm16_vm2 = vcmask 3072   ;;  %s180_s0 = inlined_call_operand.vmem [shape: f32[12,512], index: 0, kind: input, shape index: {}]   ;;  %s181_s2 = inlined_call_operand.vmem [shape: f32[12,1], index: 2, kind: output, shape index: {1}]   ;;  %s182_s1 = inlined_call_operand.vmem [shape: f32[12,1], index: 1, kind: output, shape index: {0}]  }
   0x1   :  { %v20_v0 = vld [vmem:[%s180_s0] sm:$0xff]  ;;  %v21_v1 = vld [vmem:[%s180_s0 + $0x8] sm:$0xff]  ;;  %v22_v2 = vld [vmem:[%s180_s0 + $0x10] sm:$0xff]  ;;  %18 = vst.msk [vmem:[%s181_s2] sm:$0xff] %vm14_vm0, %v88_v3 }
   0x2   :  { %v23_v4 = vld [vmem:[%s180_s0 + $0x18] sm:$0xff]  ;;  %v53_v5 = vmul.f32 %v20_v0, %v20_v0  ;;  %v54_v6 = vmul.f32 %v21_v1, %v21_v1  ;;  %v55_v7 = vmul.f32 %v22_v2, %v22_v2  ;;  %v30_v8 = vadd.f32 %v21_v1, %v20_v0  ;;  %v24_v9 = vld [vmem:[%s180_s0 + $0x20] sm:$0xf]  ;;  %v25_v10 = vld [vmem:[%s180_s0 + $0x28] sm:$0xf]  ;;  %15 = vst.msk [vmem:[%s182_s1] sm:$0xff] %vm14_vm0, %v88_v3 }
   0x3   :  { %v56_v11 = vmul.f32 %v23_v4, %v23_v4  ;;  %v26_v12 = vld [vmem:[%s180_s0 + $0x30] sm:$0xf]  ;;  %v57_v13 = vmul.f32 %v24_v9, %v24_v9  ;;  %v58_v14 = vmul.f32 %v25_v10, %v25_v10  ;;  %v27_v17 = vld [vmem:[%s180_s0 + $0x38] sm:$0xf]  ;;  %v36_v19 = vsel %vm35_vm1, %v24_v9, 0.0 }
   0x4   :  { %v61_v15 = vadd.f32 %v54_v6, %v53_v5  ;;  %v31_v16 = vadd.f32 %v30_v8, %v22_v2  ;;  %v59_v18 = vmul.f32 %v26_v12, %v26_v12  ;;  %v37_v22 = vsel %vm35_vm1, %v25_v10, 0.0  ;;  %19 = vst.msk [vmem:[%s181_s2 + $0x8] sm:$0xf] %vm16_vm2, %v88_v3 }
   0x5   :  { %v66_v20 = vsel %vm35_vm1, %v57_v13, 0.0  ;;  %v67_v21 = vsel %vm35_vm1, %v58_v14, 0.0  ;;  %v39_v26 = vsel %vm35_vm1, %v26_v12, 0.0  ;;  %v60_v27 = vmul.f32 %v27_v17, %v27_v17  ;;  %17 = vst.msk [vmem:[%s182_s1 + $0x8] sm:$0xf] %vm16_vm2, %v88_v3 }
   0x6   :  { %v62_v23 = vadd.f32 %v61_v15, %v55_v7  ;;  %v32_v24 = vadd.f32 %v31_v16, %v23_v4  ;;  %v68_v25 = vadd.f32 %v67_v21, %v66_v20  ;;  %v69_v28 = vsel %vm35_vm1, %v59_v18, 0.0 }
   0x7   :  { %v38_v29 = vadd.f32 %v37_v22, %v36_v19  ;;  %v41_v32 = vsel %vm35_vm1, %v27_v17, 0.0  ;;  %v71_v34 = vsel %vm35_vm1, %v60_v27, 0.0 }
   0x8   :  { %v63_v30 = vadd.f32 %v62_v23, %v56_v11  ;;  %33 = vadd.xlane.f32.xlu0 %v32_v24  ;;  %v70_v33 = vadd.f32 %v69_v28, %v68_v25  ;;  %v51_v38 = vld [vmem:[%s181_s2] sm:$0xff] }
   0x9   :  { %v40_v31 = vadd.f32 %v39_v26, %v38_v29  ;;  %v28_v37 = vld [vmem:[%s182_s1] sm:$0xff] }
   0xa   :  { %64 = vadd.xlane.f32.xlu1 %v63_v30  ;;  %v72_v36 = vadd.f32 %v71_v34, %v70_v33 }
   0xb   :  { %v42_v35 = vadd.f32 %v41_v32, %v40_v31  ;;  %v52_v44 = vld [vmem:[%s181_s2 + $0x8] sm:$0xf] }
   0xc   :  { %v29_v43 = vld [vmem:[%s182_s1 + $0x8] sm:$0xf] }
  0x10   :  { %43 = vadd.xlane.f32.xlu0 %v42_v35 }
  0x12   :  { %73 = vadd.xlane.f32.xlu1 %v72_v36 }
  0x7b   :  { %v34_v39 = vpop.xlane.xlu0 %33 }
  0x7c   :  { %v45_v40 = vadd.f32 %v34_v39, %v28_v37 }
  0x7d   :  { %v65_v41 = vpop.xlane.xlu1 %64 }
  0x7e   :  { %v75_v42 = vadd.f32 %v65_v41, %v51_v38  ;;  %48 = vst.msk [vmem:[%s182_s1] sm:$0xff] %vm14_vm0, %v45_v40 }
  0x80   :  { %77 = vst.msk [vmem:[%s181_s2] sm:$0xff] %vm14_vm0, %v75_v42 }
  0x83   :  { %v44_v45 = vpop.xlane.xlu0 %43 }
  0x84   :  { %v46_v46 = vadd.f32 %v44_v45, %v29_v43 }
  0x85   :  { %v74_v47 = vpop.xlane.xlu1 %73 }
  0x86   :  { %v76_v48 = vadd.f32 %v74_v47, %v52_v44  ;;  %50 = vst.msk [vmem:[%s182_s1 + $0x8] sm:$0xf] %vm16_vm2, %v46_v46 }
  0x88   :  { %78 = vst.msk [vmem:[%s181_s2 + $0x8] sm:$0xf] %vm16_vm2, %v76_v48 }

// kernel: _lambda_.354
= control target key start
LH: loop header
LB: loop body
LE: loop exit
PB: predicated region body
PF: predicated region fallthrough
CT: control target
= control target key end

     0   :  { %s768_s9 = smov 0   ;;  %s770_s10 = smov 0   ;;  %s882_s0 = inlined_call_operand.vmem [shape: bf16[512,27], index: 0, kind: input, shape index: {}]   ;;  %s883_s1 = inlined_call_operand.vmem [shape: bf16[27,128], index: 1, kind: input, shape index: {}]   ;;  %s884_s2 = inlined_call_operand.vmem [shape: f32[512,128], index: 2, kind: output, shape index: {}]  }
   0x1   :  { %s772_s11 = smov 0  }
   0x2 LB: > { %s24_s12 = sadd.s32 1, %s746_s10  ;;  %p584_p0 = scmp.ge.s32.totalorder %s750_s11, 1  ;;  %s750_s11 = sphi %s772_s11, %s12_s11   ;;  %s746_s10 = sphi %s770_s10, %s886_s10   ;;  %s742_s9 = sphi %s768_s9, %s885_s9  }
   0x3   : > { %p26_p1 = scmp.ge.s32.totalorder %s24_s12, 2  ;;  %p136_p2 = scmp.lt.s32.totalorder %s750_s11, 3 }
   0x5   : > { %s888_s12 = smov (%p26_p1, %s24_s12), 0  ;;  %p137_p3 = pnand %p584_p0, %p136_p2 }
   0x6   : > { %s585_s17 = sshll.u32 (!%p137_p3), %s742_s9, 5 }
   0x7   : > { %140 = sbr.rel (%p137_p3) target bundleno = 216 (0xd8), region = 28  ;;  %p166_p4 = scmp.lt.s32.totalorder (!%p137_p3), %s585_s17, 63 }
   0xc   : > { %v659_v0 = vld [vmem:[%s883_s1 + $0x8] sm:$0xf]  ;;  %v696_v1 = vld [vmem:[%s883_s1 + $0x8] sm:$0x30]  ;;  %vm361_vm0 = vcmask 1044480   ;;  %vm362_vm1 = vcmask 1045504  }
   0xd   : > { %v660_v2 = vor.u32 %v696_v1, %v659_v0  ;;  %v752_v3 = vmov 65535   ;;  %s890_s17 = smov (!%p166_p4, %s585_s17), 63  ;;  %v695_v7 = vld [vmem:[%s883_s1] sm:$0xff]  ;;  %vm312_vm2 = vcmask 220160  }
   0xe   : > { %v363_v4 = vsel %vm361_vm0, 4294967295, %v752_v3  ;;  %s586_s20 = sshll.u32 %s890_s17, 2  ;;  %s588_s24 = sshll.u32 %s890_s17, 3 }
   0xf   : > { %v364_v5 = vsel %vm362_vm1, %v363_v4, 0  ;;  %s801_s23 = scalar_lea.vmem %s882_s0, %s586_s20  ;;  %s839_s27 = scalar_lea.vmem %s884_s2, %s588_s24 }
  0x10   : > { %v366_v6 = vand.u32 %v660_v2, %v364_v5  ;;  %v679_v8 = vld [vmem:[%s801_s23] sm:$0xff]  ;;  %v680_v12 = vld [vmem:[%s801_s23 + $0x8] sm:$0xff]  ;;  %v681_v16 = vld [vmem:[%s801_s23 + $0x10] sm:$0xff] }
  0x11   : > { %v683_v9 = vld [vmem:[%s801_s23 + $0x20] sm:$0xff]  ;;  %v684_v13 = vld [vmem:[%s801_s23 + $0x28] sm:$0xff]  ;;  %v685_v17 = vld [vmem:[%s801_s23 + $0x30] sm:$0xff] }
  0x12   : > { %374 = vmatpush.bf16.msra.mxu0 %v366_v6  ;;  %697 = vmatpush.bf16.msra.mxu1 %v366_v6  ;;  %v687_v10 = vld [vmem:[%s801_s23 + $0x40] sm:$0xff]  ;;  %v688_v14 = vld [vmem:[%s801_s23 + $0x48] sm:$0xff]  ;;  %v689_v18 = vld [vmem:[%s801_s23 + $0x50] sm:$0xff] }
  0x13   : > { %698 = vmatpush.bf16.msra.mxu2 %v366_v6  ;;  %699 = vmatpush.bf16.msra.mxu3 %v366_v6  ;;  %v691_v11 = vld [vmem:[%s801_s23 + $0x60] sm:$0xff]  ;;  %v692_v15 = vld [vmem:[%s801_s23 + $0x68] sm:$0xff]  ;;  %v693_v19 = vld [vmem:[%s801_s23 + $0x70] sm:$0xff] }
  0x14   : > { %v682_v20 = vld [vmem:[%s801_s23 + $0x18] sm:$0xff] }
  0x15   : > { %v686_v21 = vld [vmem:[%s801_s23 + $0x38] sm:$0xff] }
  0x16   : > { %375 = vmatpush.bf16.msra.mxu0 %v695_v7  ;;  %700 = vmatpush.bf16.msra.mxu1 %v695_v7  ;;  %v690_v22 = vld [vmem:[%s801_s23 + $0x58] sm:$0xff] }
  0x17   : > { %701 = vmatpush.bf16.msra.mxu2 %v695_v7  ;;  %702 = vmatpush.bf16.msra.mxu3 %v695_v7  ;;  %v694_v23 = vld [vmem:[%s801_s23 + $0x78] sm:$0xff] }
  0x19   : > { %661 = vmatmul.msk.bf16.vlgmr.msra.gmra.mxu0 %vm312_vm2, %v679_v8  ;;  %665 = vmatmul.msk.bf16.vlgmr.msra.gmra.mxu1 %vm312_vm2, %v683_v9 }
  0x1a   : > { %669 = vmatmul.msk.bf16.vlgmr.msra.gmra.mxu2 %vm312_vm2, %v687_v10  ;;  %673 = vmatmul.msk.bf16.vlgmr.msra.gmra.mxu3 %vm312_vm2, %v691_v11 }
  0x29   : > { %662 = vmatmul.msk.bf16.gmra.mxu0 %vm312_vm2, %v680_v12  ;;  %666 = vmatmul.msk.bf16.gmra.mxu1 %vm312_vm2, %v684_v13 }
  0x2a   : > { %670 = vmatmul.msk.bf16.gmra.mxu2 %vm312_vm2, %v688_v14  ;;  %674 = vmatmul.msk.bf16.gmra.mxu3 %vm312_vm2, %v692_v15 }
  0x39   : > { %663 = vmatmul.msk.bf16.gmra.mxu0 %vm312_vm2, %v681_v16  ;;  %667 = vmatmul.msk.bf16.gmra.mxu1 %vm312_vm2, %v685_v17 }
  0x3a   : > { %671 = vmatmul.msk.bf16.gmra.mxu2 %vm312_vm2, %v689_v18  ;;  %675 = vmatmul.msk.bf16.gmra.mxu3 %vm312_vm2, %v693_v19 }
  0x49   : > { %664 = vmatmul.msk.bf16.gmra.mxu0 %vm312_vm2, %v682_v20  ;;  %668 = vmatmul.msk.bf16.gmra.mxu1 %vm312_vm2, %v686_v21 }
  0x4a   : > { %672 = vmatmul.msk.bf16.gmra.mxu2 %vm312_vm2, %v690_v22  ;;  %676 = vmatmul.msk.bf16.gmra.mxu3 %vm312_vm2, %v694_v23 }
  0x96   : > { %v377_v24 = vpop.f32.mrf.mxu0  ;;  %v397_v25 = vpop.f32.mrf.mxu1 }
  0x97   : > { %457 = vst [vmem:[%s839_s27] sm:$0xff] %v377_v24 }
  0x98   : > { %465 = vst [vmem:[%s839_s27 + $0x40] sm:$0xff] %v397_v25 }
  0x9d   : > { %v417_v26 = vpop.f32.mrf.mxu2  ;;  %v437_v27 = vpop.f32.mrf.mxu3 }
  0x9e   : > { %473 = vst [vmem:[%s839_s27 + $0x80] sm:$0xff] %v417_v26  ;;  %v379_v28 = vpop.f32.mrf.mxu0  ;;  %v399_v29 = vpop.f32.mrf.mxu1 }
  0x9f   : > { %481 = vst [vmem:[%s839_s27 + $0xc0] sm:$0xff] %v437_v27 }
  0xa0   : > { %458 = vst [vmem:[%s839_s27 + $0x8] sm:$0xff] %v379_v28 }
  0xa1   : > { %466 = vst [vmem:[%s839_s27 + $0x48] sm:$0xff] %v399_v29 }
  0xa5   : > { %v419_v30 = vpop.f32.mrf.mxu2  ;;  %v439_v31 = vpop.f32.mrf.mxu3 }
  0xa6   : > { %474 = vst [vmem:[%s839_s27 + $0x88] sm:$0xff] %v419_v30  ;;  %v382_v32 = vpop.f32.mrf.mxu0  ;;  %v402_v33 = vpop.f32.mrf.mxu1 }
  0xa7   : > { %482 = vst [vmem:[%s839_s27 + $0xc8] sm:$0xff] %v439_v31 }
  0xa8   : > { %459 = vst [vmem:[%s839_s27 + $0x10] sm:$0xff] %v382_v32 }
  0xa9   : > { %467 = vst [vmem:[%s839_s27 + $0x50] sm:$0xff] %v402_v33 }
  0xad   : > { %v422_v34 = vpop.f32.mrf.mxu2  ;;  %v442_v35 = vpop.f32.mrf.mxu3 }
  0xae   : > { %475 = vst [vmem:[%s839_s27 + $0x90] sm:$0xff] %v422_v34  ;;  %v384_v36 = vpop.f32.mrf.mxu0  ;;  %v404_v37 = vpop.f32.mrf.mxu1 }
  0xaf   : > { %483 = vst [vmem:[%s839_s27 + $0xd0] sm:$0xff] %v442_v35 }
  0xb0   : > { %460 = vst [vmem:[%s839_s27 + $0x18] sm:$0xff] %v384_v36 }
  0xb1   : > { %468 = vst [vmem:[%s839_s27 + $0x58] sm:$0xff] %v404_v37 }
  0xb5   : > { %v424_v38 = vpop.f32.mrf.mxu2  ;;  %v444_v39 = vpop.f32.mrf.mxu3 }
  0xb6   : > { %476 = vst [vmem:[%s839_s27 + $0x98] sm:$0xff] %v424_v38  ;;  %v387_v40 = vpop.f32.mrf.mxu0  ;;  %v407_v41 = vpop.f32.mrf.mxu1 }
  0xb7   : > { %484 = vst [vmem:[%s839_s27 + $0xd8] sm:$0xff] %v444_v39 }
  0xb8   : > { %461 = vst [vmem:[%s839_s27 + $0x20] sm:$0xff] %v387_v40 }
  0xb9   : > { %469 = vst [vmem:[%s839_s27 + $0x60] sm:$0xff] %v407_v41 }
  0xbd   : > { %v427_v42 = vpop.f32.mrf.mxu2  ;;  %v447_v43 = vpop.f32.mrf.mxu3 }
  0xbe   : > { %477 = vst [vmem:[%s839_s27 + $0xa0] sm:$0xff] %v427_v42  ;;  %v389_v44 = vpop.f32.mrf.mxu0  ;;  %v409_v45 = vpop.f32.mrf.mxu1 }
  0xbf   : > { %485 = vst [vmem:[%s839_s27 + $0xe0] sm:$0xff] %v447_v43 }
  0xc0   : > { %462 = vst [vmem:[%s839_s27 + $0x28] sm:$0xff] %v389_v44 }
  0xc1   : > { %470 = vst [vmem:[%s839_s27 + $0x68] sm:$0xff] %v409_v45 }
  0xc5   : > { %v429_v46 = vpop.f32.mrf.mxu2  ;;  %v449_v47 = vpop.f32.mrf.mxu3 }
  0xc6   : > { %478 = vst [vmem:[%s839_s27 + $0xa8] sm:$0xff] %v429_v46  ;;  %v392_v48 = vpop.f32.mrf.mxu0  ;;  %v412_v49 = vpop.f32.mrf.mxu1 }
  0xc7   : > { %486 = vst [vmem:[%s839_s27 + $0xe8] sm:$0xff] %v449_v47 }
  0xc8   : > { %463 = vst [vmem:[%s839_s27 + $0x30] sm:$0xff] %v392_v48 }
  0xc9   : > { %471 = vst [vmem:[%s839_s27 + $0x70] sm:$0xff] %v412_v49 }
  0xcd   : > { %v432_v50 = vpop.f32.mrf.mxu2  ;;  %v452_v51 = vpop.f32.mrf.mxu3 }
  0xce   : > { %479 = vst [vmem:[%s839_s27 + $0xb0] sm:$0xff] %v432_v50  ;;  %v394_v52 = vpop.f32.mrf.mxu0  ;;  %v414_v53 = vpop.f32.mrf.mxu1 }
  0xcf   : > { %487 = vst [vmem:[%s839_s27 + $0xf0] sm:$0xff] %v452_v51 }
  0xd0   : > { %464 = vst [vmem:[%s839_s27 + $0x38] sm:$0xff] %v394_v52 }
  0xd1   : > { %472 = vst [vmem:[%s839_s27 + $0x78] sm:$0xff] %v414_v53 }
  0xd5   : > { %v434_v54 = vpop.f32.mrf.mxu2  ;;  %v454_v55 = vpop.f32.mrf.mxu3 }
  0xd6   : > { %480 = vst [vmem:[%s839_s27 + $0xb8] sm:$0xff] %v434_v54 }
  0xd7   : > { %488 = vst [vmem:[%s839_s27 + $0xf8] sm:$0xff] %v454_v55 }
  0xd8 PF: > { %s12_s11 = sadd.s32 1, %s750_s11   ;;  %s885_s9 = smov %s746_s10 }
  0xd9   : > { %p9_p5 = scmp.ge.s32.totalorder %s12_s11, 4   ;;  %s886_s10 = smov %s888_s12 }
  0xdb   :  { %11 = sbr.rel (!%p9_p5) target bundleno = 2 (0x2), region = 61 }

// kernel: _lambda_.356
= control target key start
LH: loop header
LB: loop body
LE: loop exit
PB: predicated region body
PF: predicated region fallthrough
CT: control target
= control target key end

     0   :  { %v77_v0 = vmov 0   ;;  %s158_s2 = inlined_call_operand.vmem [shape: f32[12,1], index: 2, kind: input, shape index: {}]   ;;  %s159_s1 = inlined_call_operand.vmem [shape: f32[12,1], index: 1, kind: input, shape index: {}]   ;;  %s160_s0 = inlined_call_operand.vmem [shape: f32[12,512], index: 0, kind: input, shape index: {}]   ;;  %s161_s3 = inlined_call_operand.vmem [shape: f32[12,512], index: 3, kind: output, shape index: {}]  }
   0x1   :  { %76 = vset.pattern.permute.xlu1 %v77_v0  ;;  %75 = vset.pattern.permute.xlu0 %v77_v0  ;;  %v42_v1 = vld [vmem:[%s158_s2] sm:$0xff]  ;;  %v43_v3 = vld [vmem:[%s158_s2 + $0x8] sm:$0xf]  ;;  %v16_v7 = vld [vmem:[%s160_s0 + $0x10] sm:$0xff] }
   0x2   :  { %v22_v2 = vld [vmem:[%s159_s1] sm:$0xff]  ;;  %46 = vperm.xlu1 %76, %v42_v1   ;;  %v23_v4 = vld [vmem:[%s159_s1 + $0x8] sm:$0xf]  ;;  %v17_v8 = vld [vmem:[%s160_s0 + $0x18] sm:$0xff] }
   0x3   :  { %26 = vperm.xlu0 %75, %v22_v2   ;;  %v14_v5 = vld [vmem:[%s160_s0] sm:$0xff]  ;;  %v15_v6 = vld [vmem:[%s160_s0 + $0x8] sm:$0xff]  ;;  %v20_v21 = vld [vmem:[%s160_s0 + $0x30] sm:$0xf] }
   0x4   :  { %v18_v19 = vld [vmem:[%s160_s0 + $0x20] sm:$0xf]  ;;  %v19_v20 = vld [vmem:[%s160_s0 + $0x28] sm:$0xf]  ;;  %v21_v22 = vld [vmem:[%s160_s0 + $0x38] sm:$0xf] }
   0xa   :  { %51 = vperm.xlu1 %76, %v43_v3  }
   0xb   :  { %31 = vperm.xlu0 %75, %v23_v4  }
  0x74   :  { %v47_v9 = vpop.permute.xlu1 %46 }
  0x75   :  { %v27_v10 = vpop.permute.xlu0 %26 }
  0x76   :  { %v34_v11 = vsub.f32 %v14_v5, %v27_v10  ;;  %v35_v12 = vsub.f32 %v15_v6, %v27_v10  ;;  %v36_v13 = vsub.f32 %v16_v7, %v27_v10  ;;  %v37_v14 = vsub.f32 %v17_v8, %v27_v10 }
  0x78   :  { %v54_v15 = vmul.f32 %v47_v9, %v34_v11  ;;  %v55_v16 = vmul.f32 %v47_v9, %v35_v12  ;;  %v56_v17 = vmul.f32 %v47_v9, %v36_v13  ;;  %v57_v18 = vmul.f32 %v47_v9, %v37_v14 }
  0x7a   :  { %62 = vst [vmem:[%s161_s3] sm:$0xff] %v54_v15 }
  0x7b   :  { %63 = vst [vmem:[%s161_s3 + $0x8] sm:$0xff] %v55_v16 }
  0x7c   :  { %64 = vst [vmem:[%s161_s3 + $0x10] sm:$0xff] %v56_v17  ;;  %v52_v28 = vpop.permute.xlu1 %51 }
  0x7d   :  { %65 = vst [vmem:[%s161_s3 + $0x18] sm:$0xff] %v57_v18  ;;  %v32_v23 = vpop.permute.xlu0 %31 }
  0x7e   :  { %v38_v24 = vsub.f32 %v18_v19, %v32_v23  ;;  %v39_v25 = vsub.f32 %v19_v20, %v32_v23  ;;  %v40_v26 = vsub.f32 %v20_v21, %v32_v23  ;;  %v41_v27 = vsub.f32 %v21_v22, %v32_v23 }
  0x80   :  { %v58_v29 = vmul.f32 %v52_v28, %v38_v24  ;;  %v59_v30 = vmul.f32 %v52_v28, %v39_v25  ;;  %v60_v31 = vmul.f32 %v52_v28, %v40_v26  ;;  %v61_v32 = vmul.f32 %v52_v28, %v41_v27 }
  0x82   :  { %66 = vst [vmem:[%s161_s3 + $0x20] sm:$0xf] %v58_v29 }
  0x83   :  { %67 = vst [vmem:[%s161_s3 + $0x28] sm:$0xf] %v59_v30 }
  0x84   :  { %68 = vst [vmem:[%s161_s3 + $0x30] sm:$0xf] %v60_v31 }
  0x85   :  { %69 = vst [vmem:[%s161_s3 + $0x38] sm:$0xf] %v61_v32 }

// kernel: _lambda_.521
= control target key start
LH: loop header
LB: loop body
LE: loop exit
PB: predicated region body
PF: predicated region fallthrough
CT: control target
= control target key end

     0   :  { %vm100_vm0 = vcmask 1045504   ;;  %vm75_vm1 = vcmask 97280   ;;  %s330_s1 = inlined_call_operand.vmem [shape: bf16[12,128], index: 1, kind: input, shape index: {}]   ;;  %s331_s0 = inlined_call_operand.vmem [shape: bf16[128,12], index: 0, kind: input, shape index: {}]   ;;  %s332_s2 = inlined_call_operand.vmem [shape: f32[128,128], index: 2, kind: output, shape index: {}]  }
   0x1   :  { %v207_v0 = vld [vmem:[%s330_s1] sm:$0xf]  ;;  %v225_v1 = vld [vmem:[%s330_s1] sm:$0x30]  ;;  %v219_v5 = vld [vmem:[%s331_s0 + $0x10] sm:$0xff] }
   0x2   :  { %v208_v2 = vor.u32 %v225_v1, %v207_v0  ;;  %v217_v4 = vld [vmem:[%s331_s0] sm:$0xff]  ;;  %v223_v7 = vld [vmem:[%s331_s0 + $0x30] sm:$0xff]  ;;  %v218_v8 = vld [vmem:[%s331_s0 + $0x8] sm:$0xff] }
   0x3   :  { %v221_v6 = vld [vmem:[%s331_s0 + $0x20] sm:$0xff]  ;;  %v220_v9 = vld [vmem:[%s331_s0 + $0x18] sm:$0xff]  ;;  %v222_v10 = vld [vmem:[%s331_s0 + $0x28] sm:$0xff] }
   0x4   :  { %v102_v3 = vsel %vm100_vm0, %v208_v2, 0  ;;  %v224_v11 = vld [vmem:[%s331_s0 + $0x38] sm:$0xff] }
   0x5   :  { %111 = vmatpush.bf16.msra.mxu0 %v102_v3  ;;  %226 = vmatpush.bf16.msra.mxu1 %v102_v3 }
   0x6   :  { %227 = vmatpush.bf16.msra.mxu2 %v102_v3  ;;  %228 = vmatpush.bf16.msra.mxu3 %v102_v3 }
   0x8   :  { %209 = vmatmul.msk.bf16.vlgmr.msra.gmra.mxu0 %vm75_vm1, %v217_v4  ;;  %211 = vmatmul.msk.bf16.vlgmr.msra.gmra.mxu1 %vm75_vm1, %v219_v5 }
   0x9   :  { %213 = vmatmul.msk.bf16.vlgmr.msra.gmra.mxu2 %vm75_vm1, %v221_v6  ;;  %215 = vmatmul.msk.bf16.vlgmr.msra.gmra.mxu3 %vm75_vm1, %v223_v7 }
  0x18   :  { %210 = vmatmul.msk.bf16.gmra.mxu0 %vm75_vm1, %v218_v8  ;;  %212 = vmatmul.msk.bf16.gmra.mxu1 %vm75_vm1, %v220_v9 }
  0x19   :  { %214 = vmatmul.msk.bf16.gmra.mxu2 %vm75_vm1, %v222_v10  ;;  %216 = vmatmul.msk.bf16.gmra.mxu3 %vm75_vm1, %v224_v11 }
  0x85   :  { %v113_v12 = vpop.f32.mrf.mxu0  ;;  %v123_v13 = vpop.f32.mrf.mxu1 }
  0x86   :  { %153 = vst [vmem:[%s332_s2] sm:$0xff] %v113_v12 }
  0x87   :  { %157 = vst [vmem:[%s332_s2 + $0x20] sm:$0xff] %v123_v13 }
  0x8c   :  { %v133_v14 = vpop.f32.mrf.mxu2  ;;  %v143_v15 = vpop.f32.mrf.mxu3 }
  0x8d   :  { %161 = vst [vmem:[%s332_s2 + $0x40] sm:$0xff] %v133_v14  ;;  %v115_v16 = vpop.f32.mrf.mxu0  ;;  %v125_v17 = vpop.f32.mrf.mxu1 }
  0x8e   :  { %165 = vst [vmem:[%s332_s2 + $0x60] sm:$0xff] %v143_v15 }
  0x8f   :  { %154 = vst [vmem:[%s332_s2 + $0x8] sm:$0xff] %v115_v16 }
  0x90   :  { %158 = vst [vmem:[%s332_s2 + $0x28] sm:$0xff] %v125_v17 }
  0x94   :  { %v135_v18 = vpop.f32.mrf.mxu2  ;;  %v145_v19 = vpop.f32.mrf.mxu3 }
  0x95   :  { %162 = vst [vmem:[%s332_s2 + $0x48] sm:$0xff] %v135_v18  ;;  %v118_v20 = vpop.f32.mrf.mxu0  ;;  %v128_v21 = vpop.f32.mrf.mxu1 }
  0x96   :  { %166 = vst [vmem:[%s332_s2 + $0x68] sm:$0xff] %v145_v19 }
  0x97   :  { %155 = vst [vmem:[%s332_s2 + $0x10] sm:$0xff] %v118_v20 }
  0x98   :  { %159 = vst [vmem:[%s332_s2 + $0x30] sm:$0xff] %v128_v21 }
  0x9c   :  { %v138_v22 = vpop.f32.mrf.mxu2  ;;  %v148_v23 = vpop.f32.mrf.mxu3 }
  0x9d   :  { %163 = vst [vmem:[%s332_s2 + $0x50] sm:$0xff] %v138_v22  ;;  %v120_v24 = vpop.f32.mrf.mxu0  ;;  %v130_v25 = vpop.f32.mrf.mxu1 }
  0x9e   :  { %167 = vst [vmem:[%s332_s2 + $0x70] sm:$0xff] %v148_v23 }
  0x9f   :  { %156 = vst [vmem:[%s332_s2 + $0x18] sm:$0xff] %v120_v24 }
  0xa0   :  { %160 = vst [vmem:[%s332_s2 + $0x38] sm:$0xff] %v130_v25 }
  0xa4   :  { %v140_v26 = vpop.f32.mrf.mxu2  ;;  %v150_v27 = vpop.f32.mrf.mxu3 }
  0xa5   :  { %164 = vst [vmem:[%s332_s2 + $0x58] sm:$0xff] %v140_v26 }
  0xa6   :  { %168 = vst [vmem:[%s332_s2 + $0x78] sm:$0xff] %v150_v27 }

// kernel: _lambda_.523
= control target key start
LH: loop header
LB: loop body
LE: loop exit
PB: predicated region body
PF: predicated region fallthrough
CT: control target
= control target key end

     0   :  { %v53_v0 = vmov 0   ;;  %s98_s2 = inlined_call_operand.vmem [shape: f32[16,1], index: 2, kind: input, shape index: {}]   ;;  %s99_s1 = inlined_call_operand.vmem [shape: f32[16,1], index: 1, kind: input, shape index: {}]   ;;  %s100_s0 = inlined_call_operand.vmem [shape: f32[16,128], index: 0, kind: input, shape index: {}]   ;;  %s101_s3 = inlined_call_operand.vmem [shape: f32[16,128], index: 3, kind: output, shape index: {}]  }
   0x1   :  { %52 = vset.pattern.permute.xlu1 %v53_v0  ;;  %51 = vset.pattern.permute.xlu0 %v53_v0  ;;  %v30_v1 = vld [vmem:[%s98_s2] sm:$0xff]  ;;  %v31_v3 = vld [vmem:[%s98_s2 + $0x8] sm:$0xff] }
   0x2   :  { %v16_v2 = vld [vmem:[%s99_s1] sm:$0xff]  ;;  %34 = vperm.xlu1 %52, %v30_v1   ;;  %v17_v4 = vld [vmem:[%s99_s1 + $0x8] sm:$0xff] }
   0x3   :  { %20 = vperm.xlu0 %51, %v16_v2   ;;  %v14_v5 = vld [vmem:[%s100_s0] sm:$0xff]  ;;  %v15_v10 = vld [vmem:[%s100_s0 + $0x8] sm:$0xff] }
   0xa   :  { %39 = vperm.xlu1 %52, %v31_v3  }
   0xb   :  { %25 = vperm.xlu0 %51, %v17_v4  }
  0x74   :  { %v35_v6 = vpop.permute.xlu1 %34 }
  0x75   :  { %v21_v7 = vpop.permute.xlu0 %20 }
  0x76   :  { %v28_v8 = vsub.f32 %v14_v5, %v21_v7 }
  0x78   :  { %v42_v9 = vmul.f32 %v35_v6, %v28_v8 }
  0x7a   :  { %44 = vst [vmem:[%s101_s3] sm:$0xff] %v42_v9 }
  0x7c   :  { %v40_v13 = vpop.permute.xlu1 %39 }
  0x7d   :  { %v26_v11 = vpop.permute.xlu0 %25 }
  0x7e   :  { %v29_v12 = vsub.f32 %v15_v10, %v26_v11 }
  0x80   :  { %v43_v14 = vmul.f32 %v40_v13, %v29_v12 }
  0x82   :  { %45 = vst [vmem:[%s101_s3 + $0x8] sm:$0xff] %v43_v14 }

// kernel: _lambda_.522
= control target key start
LH: loop header
LB: loop body
LE: loop exit
PB: predicated region body
PF: predicated region fallthrough
CT: control target
= control target key end

     0   :  { %vm14_vm0 = vcmask 7168   ;;  %v53_v1 = vmov 0.0   ;;  %s119_s0 = inlined_call_operand.vmem [shape: f32[16,128], index: 0, kind: input, shape index: {}]   ;;  %s120_s1 = inlined_call_operand.vmem [shape: f32[16,1], index: 1, kind: output, shape index: {0}]   ;;  %s121_s2 = inlined_call_operand.vmem [shape: f32[16,1], index: 2, kind: output, shape index: {1}]  }
   0x1   :  { %v19_v0 = vld [vmem:[%s119_s0] sm:$0xff]  ;;  %15 = vst.msk [vmem:[%s120_s1] sm:$0xff] %vm14_vm0, %v53_v1  ;;  %v20_v3 = vld [vmem:[%s119_s0 + $0x8] sm:$0xff] }
   0x2   :  { %23 = vadd.xlane.f32.xlu0 %v19_v0  ;;  %v34_v2 = vmul.f32 %v19_v0, %v19_v0  ;;  %16 = vst.msk [vmem:[%s120_s1 + $0x8] sm:$0xff] %vm14_vm0, %v53_v1  ;;  %v35_v4 = vmul.f32 %v20_v3, %v20_v3 }
   0x3   :  { %17 = vst.msk [vmem:[%s121_s2] sm:$0xff] %vm14_vm0, %v53_v1 }
   0x4   :  { %36 = vadd.xlane.f32.xlu1 %v34_v2  ;;  %18 = vst.msk [vmem:[%s121_s2 + $0x8] sm:$0xff] %vm14_vm0, %v53_v1 }
   0x8   :  { %v21_v5 = vld [vmem:[%s120_s1] sm:$0xff] }
   0x9   :  { %v22_v11 = vld [vmem:[%s120_s1 + $0x8] sm:$0xff] }
   0xa   :  { %25 = vadd.xlane.f32.xlu0 %v20_v3  ;;  %v32_v7 = vld [vmem:[%s121_s2] sm:$0xff] }
   0xb   :  { %v33_v13 = vld [vmem:[%s121_s2 + $0x8] sm:$0xff] }
   0xc   :  { %38 = vadd.xlane.f32.xlu1 %v35_v4 }
  0x75   :  { %v24_v6 = vpop.xlane.xlu0 %23 }
  0x76   :  { %v27_v8 = vadd.f32 %v24_v6, %v21_v5 }
  0x77   :  { %v37_v9 = vpop.xlane.xlu1 %36 }
  0x78   :  { %30 = vst.msk [vmem:[%s120_s1] sm:$0xff] %vm14_vm0, %v27_v8  ;;  %v40_v10 = vadd.f32 %v37_v9, %v32_v7 }
  0x7a   :  { %42 = vst.msk [vmem:[%s121_s2] sm:$0xff] %vm14_vm0, %v40_v10 }
  0x7d   :  { %v26_v12 = vpop.xlane.xlu0 %25 }
  0x7e   :  { %v28_v14 = vadd.f32 %v26_v12, %v22_v11 }
  0x7f   :  { %v39_v15 = vpop.xlane.xlu1 %38 }
  0x80   :  { %31 = vst.msk [vmem:[%s120_s1 + $0x8] sm:$0xff] %vm14_vm0, %v28_v14  ;;  %v41_v16 = vadd.f32 %v39_v15, %v33_v13 }
  0x82   :  { %43 = vst.msk [vmem:[%s121_s2 + $0x8] sm:$0xff] %vm14_vm0, %v41_v16 }

// kernel: _lambda_.527
= control target key start
LH: loop header
LB: loop body
LE: loop exit
PB: predicated region body
PF: predicated region fallthrough
CT: control target
= control target key end

     0   :  { %s214_s0 = inlined_call_operand.vmem [shape: f32[9,32,128], index: 0, kind: input, shape index: {}]   ;;  %s215_s1 = inlined_call_operand.vmem [shape: f32[32,128], index: 1, kind: output, shape index: {}]  }
   0x1   :  { %v8_v0 = vld [vmem:[%s214_s0] sm:$0xff]  ;;  %v9_v6 = vld [vmem:[%s214_s0 + $0x8] sm:$0xff]  ;;  %v10_v15 = vld [vmem:[%s214_s0 + $0x10] sm:$0xff] }
   0x2   :  { %v12_v1 = vld [vmem:[%s214_s0 + $0x20] sm:$0xff]  ;;  %v13_v7 = vld [vmem:[%s214_s0 + $0x28] sm:$0xff]  ;;  %v14_v16 = vld [vmem:[%s214_s0 + $0x30] sm:$0xff] }
   0x3   :  { %v16_v2 = vld [vmem:[%s214_s0 + $0x40] sm:$0xff]  ;;  %v44_v3 = vmax.f32 %v8_v0, %v12_v1  ;;  %v17_v8 = vld [vmem:[%s214_s0 + $0x48] sm:$0xff]  ;;  %v45_v10 = vmax.f32 %v9_v6, %v13_v7  ;;  %v18_v17 = vld [vmem:[%s214_s0 + $0x50] sm:$0xff]  ;;  %v46_v20 = vmax.f32 %v10_v15, %v14_v16 }
   0x4   :  { %v20_v4 = vld [vmem:[%s214_s0 + $0x60] sm:$0xff]  ;;  %v21_v13 = vld [vmem:[%s214_s0 + $0x68] sm:$0xff]  ;;  %v22_v24 = vld [vmem:[%s214_s0 + $0x70] sm:$0xff] }
   0x5   :  { %v48_v5 = vmax.f32 %v44_v3, %v16_v2  ;;  %v24_v9 = vld [vmem:[%s214_s0 + $0x80] sm:$0xff]  ;;  %v49_v14 = vmax.f32 %v45_v10, %v17_v8  ;;  %v25_v19 = vld [vmem:[%s214_s0 + $0x88] sm:$0xff]  ;;  %v50_v26 = vmax.f32 %v46_v20, %v18_v17  ;;  %v11_v27 = vld [vmem:[%s214_s0 + $0x18] sm:$0xff] }
   0x6   :  { %v28_v11 = vld [vmem:[%s214_s0 + $0xa0] sm:$0xff]  ;;  %v29_v22 = vld [vmem:[%s214_s0 + $0xa8] sm:$0xff]  ;;  %v15_v28 = vld [vmem:[%s214_s0 + $0x38] sm:$0xff] }
   0x7   :  { %v52_v12 = vmax.f32 %v48_v5, %v20_v4  ;;  %v32_v21 = vld [vmem:[%s214_s0 + $0xc0] sm:$0xff]  ;;  %v53_v23 = vmax.f32 %v49_v14, %v21_v13  ;;  %v19_v29 = vld [vmem:[%s214_s0 + $0x58] sm:$0xff]  ;;  %v26_v32 = vld [vmem:[%s214_s0 + $0x90] sm:$0xff]  ;;  %v47_v33 = vmax.f32 %v11_v27, %v15_v28  ;;  %v54_v36 = vmax.f32 %v50_v26, %v22_v24 }
   0x8   :  { %v36_v30 = vld [vmem:[%s214_s0 + $0xe0] sm:$0xff]  ;;  %v33_v35 = vld [vmem:[%s214_s0 + $0xc8] sm:$0xff]  ;;  %v23_v37 = vld [vmem:[%s214_s0 + $0x78] sm:$0xff] }
   0x9   :  { %v56_v18 = vmax.f32 %v52_v12, %v24_v9  ;;  %v57_v31 = vmax.f32 %v53_v23, %v25_v19  ;;  %v40_v38 = vld [vmem:[%s214_s0 + $0x100] sm:$0xff]  ;;  %v30_v40 = vld [vmem:[%s214_s0 + $0xb0] sm:$0xff]  ;;  %v51_v41 = vmax.f32 %v47_v33, %v19_v29  ;;  %v37_v43 = vld [vmem:[%s214_s0 + $0xe8] sm:$0xff]  ;;  %v58_v44 = vmax.f32 %v54_v36, %v26_v32 }
   0xa   :  { %v27_v45 = vld [vmem:[%s214_s0 + $0x98] sm:$0xff]  ;;  %v34_v47 = vld [vmem:[%s214_s0 + $0xd0] sm:$0xff]  ;;  %v41_v50 = vld [vmem:[%s214_s0 + $0x108] sm:$0xff] }
   0xb   :  { %v60_v25 = vmax.f32 %v56_v18, %v28_v11  ;;  %v61_v39 = vmax.f32 %v57_v31, %v29_v22  ;;  %v55_v48 = vmax.f32 %v51_v41, %v23_v37  ;;  %v62_v51 = vmax.f32 %v58_v44, %v30_v40  ;;  %v31_v52 = vld [vmem:[%s214_s0 + $0xb8] sm:$0xff]  ;;  %v38_v54 = vld [vmem:[%s214_s0 + $0xf0] sm:$0xff] }
   0xc   :  { %v35_v57 = vld [vmem:[%s214_s0 + $0xd8] sm:$0xff]  ;;  %v42_v59 = vld [vmem:[%s214_s0 + $0x110] sm:$0xff] }
   0xd   :  { %v64_v34 = vmax.f32 %v60_v25, %v32_v21  ;;  %v65_v46 = vmax.f32 %v61_v39, %v33_v35  ;;  %v59_v55 = vmax.f32 %v55_v48, %v27_v45  ;;  %v66_v56 = vmax.f32 %v62_v51, %v34_v47  ;;  %v39_v62 = vld [vmem:[%s214_s0 + $0xf8] sm:$0xff] }
   0xe   :  { %v43_v1 = vld [vmem:[%s214_s0 + $0x118] sm:$0xff] }
   0xf   :  { %v68_v42 = vmax.f32 %v64_v34, %v36_v30  ;;  %v69_v53 = vmax.f32 %v65_v46, %v37_v43  ;;  %v63_v60 = vmax.f32 %v59_v55, %v31_v52  ;;  %v70_v61 = vmax.f32 %v66_v56, %v38_v54 }
  0x11   :  { %v72_v49 = vmax.f32 %v68_v42, %v40_v38  ;;  %v73_v58 = vmax.f32 %v69_v53, %v41_v50  ;;  %v67_v63 = vmax.f32 %v63_v60, %v35_v57  ;;  %v74_v0 = vmax.f32 %v70_v61, %v42_v59 }
  0x13   :  { %76 = vst [vmem:[%s215_s1] sm:$0xff] %v72_v49  ;;  %v71_v2 = vmax.f32 %v67_v63, %v39_v62 }
  0x14   :  { %77 = vst [vmem:[%s215_s1 + $0x8] sm:$0xff] %v73_v58 }
  0x15   :  { %78 = vst [vmem:[%s215_s1 + $0x10] sm:$0xff] %v74_v0  ;;  %v75_v3 = vmax.f32 %v71_v2, %v43_v1 }
  0x17   :  { %79 = vst [vmem:[%s215_s1 + $0x18] sm:$0xff] %v75_v3 }

// kernel: _lambda_.530
= control target key start
LH: loop header
LB: loop body
LE: loop exit
PB: predicated region body
PF: predicated region fallthrough
CT: control target
= control target key end

     0   :  { %s234_s0 = inlined_call_operand.vmem [shape: f32[9,32,128], index: 0, kind: input, shape index: {}]   ;;  %s235_s1 = inlined_call_operand.vmem [shape: f32[1,128], index: 1, kind: input, shape index: {}]   ;;  %s236_s2 = inlined_call_operand.vmem [shape: f32[32,128], index: 2, kind: output, shape index: {}]  }
   0x1   :  { %v11_v0 = vld [vmem:[%s234_s0] sm:$0xff]  ;;  %v12_v6 = vld [vmem:[%s234_s0 + $0x8] sm:$0xff]  ;;  %v13_v14 = vld [vmem:[%s234_s0 + $0x10] sm:$0xff] }
   0x2   :  { %v15_v1 = vld [vmem:[%s234_s0 + $0x20] sm:$0xff]  ;;  %v16_v8 = vld [vmem:[%s234_s0 + $0x28] sm:$0xff]  ;;  %v17_v17 = vld [vmem:[%s234_s0 + $0x30] sm:$0xff] }
   0x3   :  { %v19_v2 = vld [vmem:[%s234_s0 + $0x40] sm:$0xff]  ;;  %v47_v3 = vadd.f32 %v15_v1, %v11_v0  ;;  %v20_v9 = vld [vmem:[%s234_s0 + $0x48] sm:$0xff]  ;;  %v48_v11 = vadd.f32 %v16_v8, %v12_v6  ;;  %v21_v18 = vld [vmem:[%s234_s0 + $0x50] sm:$0xff]  ;;  %v49_v21 = vadd.f32 %v17_v17, %v13_v14 }
   0x4   :  { %v23_v4 = vld [vmem:[%s234_s0 + $0x60] sm:$0xff]  ;;  %v24_v13 = vld [vmem:[%s234_s0 + $0x68] sm:$0xff]  ;;  %v25_v25 = vld [vmem:[%s234_s0 + $0x70] sm:$0xff] }
   0x5   :  { %v51_v5 = vadd.f32 %v47_v3, %v19_v2  ;;  %v27_v7 = vld [vmem:[%s234_s0 + $0x80] sm:$0xff]  ;;  %v52_v16 = vadd.f32 %v48_v11, %v20_v9  ;;  %v28_v20 = vld [vmem:[%s234_s0 + $0x88] sm:$0xff]  ;;  %v14_v26 = vld [vmem:[%s234_s0 + $0x18] sm:$0xff]  ;;  %v53_v28 = vadd.f32 %v49_v21, %v21_v18 }
   0x6   :  { %v31_v12 = vld [vmem:[%s234_s0 + $0xa0] sm:$0xff]  ;;  %v32_v27 = vld [vmem:[%s234_s0 + $0xa8] sm:$0xff]  ;;  %v18_v29 = vld [vmem:[%s234_s0 + $0x38] sm:$0xff] }
   0x7   :  { %v55_v10 = vadd.f32 %v51_v5, %v23_v4  ;;  %v35_v19 = vld [vmem:[%s234_s0 + $0xc0] sm:$0xff]  ;;  %v56_v24 = vadd.f32 %v52_v16, %v24_v13  ;;  %v22_v30 = vld [vmem:[%s234_s0 + $0x58] sm:$0xff]  ;;  %v29_v33 = vld [vmem:[%s234_s0 + $0x90] sm:$0xff]  ;;  %v50_v34 = vadd.f32 %v18_v29, %v14_v26  ;;  %v57_v37 = vadd.f32 %v53_v28, %v25_v25 }
   0x8   :  { %v39_v22 = vld [vmem:[%s234_s0 + $0xe0] sm:$0xff]  ;;  %v36_v36 = vld [vmem:[%s234_s0 + $0xc8] sm:$0xff]  ;;  %v26_v38 = vld [vmem:[%s234_s0 + $0x78] sm:$0xff] }
   0x9   :  { %v59_v15 = vadd.f32 %v55_v10, %v27_v7  ;;  %v60_v32 = vadd.f32 %v56_v24, %v28_v20  ;;  %v43_v35 = vld [vmem:[%s234_s0 + $0x100] sm:$0xff]  ;;  %v33_v42 = vld [vmem:[%s234_s0 + $0xb0] sm:$0xff]  ;;  %v54_v43 = vadd.f32 %v50_v34, %v22_v30  ;;  %v40_v44 = vld [vmem:[%s234_s0 + $0xe8] sm:$0xff]  ;;  %v61_v45 = vadd.f32 %v57_v37, %v29_v33 }
   0xa   :  { %v95_v40 = vld [vmem:[%s235_s1] ss:$0 sm:$0xff]  ;;  %v30_v46 = vld [vmem:[%s234_s0 + $0x98] sm:$0xff]  ;;  %v37_v49 = vld [vmem:[%s234_s0 + $0xd0] sm:$0xff] }
   0xb   :  { %v63_v23 = vadd.f32 %v59_v15, %v31_v12  ;;  %v64_v41 = vadd.f32 %v60_v32, %v32_v27  ;;  %v58_v50 = vadd.f32 %v54_v43, %v26_v38  ;;  %v44_v51 = vld [vmem:[%s234_s0 + $0x108] sm:$0xff]  ;;  %v65_v52 = vadd.f32 %v61_v45, %v33_v42  ;;  %v34_v53 = vld [vmem:[%s234_s0 + $0xb8] sm:$0xff]  ;;  %v41_v56 = vld [vmem:[%s234_s0 + $0xf0] sm:$0xff] }
   0xc   :  { %v38_v59 = vld [vmem:[%s234_s0 + $0xd8] sm:$0xff]  ;;  %v45_v61 = vld [vmem:[%s234_s0 + $0x110] sm:$0xff] }
   0xd   :  { %v67_v31 = vadd.f32 %v63_v23, %v35_v19  ;;  %v68_v48 = vadd.f32 %v64_v41, %v36_v36  ;;  %v62_v57 = vadd.f32 %v58_v50, %v30_v46  ;;  %v69_v58 = vadd.f32 %v65_v52, %v37_v49  ;;  %v42_v0 = vld [vmem:[%s234_s0 + $0xf8] sm:$0xff] }
   0xe   :  { %v46_v4 = vld [vmem:[%s234_s0 + $0x118] sm:$0xff] }
   0xf   :  { %v71_v39 = vadd.f32 %v67_v31, %v39_v22  ;;  %v72_v55 = vadd.f32 %v68_v48, %v40_v44  ;;  %v66_v62 = vadd.f32 %v62_v57, %v34_v53  ;;  %v73_v63 = vadd.f32 %v69_v58, %v41_v56 }
  0x11   :  { %v75_v47 = vadd.f32 %v71_v39, %v43_v35  ;;  %v76_v60 = vadd.f32 %v72_v55, %v44_v51  ;;  %v70_v2 = vadd.f32 %v66_v62, %v38_v59  ;;  %v77_v3 = vadd.f32 %v73_v63, %v45_v61 }
  0x13   :  { %v83_v54 = vmul.f32 %v95_v40, %v75_v47  ;;  %v84_v1 = vmul.f32 %v95_v40, %v76_v60  ;;  %v74_v5 = vadd.f32 %v70_v2, %v42_v0  ;;  %v85_v6 = vmul.f32 %v95_v40, %v77_v3 }
  0x15   :  { %87 = vst [vmem:[%s236_s2] sm:$0xff] %v83_v54  ;;  %v78_v7 = vadd.f32 %v74_v5, %v46_v4 }
  0x16   :  { %88 = vst [vmem:[%s236_s2 + $0x8] sm:$0xff] %v84_v1 }
  0x17   :  { %89 = vst [vmem:[%s236_s2 + $0x10] sm:$0xff] %v85_v6  ;;  %v86_v8 = vmul.f32 %v95_v40, %v78_v7 }
  0x19   :  { %90 = vst [vmem:[%s236_s2 + $0x18] sm:$0xff] %v86_v8 }

// kernel: _lambda_.597
= control target key start
LH: loop header
LB: loop body
LE: loop exit
PB: predicated region body
PF: predicated region fallthrough
CT: control target
= control target key end

     0   :  { %vm34_vm0 = vcmask 130048   ;;  %s122_s1 = inlined_call_operand.vmem [shape: bf16[16,128], index: 1, kind: input, shape index: {}]   ;;  %s123_s0 = inlined_call_operand.vmem [shape: bf16[32,16], index: 0, kind: input, shape index: {}]   ;;  %s124_s2 = inlined_call_operand.vmem [shape: f32[32,128], index: 2, kind: output, shape index: {}]  }
   0x1   :  { %v84_v0 = vld [vmem:[%s122_s1] sm:$0xff]  ;;  %v83_v2 = vld [vmem:[%s123_s0 + $0x8] sm:$0xff] }
   0x2   :  { %v82_v1 = vld [vmem:[%s123_s0] sm:$0xff]  ;;  %48 = vmatpush.bf16.msra.mxu0 %v84_v0  ;;  %85 = vmatpush.bf16.msra.mxu1 %v84_v0 }
   0x5   :  { %80 = vmatmul.msk.bf16.vlgmr.msra.gmra.mxu0 %vm34_vm0, %v82_v1  ;;  %81 = vmatmul.msk.bf16.vlgmr.msra.gmra.mxu1 %vm34_vm0, %v83_v2 }
  0x82   :  { %v50_v3 = vpop.f32.mrf.mxu0  ;;  %v55_v4 = vpop.f32.mrf.mxu1 }
  0x83   :  { %60 = vst [vmem:[%s124_s2] sm:$0xff] %v50_v3 }
  0x84   :  { %62 = vst [vmem:[%s124_s2 + $0x10] sm:$0xff] %v55_v4 }
  0x8a   :  { %v52_v5 = vpop.f32.mrf.mxu0  ;;  %v57_v6 = vpop.f32.mrf.mxu1 }
  0x8b   :  { %61 = vst [vmem:[%s124_s2 + $0x8] sm:$0xff] %v52_v5 }
  0x8c   :  { %63 = vst [vmem:[%s124_s2 + $0x18] sm:$0xff] %v57_v6 }

// kernel: _lambda_.600
= control target key start
LH: loop header
LB: loop body
LE: loop exit
PB: predicated region body
PF: predicated region fallthrough
CT: control target
= control target key end

     0   :  { %v169_v0 = vmov 1   ;;  %v170_v1 = vmov 0   ;;  %v171_v3 = vmov 2   ;;  %v172_v5 = vmov 3   ;;  %s259_s1 = inlined_call_operand.vmem [shape: f32[16,9], index: 1, kind: input, shape index: {}]   ;;  %s260_s0 = inlined_call_operand.vmem [shape: f32[9,16,128], index: 0, kind: input, shape index: {}]   ;;  %s261_s2 = inlined_call_operand.vmem [shape: f32[16,128], index: 2, kind: output, shape index: {}]  }
   0x1   :  { %155 = vset.pattern.permute.xlu1 %v169_v0  ;;  %154 = vset.pattern.permute.xlu0 %v170_v1  ;;  %v29_v2 = vld [vmem:[%s259_s1] sm:$0xff]  ;;  %v30_v4 = vld [vmem:[%s259_s1 + $0x8] sm:$0xff]  ;;  %v173_v6 = vmov 4   ;;  %v174_v7 = vmov 5   ;;  %v175_v8 = vmov 6   ;;  %v176_v9 = vmov 8  }
   0x2   :  { %44 = vperm.xlu1 %155, %v29_v2   ;;  %33 = vperm.xlu0 %154, %v29_v2   ;;  %v177_v10 = vmov 7   ;;  %v13_v19 = vld [vmem:[%s260_s0 + $0x10] sm:$0xff]  ;;  %v11_v20 = vld [vmem:[%s260_s0] sm:$0xff]  ;;  %v14_v26 = vld [vmem:[%s260_s0 + $0x18] sm:$0xff] }
   0x3   :  { %156 = vset.pattern.permute.xlu2 %v171_v3  ;;  %v15_v23 = vld [vmem:[%s260_s0 + $0x20] sm:$0xff]  ;;  %v12_v27 = vld [vmem:[%s260_s0 + $0x8] sm:$0xff]  ;;  %v17_v29 = vld [vmem:[%s260_s0 + $0x30] sm:$0xff] }
   0x4   :  { %56 = vperm.xlu2 %156, %v29_v2   ;;  %v19_v35 = vld [vmem:[%s260_s0 + $0x40] sm:$0xff]  ;;  %v16_v36 = vld [vmem:[%s260_s0 + $0x28] sm:$0xff]  ;;  %v18_v37 = vld [vmem:[%s260_s0 + $0x38] sm:$0xff] }
   0x5   :  { %v20_v43 = vld [vmem:[%s260_s0 + $0x48] sm:$0xff]  ;;  %v21_v46 = vld [vmem:[%s260_s0 + $0x50] sm:$0xff]  ;;  %v23_v51 = vld [vmem:[%s260_s0 + $0x60] sm:$0xff] }
   0x6   :  { %v22_v54 = vld [vmem:[%s260_s0 + $0x58] sm:$0xff]  ;;  %v25_v59 = vld [vmem:[%s260_s0 + $0x70] sm:$0xff]  ;;  %v27_v61 = vld [vmem:[%s260_s0 + $0x80] sm:$0xff] }
   0x7   :  { %v24_v62 = vld [vmem:[%s260_s0 + $0x68] sm:$0xff] }
   0xa   :  { %48 = vperm.xlu1 %155, %v30_v4   ;;  %38 = vperm.xlu0 %154, %v30_v4  }
   0xc   :  { %60 = vperm.xlu2 %156, %v30_v4  }
  0x12   :  { %158 = vset.pattern.permute.xlu1 %v172_v5  ;;  %157 = vset.pattern.permute.xlu0 %v172_v5 }
  0x13   :  { %72 = vperm.xlu1 %158, %v30_v4   ;;  %68 = vperm.xlu0 %157, %v29_v2  }
  0x14   :  { %159 = vset.pattern.permute.xlu2 %v173_v6 }
  0x15   :  { %80 = vperm.xlu2 %159, %v29_v2  }
  0x1b   :  { %160 = vset.pattern.permute.xlu1 %v173_v6  ;;  %162 = vset.pattern.permute.xlu0 %v174_v7 }
  0x1c   :  { %84 = vperm.xlu1 %160, %v30_v4   ;;  %96 = vperm.xlu0 %162, %v30_v4  }
  0x1d   :  { %161 = vset.pattern.permute.xlu2 %v174_v7  ;;  %v26_v7 = vld [vmem:[%s260_s0 + $0x78] sm:$0xff] }
  0x1e   :  { %92 = vperm.xlu2 %161, %v29_v2  }
  0x24   :  { %163 = vset.pattern.permute.xlu1 %v175_v8  ;;  %167 = vset.pattern.permute.xlu0 %v176_v9 }
  0x25   :  { %104 = vperm.xlu1 %163, %v29_v2   ;;  %128 = vperm.xlu0 %167, %v29_v2  }
  0x26   :  { %164 = vset.pattern.permute.xlu2 %v175_v8 }
  0x27   :  { %108 = vperm.xlu2 %164, %v30_v4  }
  0x2d   :  { %165 = vset.pattern.permute.xlu1 %v177_v10 }
  0x2e   :  { %116 = vperm.xlu1 %165, %v29_v2  }
  0x2f   :  { %166 = vset.pattern.permute.xlu2 %v177_v10 }
  0x30   :  { %120 = vperm.xlu2 %166, %v30_v4  }
  0x36   :  { %168 = vset.pattern.permute.xlu1 %v176_v9 }
  0x37   :  { %132 = vperm.xlu1 %168, %v30_v4  }
  0x5e   :  { %v57_v11 = vpop.permute.xlu2 %56 }
  0x5f   :  { %v63_v30 = vmul.f32 %v57_v11, %v15_v23 }
  0x66   :  { %v61_v14 = vpop.permute.xlu2 %60 }
  0x67   :  { %v64_v45 = vmul.f32 %v61_v14, %v16_v36 }
  0x6f   :  { %v81_v17 = vpop.permute.xlu2 %80 }
  0x70   :  { %v87_v41 = vmul.f32 %v81_v17, %v19_v35 }
  0x74   :  { %v45_v12 = vpop.permute.xlu1 %44  ;;  %v34_v13 = vpop.permute.xlu0 %33 }
  0x75   :  { %v51_v21 = vmul.f32 %v45_v12, %v13_v19  ;;  %v41_v22 = vmul.f32 %v34_v13, %v11_v20  ;;  %v28_v12 = vld [vmem:[%s260_s0 + $0x88] sm:$0xff] }
  0x77   :  { %v53_v31 = vadd.f32 %v51_v21, %v41_v22 }
  0x78   :  { %v93_v28 = vpop.permute.xlu2 %92 }
  0x79   :  { %v65_v38 = vadd.f32 %v63_v30, %v53_v31  ;;  %v99_v52 = vmul.f32 %v93_v28, %v21_v46 }
  0x7c   :  { %v49_v15 = vpop.permute.xlu1 %48  ;;  %v39_v16 = vpop.permute.xlu0 %38 }
  0x7d   :  { %v52_v32 = vmul.f32 %v49_v15, %v14_v26  ;;  %v42_v33 = vmul.f32 %v39_v16, %v12_v27 }
  0x7f   :  { %v54_v39 = vadd.f32 %v52_v32, %v42_v33 }
  0x81   :  { %v109_v48 = vpop.permute.xlu2 %108  ;;  %v66_v49 = vadd.f32 %v64_v45, %v54_v39 }
  0x82   :  { %v112_v4 = vmul.f32 %v109_v48, %v24_v62 }
  0x85   :  { %v73_v18 = vpop.permute.xlu1 %72  ;;  %v69_v24 = vpop.permute.xlu0 %68 }
  0x86   :  { %v75_v34 = vmul.f32 %v69_v24, %v17_v29  ;;  %v76_v47 = vmul.f32 %v73_v18, %v18_v37 }
  0x88   :  { %v77_v42 = vadd.f32 %v75_v34, %v65_v38  ;;  %v78_v55 = vadd.f32 %v76_v47, %v66_v49 }
  0x8a   :  { %v89_v53 = vadd.f32 %v87_v41, %v77_v42  ;;  %v121_v6 = vpop.permute.xlu2 %120 }
  0x8b   :  { %v124_v11 = vmul.f32 %v121_v6, %v26_v7 }
  0x8c   :  { %v101_v63 = vadd.f32 %v99_v52, %v89_v53 }
  0x8e   :  { %v85_v25 = vpop.permute.xlu1 %84  ;;  %v97_v40 = vpop.permute.xlu0 %96 }
  0x8f   :  { %v88_v50 = vmul.f32 %v85_v25, %v20_v43  ;;  %v100_v58 = vmul.f32 %v97_v40, %v22_v54 }
  0x91   :  { %v90_v57 = vadd.f32 %v88_v50, %v78_v55 }
  0x93   :  { %v102_v5 = vadd.f32 %v100_v58, %v90_v57 }
  0x95   :  { %v114_v10 = vadd.f32 %v112_v4, %v102_v5 }
  0x97   :  { %v105_v44 = vpop.permute.xlu1 %104  ;;  %v129_v60 = vpop.permute.xlu0 %128  ;;  %v126_v14 = vadd.f32 %v124_v11, %v114_v10 }
  0x98   :  { %v111_v56 = vmul.f32 %v105_v44, %v23_v51  ;;  %v135_v3 = vmul.f32 %v129_v60, %v27_v61 }
  0x9a   :  { %v113_v1 = vadd.f32 %v111_v56, %v101_v63 }
  0xa0   :  { %v117_v0 = vpop.permute.xlu1 %116 }
  0xa1   :  { %v123_v2 = vmul.f32 %v117_v0, %v25_v59 }
  0xa3   :  { %v125_v8 = vadd.f32 %v123_v2, %v113_v1 }
  0xa5   :  { %v137_v9 = vadd.f32 %v135_v3, %v125_v8 }
  0xa7   :  { %139 = vst [vmem:[%s261_s2] sm:$0xff] %v137_v9 }
  0xa9   :  { %v133_v13 = vpop.permute.xlu1 %132 }
  0xaa   :  { %v136_v15 = vmul.f32 %v133_v13, %v28_v12 }
  0xac   :  { %v138_v16 = vadd.f32 %v136_v15, %v126_v14 }
  0xae   :  { %140 = vst [vmem:[%s261_s2 + $0x8] sm:$0xff] %v138_v16 }

// kernel: _lambda_.608
= control target key start
LH: loop header
LB: loop body
LE: loop exit
PB: predicated region body
PF: predicated region fallthrough
CT: control target
= control target key end

     0   :  { %v442_v0 = vmov 1   ;;  %v443_v1 = vmov 0   ;;  %v444_v3 = vmov 2   ;;  %v445_v5 = vmov 3   ;;  %s700_s1 = inlined_call_operand.vmem [shape: f32[16,25], index: 1, kind: input, shape index: {}]   ;;  %s701_s0 = inlined_call_operand.vmem [shape: f32[25,16,128], index: 0, kind: input, shape index: {}]   ;;  %s702_s2 = inlined_call_operand.vmem [shape: f32[16,128], index: 2, kind: output, shape index: {}]  }
   0x1   :  { %395 = vset.pattern.permute.xlu1 %v442_v0  ;;  %394 = vset.pattern.permute.xlu0 %v443_v1  ;;  %v485_v2 = vld [vmem:[%s700_s1] sm:$0xff]  ;;  %v493_v4 = vld [vmem:[%s700_s1 + $0x8] sm:$0xff]  ;;  %v446_v6 = vmov 4   ;;  %v447_v7 = vmov 5   ;;  %v448_v8 = vmov 6   ;;  %v449_v9 = vmov 8  }
   0x2   :  { %76 = vperm.xlu1 %395, %v485_v2   ;;  %65 = vperm.xlu0 %394, %v485_v2   ;;  %v450_v10 = vmov 7   ;;  %v451_v11 = vmov 10   ;;  %v452_v12 = vmov 13   ;;  %v453_v13 = vmov 9   ;;  %v15_v24 = vld [vmem:[%s701_s0 + $0x20] sm:$0xff]  ;;  %v13_v25 = vld [vmem:[%s701_s0 + $0x10] sm:$0xff] }
   0x3   :  { %396 = vset.pattern.permute.xlu2 %v444_v3  ;;  %v454_v14 = vmov 15   ;;  %v455_v15 = vmov 11   ;;  %v456_v16 = vmov 12   ;;  %v457_v17 = vmov 18   ;;  %v11_v26 = vld [vmem:[%s701_s0] sm:$0xff]  ;;  %v16_v35 = vld [vmem:[%s701_s0 + $0x28] sm:$0xff] }
   0x4   :  { %88 = vperm.xlu2 %396, %v485_v2   ;;  %v458_v18 = vmov 14   ;;  %v459_v21 = vmov 20   ;;  %v460_v22 = vmov 16   ;;  %v461_v32 = vmov 17   ;;  %v14_v36 = vld [vmem:[%s701_s0 + $0x18] sm:$0xff]  ;;  %v12_v37 = vld [vmem:[%s701_s0 + $0x8] sm:$0xff] }
   0x5   :  { %v462_v39 = vmov 23   ;;  %v463_v46 = vmov 19   ;;  %v19_v48 = vld [vmem:[%s701_s0 + $0x40] sm:$0xff]  ;;  %v18_v49 = vld [vmem:[%s701_s0 + $0x38] sm:$0xff]  ;;  %v17_v50 = vld [vmem:[%s701_s0 + $0x30] sm:$0xff]  ;;  %v464_v62 = vmov 24  }
   0x6   :  { %v21_v51 = vld [vmem:[%s701_s0 + $0x50] sm:$0xff]  ;;  %v20_v63 = vld [vmem:[%s701_s0 + $0x48] sm:$0xff]  ;;  %v22_v0 = vld [vmem:[%s701_s0 + $0x58] sm:$0xff] }
   0x7   :  { %v24_v3 = vld [vmem:[%s701_s0 + $0x68] sm:$0xff] }
   0xa   :  { %80 = vperm.xlu1 %395, %v493_v4   ;;  %70 = vperm.xlu0 %394, %v493_v4  }
   0xc   :  { %92 = vperm.xlu2 %396, %v493_v4  }
  0x12   :  { %398 = vset.pattern.permute.xlu1 %v445_v5  ;;  %397 = vset.pattern.permute.xlu0 %v445_v5 }
  0x13   :  { %104 = vperm.xlu1 %398, %v493_v4   ;;  %100 = vperm.xlu0 %397, %v485_v2  }
  0x14   :  { %399 = vset.pattern.permute.xlu2 %v446_v6 }
  0x15   :  { %112 = vperm.xlu2 %399, %v485_v2  }
  0x1b   :  { %400 = vset.pattern.permute.xlu1 %v446_v6  ;;  %402 = vset.pattern.permute.xlu0 %v447_v7 }
  0x1c   :  { %116 = vperm.xlu1 %400, %v493_v4   ;;  %128 = vperm.xlu0 %402, %v493_v4  }
  0x1d   :  { %401 = vset.pattern.permute.xlu2 %v447_v7 }
  0x1e   :  { %124 = vperm.xlu2 %401, %v485_v2  }
  0x24   :  { %403 = vset.pattern.permute.xlu1 %v448_v8  ;;  %407 = vset.pattern.permute.xlu0 %v449_v9 }
  0x25   :  { %136 = vperm.xlu1 %403, %v485_v2   ;;  %160 = vperm.xlu0 %407, %v485_v2  }
  0x26   :  { %404 = vset.pattern.permute.xlu2 %v448_v8 }
  0x27   :  { %140 = vperm.xlu2 %404, %v493_v4  }
  0x2d   :  { %405 = vset.pattern.permute.xlu1 %v450_v10  ;;  %412 = vset.pattern.permute.xlu0 %v451_v11 }
  0x2e   :  { %148 = vperm.xlu1 %405, %v485_v2   ;;  %188 = vperm.xlu0 %412, %v493_v4  }
  0x2f   :  { %406 = vset.pattern.permute.xlu2 %v450_v10 }
  0x30   :  { %152 = vperm.xlu2 %406, %v493_v4  }
  0x36   :  { %408 = vset.pattern.permute.xlu1 %v449_v9  ;;  %417 = vset.pattern.permute.xlu0 %v452_v12  ;;  %v465_v9 = vmov 21  }
  0x37   :  { %164 = vperm.xlu1 %408, %v493_v4   ;;  %220 = vperm.xlu0 %417, %v485_v2  }
  0x38   :  { %409 = vset.pattern.permute.xlu2 %v453_v13 }
  0x39   :  { %172 = vperm.xlu2 %409, %v485_v2  }
  0x3f   :  { %410 = vset.pattern.permute.xlu1 %v453_v13  ;;  %422 = vset.pattern.permute.xlu0 %v454_v14 }
  0x40   :  { %176 = vperm.xlu1 %410, %v493_v4   ;;  %248 = vperm.xlu0 %422, %v493_v4  }
  0x41   :  { %411 = vset.pattern.permute.xlu2 %v451_v11  ;;  %v26_v11 = vld [vmem:[%s701_s0 + $0x78] sm:$0xff] }
  0x42   :  { %184 = vperm.xlu2 %411, %v485_v2  }
  0x48   :  { %413 = vset.pattern.permute.xlu1 %v455_v15  ;;  %427 = vset.pattern.permute.xlu0 %v457_v17 }
  0x49   :  { %196 = vperm.xlu1 %413, %v485_v2   ;;  %280 = vperm.xlu0 %427, %v485_v2  }
  0x4a   :  { %414 = vset.pattern.permute.xlu2 %v455_v15 }
  0x4b   :  { %200 = vperm.xlu2 %414, %v493_v4  }
  0x51   :  { %415 = vset.pattern.permute.xlu1 %v456_v16  ;;  %432 = vset.pattern.permute.xlu0 %v459_v21 }
  0x52   :  { %208 = vperm.xlu1 %415, %v485_v2   ;;  %308 = vperm.xlu0 %432, %v493_v4  }
  0x53   :  { %416 = vset.pattern.permute.xlu2 %v456_v16 }
  0x54   :  { %212 = vperm.xlu2 %416, %v493_v4  }
  0x5a   :  { %418 = vset.pattern.permute.xlu1 %v452_v12  ;;  %437 = vset.pattern.permute.xlu0 %v462_v39 }
  0x5b   :  { %224 = vperm.xlu1 %418, %v493_v4   ;;  %340 = vperm.xlu0 %437, %v485_v2  }
  0x5c   :  { %419 = vset.pattern.permute.xlu2 %v458_v18 }
  0x5d   :  { %232 = vperm.xlu2 %419, %v485_v2  }
  0x5e   :  { %v89_v19 = vpop.permute.xlu2 %88 }
  0x5f   :  { %v95_v29 = vmul.f32 %v89_v19, %v15_v24 }
  0x63   :  { %420 = vset.pattern.permute.xlu1 %v458_v18  ;;  %441 = vset.pattern.permute.xlu0 %v464_v62 }
  0x64   :  { %236 = vperm.xlu1 %420, %v493_v4  }
  0x65   :  { %421 = vset.pattern.permute.xlu2 %v454_v14 }
  0x66   :  { %244 = vperm.xlu2 %421, %v485_v2   ;;  %v93_v20 = vpop.permute.xlu2 %92 }
  0x67   :  { %v96_v42 = vmul.f32 %v93_v20, %v16_v35  ;;  %v28_v35 = vld [vmem:[%s701_s0 + $0x88] sm:$0xff] }
  0x6c   :  { %423 = vset.pattern.permute.xlu1 %v460_v22 }
  0x6d   :  { %256 = vperm.xlu1 %423, %v485_v2  }
  0x6e   :  { %424 = vset.pattern.permute.xlu2 %v460_v22 }
  0x6f   :  { %260 = vperm.xlu2 %424, %v493_v4   ;;  %v113_v23 = vpop.permute.xlu2 %112 }
  0x70   :  { %v119_v54 = vmul.f32 %v113_v23, %v19_v48  ;;  %v25_v23 = vld [vmem:[%s701_s0 + $0x70] sm:$0xff] }
  0x74   :  { %v77_v27 = vpop.permute.xlu1 %76  ;;  %v66_v28 = vpop.permute.xlu0 %65 }
  0x75   :  { %v83_v30 = vmul.f32 %v77_v27, %v13_v25  ;;  %v73_v31 = vmul.f32 %v66_v28, %v11_v26  ;;  %425 = vset.pattern.permute.xlu1 %v461_v32  ;;  %v27_v25 = vld [vmem:[%s701_s0 + $0x80] sm:$0xff]  ;;  %v29_v27 = vld [vmem:[%s701_s0 + $0x90] sm:$0xff] }
  0x76   :  { %268 = vperm.xlu1 %425, %v485_v2  }
  0x77   :  { %v85_v33 = vadd.f32 %v83_v30, %v73_v31  ;;  %426 = vset.pattern.permute.xlu2 %v461_v32 }
  0x78   :  { %272 = vperm.xlu2 %426, %v493_v4   ;;  %v125_v38 = vpop.permute.xlu2 %124 }
  0x79   :  { %v97_v34 = vadd.f32 %v95_v29, %v85_v33  ;;  %v131_v58 = vmul.f32 %v125_v38, %v21_v51 }
  0x7c   :  { %v81_v40 = vpop.permute.xlu1 %80  ;;  %v71_v41 = vpop.permute.xlu0 %70 }
  0x7d   :  { %v84_v43 = vmul.f32 %v81_v40, %v14_v36  ;;  %v74_v44 = vmul.f32 %v71_v41, %v12_v37 }
  0x7e   :  { %428 = vset.pattern.permute.xlu1 %v457_v17  ;;  %v23_v17 = vld [vmem:[%s701_s0 + $0x60] sm:$0xff] }
  0x7f   :  { %v86_v45 = vadd.f32 %v84_v43, %v74_v44  ;;  %284 = vperm.xlu1 %428, %v493_v4   ;;  %v34_v43 = vld [vmem:[%s701_s0 + $0xb8] sm:$0xff] }
  0x80   :  { %429 = vset.pattern.permute.xlu2 %v463_v46 }
  0x81   :  { %v98_v47 = vadd.f32 %v96_v42, %v86_v45  ;;  %292 = vperm.xlu2 %429, %v485_v2   ;;  %v141_v57 = vpop.permute.xlu2 %140 }
  0x82   :  { %v144_v12 = vmul.f32 %v141_v57, %v24_v3 }
  0x85   :  { %v105_v52 = vpop.permute.xlu1 %104  ;;  %v101_v53 = vpop.permute.xlu0 %100 }
  0x86   :  { %v108_v55 = vmul.f32 %v105_v52, %v18_v49  ;;  %v107_v56 = vmul.f32 %v101_v53, %v17_v50 }
  0x87   :  { %430 = vset.pattern.permute.xlu1 %v463_v46 }
  0x88   :  { %v110_v59 = vadd.f32 %v108_v55, %v98_v47  ;;  %v109_v60 = vadd.f32 %v107_v56, %v97_v34  ;;  %296 = vperm.xlu1 %430, %v493_v4  }
  0x89   :  { %431 = vset.pattern.permute.xlu2 %v459_v21  ;;  %v466_v21 = vmov 22  }
  0x8a   :  { %v121_v61 = vadd.f32 %v119_v54, %v109_v60  ;;  %304 = vperm.xlu2 %431, %v485_v2   ;;  %v153_v10 = vpop.permute.xlu2 %152  ;;  %v31_v60 = vld [vmem:[%s701_s0 + $0xa0] sm:$0xff] }
  0x8b   :  { %v156_v15 = vmul.f32 %v153_v10, %v26_v11 }
  0x8c   :  { %v133_v1 = vadd.f32 %v131_v58, %v121_v61  ;;  %v33_v61 = vld [vmem:[%s701_s0 + $0xb0] sm:$0xff] }
  0x8e   :  { %v117_v5 = vpop.permute.xlu1 %116  ;;  %v129_v6 = vpop.permute.xlu0 %128 }
  0x8f   :  { %v120_v7 = vmul.f32 %v117_v5, %v20_v63  ;;  %v132_v8 = vmul.f32 %v129_v6, %v22_v0  ;;  %v35_v63 = vld [vmem:[%s701_s0 + $0xc0] sm:$0xff] }
  0x90   :  { %433 = vset.pattern.permute.xlu1 %v465_v9 }
  0x91   :  { %v122_v13 = vadd.f32 %v120_v7, %v110_v59  ;;  %316 = vperm.xlu1 %433, %v485_v2  }
  0x92   :  { %434 = vset.pattern.permute.xlu2 %v465_v9 }
  0x93   :  { %v134_v14 = vadd.f32 %v132_v8, %v122_v13  ;;  %320 = vperm.xlu2 %434, %v493_v4   ;;  %v173_v26 = vpop.permute.xlu2 %172  ;;  %v37_v8 = vld [vmem:[%s701_s0 + $0xd0] sm:$0xff] }
  0x94   :  { %v179_v31 = vmul.f32 %v173_v26, %v29_v27  ;;  %v40_v26 = vld [vmem:[%s701_s0 + $0xe8] sm:$0xff] }
  0x95   :  { %v146_v16 = vadd.f32 %v144_v12, %v134_v14  ;;  %v39_v12 = vld [vmem:[%s701_s0 + $0xe0] sm:$0xff] }
  0x97   :  { %v158_v18 = vadd.f32 %v156_v15, %v146_v16  ;;  %v137_v19 = vpop.permute.xlu1 %136  ;;  %v161_v24 = vpop.permute.xlu0 %160 }
  0x98   :  { %v143_v20 = vmul.f32 %v137_v19, %v23_v17  ;;  %v167_v30 = vmul.f32 %v161_v24, %v27_v25  ;;  %v36_v19 = vld [vmem:[%s701_s0 + $0xc8] sm:$0xff]  ;;  %v45_v25 = vld [vmem:[%s701_s0 + $0x110] sm:$0xff] }
  0x99   :  { %435 = vset.pattern.permute.xlu1 %v466_v21 }
  0x9a   :  { %v145_v22 = vadd.f32 %v143_v20, %v133_v1  ;;  %328 = vperm.xlu1 %435, %v485_v2   ;;  %v43_v20 = vld [vmem:[%s701_s0 + $0x100] sm:$0xff] }
  0x9b   :  { %436 = vset.pattern.permute.xlu2 %v466_v21 }
  0x9c   :  { %332 = vperm.xlu2 %436, %v493_v4   ;;  %v185_v37 = vpop.permute.xlu2 %184 }
  0xa0   :  { %v149_v28 = vpop.permute.xlu1 %148  ;;  %v189_v41 = vpop.permute.xlu0 %188 }
  0xa1   :  { %v155_v29 = vmul.f32 %v149_v28, %v25_v23  ;;  %v38_v23 = vld [vmem:[%s701_s0 + $0xd8] sm:$0xff] }
  0xa2   :  { %438 = vset.pattern.permute.xlu1 %v462_v39  ;;  %v30_v39 = vld [vmem:[%s701_s0 + $0x98] sm:$0xff] }
  0xa3   :  { %v157_v32 = vadd.f32 %v155_v29, %v145_v22  ;;  %344 = vperm.xlu1 %438, %v493_v4  }
  0xa4   :  { %439 = vset.pattern.permute.xlu2 %v464_v62 }
  0xa5   :  { %v169_v33 = vadd.f32 %v167_v30, %v157_v32  ;;  %352 = vperm.xlu2 %439, %v485_v2   ;;  %v32_v2 = vld [vmem:[%s701_s0 + $0xa8] sm:$0xff]  ;;  %v201_v42 = vpop.permute.xlu2 %200 }
  0xa6   :  { %v192_v46 = vmul.f32 %v189_v41, %v32_v2  ;;  %v204_v47 = vmul.f32 %v201_v42, %v34_v43  ;;  %v49_v43 = vld [vmem:[%s701_s0 + $0x130] sm:$0xff] }
  0xa7   :  { %v181_v34 = vadd.f32 %v179_v31, %v169_v33 }
  0xa9   :  { %v165_v36 = vpop.permute.xlu1 %164  ;;  %v221_v5 = vpop.permute.xlu0 %220 }
  0xaa   :  { %v168_v38 = vmul.f32 %v165_v36, %v28_v35  ;;  %v227_v11 = vmul.f32 %v221_v5, %v37_v8  ;;  %v47_v36 = vld [vmem:[%s701_s0 + $0x120] sm:$0xff] }
  0xab   :  { %440 = vset.pattern.permute.xlu1 %v464_v62  ;;  %v191_v62 = vmul.f32 %v185_v37, %v31_v60  ;;  %v42_v37 = vld [vmem:[%s701_s0 + $0xf8] sm:$0xff] }
  0xac   :  { %v170_v40 = vadd.f32 %v168_v38, %v158_v18  ;;  %356 = vperm.xlu1 %440, %v493_v4   ;;  %v41_v18 = vld [vmem:[%s701_s0 + $0xf0] sm:$0xff] }
  0xad   :  { %v193_v6 = vadd.f32 %v191_v62, %v181_v34  ;;  %v55_v62 = vld [vmem:[%s701_s0 + $0x160] sm:$0xff] }
  0xae   :  { %v213_v51 = vpop.permute.xlu2 %212 }
  0xaf   :  { %v216_v24 = vmul.f32 %v213_v51, %v36_v19  ;;  %v54_v19 = vld [vmem:[%s701_s0 + $0x158] sm:$0xff] }
  0xb2   :  { %v177_v44 = vpop.permute.xlu1 %176  ;;  %v249_v13 = vpop.permute.xlu0 %248 }
  0xb3   :  { %v180_v45 = vmul.f32 %v177_v44, %v30_v39  ;;  %v252_v42 = vmul.f32 %v249_v13, %v42_v37  ;;  %v44_v44 = vld [vmem:[%s701_s0 + $0x108] sm:$0xff] }
  0xb5   :  { %v182_v48 = vadd.f32 %v180_v45, %v170_v40 }
  0xb7   :  { %v194_v4 = vadd.f32 %v192_v46, %v182_v48  ;;  %v233_v52 = vpop.permute.xlu2 %232 }
  0xb8   :  { %v239_v16 = vmul.f32 %v233_v52, %v39_v12  ;;  %v46_v52 = vld [vmem:[%s701_s0 + $0x118] sm:$0xff]  ;;  %v52_v12 = vld [vmem:[%s701_s0 + $0x148] sm:$0xff] }
  0xb9   :  { %v206_v49 = vadd.f32 %v204_v47, %v194_v4 }
  0xbb   :  { %v197_v50 = vpop.permute.xlu1 %196  ;;  %v281_v28 = vpop.permute.xlu0 %280  ;;  %v218_v34 = vadd.f32 %v216_v24, %v206_v49  ;;  %v56_v24 = vld [vmem:[%s701_s0 + $0x168] sm:$0xff] }
  0xbc   :  { %v203_v3 = vmul.f32 %v197_v50, %v33_v61  ;;  %v287_v41 = vmul.f32 %v281_v28, %v47_v36  ;;  %v51_v50 = vld [vmem:[%s701_s0 + $0x140] sm:$0xff]  ;;  %v50_v61 = vld [vmem:[%s701_s0 + $0x138] sm:$0xff] }
  0xbe   :  { %v205_v9 = vadd.f32 %v203_v3, %v193_v6 }
  0xc0   :  { %v245_v55 = vpop.permute.xlu2 %244 }
  0xc1   :  { %v251_v22 = vmul.f32 %v245_v55, %v41_v18 }
  0xc4   :  { %v209_v53 = vpop.permute.xlu1 %208  ;;  %v309_v45 = vpop.permute.xlu0 %308 }
  0xc5   :  { %v215_v7 = vmul.f32 %v209_v53, %v35_v63  ;;  %v53_v53 = vld [vmem:[%s701_s0 + $0x150] sm:$0xff] }
  0xc7   :  { %v217_v10 = vadd.f32 %v215_v7, %v205_v9  ;;  %v59_v7 = vld [vmem:[%s701_s0 + $0x180] sm:$0xff] }
  0xc9   :  { %v261_v56 = vpop.permute.xlu2 %260  ;;  %v229_v17 = vadd.f32 %v227_v11, %v217_v10 }
  0xca   :  { %v264_v4 = vmul.f32 %v261_v56, %v44_v44  ;;  %v48_v56 = vld [vmem:[%s701_s0 + $0x128] sm:$0xff] }
  0xcb   :  { %v241_v21 = vadd.f32 %v239_v16, %v229_v17 }
  0xcd   :  { %v225_v54 = vpop.permute.xlu1 %224  ;;  %v253_v32 = vadd.f32 %v251_v22, %v241_v21  ;;  %v341_v63 = vpop.permute.xlu0 %340 }
  0xce   :  { %v228_v29 = vmul.f32 %v225_v54, %v38_v23 }
  0xd0   :  { %v230_v40 = vadd.f32 %v228_v29, %v218_v34  ;;  %v60_v29 = vld [vmem:[%s701_s0 + $0x188] sm:$0xff] }
  0xd2   :  { %v273_v59 = vpop.permute.xlu2 %272 }
  0xd6   :  { %v237_v57 = vpop.permute.xlu1 %236 }
  0xd7   :  { %v240_v35 = vmul.f32 %v237_v57, %v40_v26 }
  0xd9   :  { %v242_v2 = vadd.f32 %v240_v35, %v230_v40 }
  0xdb   :  { %v293_v0 = vpop.permute.xlu2 %292  ;;  %v254_v49 = vadd.f32 %v252_v42, %v242_v2 }
  0xdc   :  { %v299_v46 = vmul.f32 %v293_v0, %v49_v43  ;;  %v57_v0 = vld [vmem:[%s701_s0 + $0x170] sm:$0xff] }
  0xdd   :  { %v266_v57 = vadd.f32 %v264_v4, %v254_v49  ;;  %v347_v11 = vmul.f32 %v341_v63, %v57_v0 }
  0xdf   :  { %v257_v58 = vpop.permute.xlu1 %256 }
  0xe0   :  { %v263_v27 = vmul.f32 %v257_v58, %v43_v20  ;;  %v276_v58 = vmul.f32 %v273_v59, %v46_v52 }
  0xe2   :  { %v265_v38 = vadd.f32 %v263_v27, %v253_v32  ;;  %v278_v3 = vadd.f32 %v276_v58, %v266_v57 }
  0xe4   :  { %v305_v15 = vpop.permute.xlu2 %304 }
  0xe5   :  { %v311_v55 = vmul.f32 %v305_v15, %v51_v50 }
  0xe8   :  { %v269_v1 = vpop.permute.xlu1 %268 }
  0xe9   :  { %v275_v33 = vmul.f32 %v269_v1, %v45_v25  ;;  %v58_v25 = vld [vmem:[%s701_s0 + $0x178] sm:$0xff] }
  0xeb   :  { %v277_v39 = vadd.f32 %v275_v33, %v265_v38 }
  0xed   :  { %v321_v30 = vpop.permute.xlu2 %320  ;;  %v289_v47 = vadd.f32 %v287_v41, %v277_v39 }
  0xee   :  { %v324_v21 = vmul.f32 %v321_v30, %v54_v19 }
  0xef   :  { %v301_v54 = vadd.f32 %v299_v46, %v289_v47 }
  0xf1   :  { %v285_v14 = vpop.permute.xlu1 %284  ;;  %v313_v1 = vadd.f32 %v311_v55, %v301_v54 }
  0xf2   :  { %v288_v59 = vmul.f32 %v285_v14, %v48_v56  ;;  %v312_v14 = vmul.f32 %v309_v45, %v52_v12 }
  0xf4   :  { %v290_v13 = vadd.f32 %v288_v59, %v278_v3 }
  0xf6   :  { %v333_v51 = vpop.permute.xlu2 %332 }
  0xf7   :  { %v336_v27 = vmul.f32 %v333_v51, %v56_v24 }
  0xfa   :  { %v297_v31 = vpop.permute.xlu1 %296 }
  0xfb   :  { %v300_v8 = vmul.f32 %v297_v31, %v50_v61 }
  0xfd   :  { %v302_v17 = vadd.f32 %v300_v8, %v290_v13 }
  0xff   :  { %v353_v6 = vpop.permute.xlu2 %352  ;;  %v314_v22 = vadd.f32 %v312_v14, %v302_v17 }
 0x100   :  { %v359_v16 = vmul.f32 %v353_v6, %v59_v7 }
 0x101   :  { %v326_v26 = vadd.f32 %v324_v21, %v314_v22 }
 0x103   :  { %v317_v48 = vpop.permute.xlu1 %316  ;;  %v338_v30 = vadd.f32 %v336_v27, %v326_v26 }
 0x104   :  { %v323_v60 = vmul.f32 %v317_v48, %v53_v53 }
 0x106   :  { %v325_v9 = vadd.f32 %v323_v60, %v313_v1 }
 0x10c   :  { %v329_v5 = vpop.permute.xlu1 %328 }
 0x10d   :  { %v335_v10 = vmul.f32 %v329_v5, %v55_v62 }
 0x10f   :  { %v337_v15 = vadd.f32 %v335_v10, %v325_v9 }
 0x111   :  { %v349_v18 = vadd.f32 %v347_v11, %v337_v15 }
 0x113   :  { %v361_v20 = vadd.f32 %v359_v16, %v349_v18 }
 0x115   :  { %363 = vst [vmem:[%s702_s2] sm:$0xff] %v361_v20  ;;  %v345_v23 = vpop.permute.xlu1 %344 }
 0x116   :  { %v348_v28 = vmul.f32 %v345_v23, %v58_v25 }
 0x118   :  { %v350_v32 = vadd.f32 %v348_v28, %v338_v30 }
 0x11e   :  { %v357_v31 = vpop.permute.xlu1 %356 }
 0x11f   :  { %v360_v33 = vmul.f32 %v357_v31, %v60_v29 }
 0x121   :  { %v362_v34 = vadd.f32 %v360_v33, %v350_v32 }
 0x123   :  { %364 = vst [vmem:[%s702_s2 + $0x8] sm:$0xff] %v362_v34 }

// kernel: _lambda_.359
= control target key start
LH: loop header
LB: loop body
LE: loop exit
PB: predicated region body
PF: predicated region fallthrough
CT: control target
= control target key end

     0   :  { %vm14_vm0 = vcmask 7168   ;;  %v51_v3 = vmov 0.0   ;;  %s101_s0 = inlined_call_operand.vmem [shape: f32[8,512], index: 0, kind: input, shape index: {}]   ;;  %s102_s1 = inlined_call_operand.vmem [shape: f32[8,1], index: 1, kind: output, shape index: {0}]   ;;  %s103_s2 = inlined_call_operand.vmem [shape: f32[8,1], index: 2, kind: output, shape index: {1}]  }
   0x1   :  { %v17_v0 = vld [vmem:[%s101_s0] sm:$0xff]  ;;  %v18_v1 = vld [vmem:[%s101_s0 + $0x8] sm:$0xff]  ;;  %v19_v2 = vld [vmem:[%s101_s0 + $0x10] sm:$0xff]  ;;  %15 = vst.msk [vmem:[%s102_s1] sm:$0xff] %vm14_vm0, %v51_v3 }
   0x2   :  { %v22_v4 = vadd.f32 %v18_v1, %v17_v0  ;;  %v31_v5 = vmul.f32 %v17_v0, %v17_v0  ;;  %v32_v6 = vmul.f32 %v18_v1, %v18_v1  ;;  %16 = vst.msk [vmem:[%s103_s2] sm:$0xff] %vm14_vm0, %v51_v3  ;;  %v20_v7 = vld [vmem:[%s101_s0 + $0x18] sm:$0xff]  ;;  %v33_v9 = vmul.f32 %v19_v2, %v19_v2 }
   0x3   :  { %v34_v12 = vmul.f32 %v20_v7, %v20_v7 }
   0x4   :  { %v23_v8 = vadd.f32 %v22_v4, %v19_v2  ;;  %v35_v10 = vadd.f32 %v32_v6, %v31_v5 }
   0x6   :  { %v24_v11 = vadd.f32 %v23_v8, %v20_v7  ;;  %v36_v13 = vadd.f32 %v35_v10, %v33_v9 }
   0x8   :  { %25 = vadd.xlane.f32.xlu0 %v24_v11  ;;  %v37_v14 = vadd.f32 %v36_v13, %v34_v12  ;;  %v21_v15 = vld [vmem:[%s102_s1] sm:$0xff] }
   0x9   :  { %v30_v18 = vld [vmem:[%s103_s2] sm:$0xff] }
  0x10   :  { %38 = vadd.xlane.f32.xlu0 %v37_v14 }
  0x7b   :  { %v26_v16 = vpop.xlane.xlu0 %25 }
  0x7c   :  { %v27_v17 = vadd.f32 %v26_v16, %v21_v15 }
  0x7e   :  { %29 = vst.msk [vmem:[%s102_s1] sm:$0xff] %vm14_vm0, %v27_v17 }
  0x83   :  { %v39_v19 = vpop.xlane.xlu0 %38 }
  0x84   :  { %v40_v20 = vadd.f32 %v39_v19, %v30_v18 }
  0x86   :  { %41 = vst.msk [vmem:[%s103_s2] sm:$0xff] %vm14_vm0, %v40_v20 }

// kernel: _lambda_.358
= control target key start
LH: loop header
LB: loop body
LE: loop exit
PB: predicated region body
PF: predicated region fallthrough
CT: control target
= control target key end

     0   :  { %s747_s9 = smov 0   ;;  %s749_s10 = smov 0   ;;  %s840_s0 = inlined_call_operand.vmem [shape: bf16[512,12], index: 0, kind: input, shape index: {}]   ;;  %s841_s1 = inlined_call_operand.vmem [shape: bf16[12,128], index: 1, kind: input, shape index: {}]   ;;  %s842_s2 = inlined_call_operand.vmem [shape: f32[512,128], index: 2, kind: output, shape index: {}]  }
   0x1   :  { %s751_s11 = smov 0  }
   0x2 LB: > { %s24_s12 = sadd.s32 1, %s726_s10  ;;  %p573_p0 = scmp.ge.s32.totalorder %s730_s11, 1  ;;  %s730_s11 = sphi %s751_s11, %s12_s11   ;;  %s726_s10 = sphi %s749_s10, %s844_s10   ;;  %s722_s9 = sphi %s747_s9, %s843_s9  }
   0x3   : > { %p26_p1 = scmp.ge.s32.totalorder %s24_s12, 2  ;;  %p136_p2 = scmp.lt.s32.totalorder %s730_s11, 3 }
   0x5   : > { %s846_s12 = smov (%p26_p1, %s24_s12), 0  ;;  %p137_p3 = pnand %p573_p0, %p136_p2 }
   0x6   : > { %s574_s17 = sshll.u32 (!%p137_p3), %s722_s9, 5 }
   0x7   : > { %140 = sbr.rel (%p137_p3) target bundleno = 210 (0xd2), region = 28  ;;  %p166_p4 = scmp.lt.s32.totalorder (!%p137_p3), %s574_s17, 63 }
   0xc   : > { %v644_v0 = vld [vmem:[%s841_s1] sm:$0xf]  ;;  %v680_v1 = vld [vmem:[%s841_s1] sm:$0x30]  ;;  %vm353_vm0 = vcmask 1045504   ;;  %s848_s17 = smov (!%p166_p4, %s574_s17), 63 }
   0xd   : > { %v645_v2 = vor.u32 %v680_v1, %v644_v0  ;;  %s575_s18 = sshll.u32 %s848_s17, 2  ;;  %vm304_vm1 = vcmask 97280   ;;  %s577_s22 = sshll.u32 %s848_s17, 3 }
   0xe   : > { %s169_s21 = scalar_lea.vmem %s840_s0, %s575_s18  ;;  %s797_s25 = scalar_lea.vmem %s842_s2, %s577_s22 }
   0xf   : > { %v355_v3 = vsel %vm353_vm0, %v645_v2, 0  ;;  %v664_v4 = vld [vmem:[%s169_s21] sm:$0xff]  ;;  %v665_v8 = vld [vmem:[%s169_s21 + $0x8] sm:$0xff]  ;;  %v666_v12 = vld [vmem:[%s169_s21 + $0x10] sm:$0xff] }
  0x10   : > { %364 = vmatpush.bf16.msra.mxu0 %v355_v3  ;;  %681 = vmatpush.bf16.msra.mxu1 %v355_v3  ;;  %v668_v5 = vld [vmem:[%s169_s21 + $0x20] sm:$0xff]  ;;  %v669_v9 = vld [vmem:[%s169_s21 + $0x28] sm:$0xff]  ;;  %v670_v13 = vld [vmem:[%s169_s21 + $0x30] sm:$0xff] }
  0x11   : > { %682 = vmatpush.bf16.msra.mxu2 %v355_v3  ;;  %683 = vmatpush.bf16.msra.mxu3 %v355_v3  ;;  %v672_v6 = vld [vmem:[%s169_s21 + $0x40] sm:$0xff]  ;;  %v673_v10 = vld [vmem:[%s169_s21 + $0x48] sm:$0xff]  ;;  %v674_v14 = vld [vmem:[%s169_s21 + $0x50] sm:$0xff] }
  0x12   : > { %v676_v7 = vld [vmem:[%s169_s21 + $0x60] sm:$0xff]  ;;  %v677_v11 = vld [vmem:[%s169_s21 + $0x68] sm:$0xff]  ;;  %v678_v15 = vld [vmem:[%s169_s21 + $0x70] sm:$0xff] }
  0x13   : > { %646 = vmatmul.msk.bf16.vlgmr.msra.gmra.mxu0 %vm304_vm1, %v664_v4  ;;  %650 = vmatmul.msk.bf16.vlgmr.msra.gmra.mxu1 %vm304_vm1, %v668_v5  ;;  %v667_v16 = vld [vmem:[%s169_s21 + $0x18] sm:$0xff] }
  0x14   : > { %654 = vmatmul.msk.bf16.vlgmr.msra.gmra.mxu2 %vm304_vm1, %v672_v6  ;;  %658 = vmatmul.msk.bf16.vlgmr.msra.gmra.mxu3 %vm304_vm1, %v676_v7  ;;  %v671_v17 = vld [vmem:[%s169_s21 + $0x38] sm:$0xff] }
  0x15   : > { %v675_v18 = vld [vmem:[%s169_s21 + $0x58] sm:$0xff] }
  0x16   : > { %v679_v19 = vld [vmem:[%s169_s21 + $0x78] sm:$0xff] }
  0x23   : > { %647 = vmatmul.msk.bf16.gmra.mxu0 %vm304_vm1, %v665_v8  ;;  %651 = vmatmul.msk.bf16.gmra.mxu1 %vm304_vm1, %v669_v9 }
  0x24   : > { %655 = vmatmul.msk.bf16.gmra.mxu2 %vm304_vm1, %v673_v10  ;;  %659 = vmatmul.msk.bf16.gmra.mxu3 %vm304_vm1, %v677_v11 }
  0x33   : > { %648 = vmatmul.msk.bf16.gmra.mxu0 %vm304_vm1, %v666_v12  ;;  %652 = vmatmul.msk.bf16.gmra.mxu1 %vm304_vm1, %v670_v13 }
  0x34   : > { %656 = vmatmul.msk.bf16.gmra.mxu2 %vm304_vm1, %v674_v14  ;;  %660 = vmatmul.msk.bf16.gmra.mxu3 %vm304_vm1, %v678_v15 }
  0x43   : > { %649 = vmatmul.msk.bf16.gmra.mxu0 %vm304_vm1, %v667_v16  ;;  %653 = vmatmul.msk.bf16.gmra.mxu1 %vm304_vm1, %v671_v17 }
  0x44   : > { %657 = vmatmul.msk.bf16.gmra.mxu2 %vm304_vm1, %v675_v18  ;;  %661 = vmatmul.msk.bf16.gmra.mxu3 %vm304_vm1, %v679_v19 }
  0x90   : > { %v366_v20 = vpop.f32.mrf.mxu0  ;;  %v386_v21 = vpop.f32.mrf.mxu1 }
  0x91   : > { %446 = vst [vmem:[%s797_s25] sm:$0xff] %v366_v20 }
  0x92   : > { %454 = vst [vmem:[%s797_s25 + $0x40] sm:$0xff] %v386_v21 }
  0x97   : > { %v406_v22 = vpop.f32.mrf.mxu2  ;;  %v426_v23 = vpop.f32.mrf.mxu3 }
  0x98   : > { %462 = vst [vmem:[%s797_s25 + $0x80] sm:$0xff] %v406_v22  ;;  %v368_v24 = vpop.f32.mrf.mxu0  ;;  %v388_v25 = vpop.f32.mrf.mxu1 }
  0x99   : > { %470 = vst [vmem:[%s797_s25 + $0xc0] sm:$0xff] %v426_v23 }
  0x9a   : > { %447 = vst [vmem:[%s797_s25 + $0x8] sm:$0xff] %v368_v24 }
  0x9b   : > { %455 = vst [vmem:[%s797_s25 + $0x48] sm:$0xff] %v388_v25 }
  0x9f   : > { %v408_v26 = vpop.f32.mrf.mxu2  ;;  %v428_v27 = vpop.f32.mrf.mxu3 }
  0xa0   : > { %463 = vst [vmem:[%s797_s25 + $0x88] sm:$0xff] %v408_v26  ;;  %v371_v28 = vpop.f32.mrf.mxu0  ;;  %v391_v29 = vpop.f32.mrf.mxu1 }
  0xa1   : > { %471 = vst [vmem:[%s797_s25 + $0xc8] sm:$0xff] %v428_v27 }
  0xa2   : > { %448 = vst [vmem:[%s797_s25 + $0x10] sm:$0xff] %v371_v28 }
  0xa3   : > { %456 = vst [vmem:[%s797_s25 + $0x50] sm:$0xff] %v391_v29 }
  0xa7   : > { %v411_v30 = vpop.f32.mrf.mxu2  ;;  %v431_v31 = vpop.f32.mrf.mxu3 }
  0xa8   : > { %464 = vst [vmem:[%s797_s25 + $0x90] sm:$0xff] %v411_v30  ;;  %v373_v32 = vpop.f32.mrf.mxu0  ;;  %v393_v33 = vpop.f32.mrf.mxu1 }
  0xa9   : > { %472 = vst [vmem:[%s797_s25 + $0xd0] sm:$0xff] %v431_v31 }
  0xaa   : > { %449 = vst [vmem:[%s797_s25 + $0x18] sm:$0xff] %v373_v32 }
  0xab   : > { %457 = vst [vmem:[%s797_s25 + $0x58] sm:$0xff] %v393_v33 }
  0xaf   : > { %v413_v34 = vpop.f32.mrf.mxu2  ;;  %v433_v35 = vpop.f32.mrf.mxu3 }
  0xb0   : > { %465 = vst [vmem:[%s797_s25 + $0x98] sm:$0xff] %v413_v34  ;;  %v376_v36 = vpop.f32.mrf.mxu0  ;;  %v396_v37 = vpop.f32.mrf.mxu1 }
  0xb1   : > { %473 = vst [vmem:[%s797_s25 + $0xd8] sm:$0xff] %v433_v35 }
  0xb2   : > { %450 = vst [vmem:[%s797_s25 + $0x20] sm:$0xff] %v376_v36 }
  0xb3   : > { %458 = vst [vmem:[%s797_s25 + $0x60] sm:$0xff] %v396_v37 }
  0xb7   : > { %v416_v38 = vpop.f32.mrf.mxu2  ;;  %v436_v39 = vpop.f32.mrf.mxu3 }
  0xb8   : > { %466 = vst [vmem:[%s797_s25 + $0xa0] sm:$0xff] %v416_v38  ;;  %v378_v40 = vpop.f32.mrf.mxu0  ;;  %v398_v41 = vpop.f32.mrf.mxu1 }
  0xb9   : > { %474 = vst [vmem:[%s797_s25 + $0xe0] sm:$0xff] %v436_v39 }
  0xba   : > { %451 = vst [vmem:[%s797_s25 + $0x28] sm:$0xff] %v378_v40 }
  0xbb   : > { %459 = vst [vmem:[%s797_s25 + $0x68] sm:$0xff] %v398_v41 }
  0xbf   : > { %v418_v42 = vpop.f32.mrf.mxu2  ;;  %v438_v43 = vpop.f32.mrf.mxu3 }
  0xc0   : > { %467 = vst [vmem:[%s797_s25 + $0xa8] sm:$0xff] %v418_v42  ;;  %v381_v44 = vpop.f32.mrf.mxu0  ;;  %v401_v45 = vpop.f32.mrf.mxu1 }
  0xc1   : > { %475 = vst [vmem:[%s797_s25 + $0xe8] sm:$0xff] %v438_v43 }
  0xc2   : > { %452 = vst [vmem:[%s797_s25 + $0x30] sm:$0xff] %v381_v44 }
  0xc3   : > { %460 = vst [vmem:[%s797_s25 + $0x70] sm:$0xff] %v401_v45 }
  0xc7   : > { %v421_v46 = vpop.f32.mrf.mxu2  ;;  %v441_v47 = vpop.f32.mrf.mxu3 }
  0xc8   : > { %468 = vst [vmem:[%s797_s25 + $0xb0] sm:$0xff] %v421_v46  ;;  %v383_v48 = vpop.f32.mrf.mxu0  ;;  %v403_v49 = vpop.f32.mrf.mxu1 }
  0xc9   : > { %476 = vst [vmem:[%s797_s25 + $0xf0] sm:$0xff] %v441_v47 }
  0xca   : > { %453 = vst [vmem:[%s797_s25 + $0x38] sm:$0xff] %v383_v48 }
  0xcb   : > { %461 = vst [vmem:[%s797_s25 + $0x78] sm:$0xff] %v403_v49 }
  0xcf   : > { %v423_v50 = vpop.f32.mrf.mxu2  ;;  %v443_v51 = vpop.f32.mrf.mxu3 }
  0xd0   : > { %469 = vst [vmem:[%s797_s25 + $0xb8] sm:$0xff] %v423_v50 }
  0xd1   : > { %477 = vst [vmem:[%s797_s25 + $0xf8] sm:$0xff] %v443_v51 }
  0xd2 PF: > { %s12_s11 = sadd.s32 1, %s730_s11   ;;  %s843_s9 = smov %s726_s10 }
  0xd3   : > { %p9_p5 = scmp.ge.s32.totalorder %s12_s11, 4   ;;  %s844_s10 = smov %s846_s12 }
  0xd5   :  { %11 = sbr.rel (!%p9_p5) target bundleno = 2 (0x2), region = 61 }

// kernel: _lambda_.360
= control target key start
LH: loop header
LB: loop body
LE: loop exit
PB: predicated region body
PF: predicated region fallthrough
CT: control target
= control target key end

     0   :  { %v48_v0 = vmov 0   ;;  %s99_s1 = inlined_call_operand.vmem [shape: f32[8,1], index: 1, kind: input, shape index: {}]   ;;  %s100_s2 = inlined_call_operand.vmem [shape: f32[8,1], index: 2, kind: input, shape index: {}]   ;;  %s101_s0 = inlined_call_operand.vmem [shape: f32[8,512], index: 0, kind: input, shape index: {}]   ;;  %s102_s3 = inlined_call_operand.vmem [shape: f32[8,512], index: 3, kind: output, shape index: {}]  }
   0x1   :  { %47 = vset.pattern.permute.xlu0 %v48_v0  ;;  %v18_v1 = vld [vmem:[%s99_s1] sm:$0xff]  ;;  %v15_v5 = vld [vmem:[%s101_s0 + $0x8] sm:$0xff]  ;;  %v16_v6 = vld [vmem:[%s101_s0 + $0x10] sm:$0xff] }
   0x2   :  { %21 = vperm.xlu0 %47, %v18_v1   ;;  %v28_v2 = vld [vmem:[%s100_s2] sm:$0xff]  ;;  %v17_v7 = vld [vmem:[%s101_s0 + $0x18] sm:$0xff] }
   0x3   :  { %v14_v4 = vld [vmem:[%s101_s0] sm:$0xff] }
   0xa   :  { %31 = vperm.xlu0 %47, %v28_v2  }
  0x74   :  { %v22_v3 = vpop.permute.xlu0 %21 }
  0x75   :  { %v24_v8 = vsub.f32 %v14_v4, %v22_v3  ;;  %v25_v9 = vsub.f32 %v15_v5, %v22_v3  ;;  %v26_v10 = vsub.f32 %v16_v6, %v22_v3  ;;  %v27_v12 = vsub.f32 %v17_v7, %v22_v3 }
  0x7c   :  { %v32_v11 = vpop.permute.xlu0 %31 }
  0x7d   :  { %v34_v13 = vmul.f32 %v32_v11, %v24_v8  ;;  %v35_v14 = vmul.f32 %v32_v11, %v25_v9  ;;  %v36_v15 = vmul.f32 %v32_v11, %v26_v10  ;;  %v37_v16 = vmul.f32 %v32_v11, %v27_v12 }
  0x7f   :  { %38 = vst [vmem:[%s102_s3] sm:$0xff] %v34_v13 }
  0x80   :  { %39 = vst [vmem:[%s102_s3 + $0x8] sm:$0xff] %v35_v14 }
  0x81   :  { %40 = vst [vmem:[%s102_s3 + $0x10] sm:$0xff] %v36_v15 }
  0x82   :  { %41 = vst [vmem:[%s102_s3 + $0x18] sm:$0xff] %v37_v16 }

// kernel: _lambda_.364
= control target key start
LH: loop header
LB: loop body
LE: loop exit
PB: predicated region body
PF: predicated region fallthrough
CT: control target
= control target key end

     0   :  { %s118_s0 = inlined_call_operand.vmem [shape: f32[9,16,128], index: 0, kind: input, shape index: {}]   ;;  %s119_s1 = inlined_call_operand.vmem [shape: f32[16,128], index: 1, kind: output, shape index: {}]  }
   0x1   :  { %v8_v0 = vld [vmem:[%s118_s0] sm:$0xff]  ;;  %v10_v1 = vld [vmem:[%s118_s0 + $0x10] sm:$0xff]  ;;  %v9_v6 = vld [vmem:[%s118_s0 + $0x8] sm:$0xff] }
   0x2   :  { %v12_v2 = vld [vmem:[%s118_s0 + $0x20] sm:$0xff]  ;;  %v26_v3 = vmax.f32 %v8_v0, %v10_v1  ;;  %v14_v4 = vld [vmem:[%s118_s0 + $0x30] sm:$0xff]  ;;  %v11_v7 = vld [vmem:[%s118_s0 + $0x18] sm:$0xff] }
   0x3   :  { %v13_v8 = vld [vmem:[%s118_s0 + $0x28] sm:$0xff]  ;;  %v16_v9 = vld [vmem:[%s118_s0 + $0x40] sm:$0xff]  ;;  %v27_v10 = vmax.f32 %v9_v6, %v11_v7  ;;  %v15_v12 = vld [vmem:[%s118_s0 + $0x38] sm:$0xff] }
   0x4   :  { %v28_v5 = vmax.f32 %v26_v3, %v12_v2  ;;  %v18_v13 = vld [vmem:[%s118_s0 + $0x50] sm:$0xff]  ;;  %v17_v16 = vld [vmem:[%s118_s0 + $0x48] sm:$0xff]  ;;  %v20_v17 = vld [vmem:[%s118_s0 + $0x60] sm:$0xff] }
   0x5   :  { %v29_v14 = vmax.f32 %v27_v10, %v13_v8  ;;  %v19_v20 = vld [vmem:[%s118_s0 + $0x58] sm:$0xff]  ;;  %v22_v21 = vld [vmem:[%s118_s0 + $0x70] sm:$0xff]  ;;  %v21_v24 = vld [vmem:[%s118_s0 + $0x68] sm:$0xff] }
   0x6   :  { %v30_v11 = vmax.f32 %v28_v5, %v14_v4  ;;  %v24_v25 = vld [vmem:[%s118_s0 + $0x80] sm:$0xff]  ;;  %v23_v28 = vld [vmem:[%s118_s0 + $0x78] sm:$0xff]  ;;  %v25_v31 = vld [vmem:[%s118_s0 + $0x88] sm:$0xff] }
   0x7   :  { %v31_v18 = vmax.f32 %v29_v14, %v15_v12 }
   0x8   :  { %v32_v15 = vmax.f32 %v30_v11, %v16_v9 }
   0x9   :  { %v33_v22 = vmax.f32 %v31_v18, %v17_v16 }
   0xa   :  { %v34_v19 = vmax.f32 %v32_v15, %v18_v13 }
   0xb   :  { %v35_v26 = vmax.f32 %v33_v22, %v19_v20 }
   0xc   :  { %v36_v23 = vmax.f32 %v34_v19, %v20_v17 }
   0xd   :  { %v37_v29 = vmax.f32 %v35_v26, %v21_v24 }
   0xe   :  { %v38_v27 = vmax.f32 %v36_v23, %v22_v21 }
   0xf   :  { %v39_v32 = vmax.f32 %v37_v29, %v23_v28 }
  0x10   :  { %v40_v30 = vmax.f32 %v38_v27, %v24_v25 }
  0x11   :  { %v41_v33 = vmax.f32 %v39_v32, %v25_v31 }
  0x12   :  { %42 = vst [vmem:[%s119_s1] sm:$0xff] %v40_v30 }
  0x13   :  { %43 = vst [vmem:[%s119_s1 + $0x8] sm:$0xff] %v41_v33 }

// kernel: _lambda_.365
= control target key start
LH: loop header
LB: loop body
LE: loop exit
PB: predicated region body
PF: predicated region fallthrough
CT: control target
= control target key end

     0   :  { %vm14_vm0 = vcmask 7168   ;;  %v39_v1 = vmov 0.0   ;;  %s80_s0 = inlined_call_operand.vmem [shape: f32[8,128], index: 0, kind: input, shape index: {}]   ;;  %s81_s1 = inlined_call_operand.vmem [shape: f32[8,1], index: 1, kind: output, shape index: {0}]   ;;  %s82_s2 = inlined_call_operand.vmem [shape: f32[8,1], index: 2, kind: output, shape index: {1}]  }
   0x1   :  { %v17_v0 = vld [vmem:[%s80_s0] sm:$0xff]  ;;  %15 = vst.msk [vmem:[%s81_s1] sm:$0xff] %vm14_vm0, %v39_v1 }
   0x2   :  { %19 = vadd.xlane.f32.xlu0 %v17_v0  ;;  %16 = vst.msk [vmem:[%s82_s2] sm:$0xff] %vm14_vm0, %v39_v1  ;;  %v25_v2 = vmul.f32 %v17_v0, %v17_v0 }
   0x8   :  { %v18_v3 = vld [vmem:[%s81_s1] sm:$0xff] }
   0x9   :  { %v24_v6 = vld [vmem:[%s82_s2] sm:$0xff] }
   0xa   :  { %26 = vadd.xlane.f32.xlu0 %v25_v2 }
  0x75   :  { %v20_v4 = vpop.xlane.xlu0 %19 }
  0x76   :  { %v21_v5 = vadd.f32 %v20_v4, %v18_v3 }
  0x78   :  { %23 = vst.msk [vmem:[%s81_s1] sm:$0xff] %vm14_vm0, %v21_v5 }
  0x7d   :  { %v27_v7 = vpop.xlane.xlu0 %26 }
  0x7e   :  { %v28_v8 = vadd.f32 %v27_v7, %v24_v6 }
  0x80   :  { %29 = vst.msk [vmem:[%s82_s2] sm:$0xff] %vm14_vm0, %v28_v8 }

// kernel: _lambda_.366
= control target key start
LH: loop header
LB: loop body
LE: loop exit
PB: predicated region body
PF: predicated region fallthrough
CT: control target
= control target key end

     0   :  { %v36_v0 = vmov 0   ;;  %s69_s1 = inlined_call_operand.vmem [shape: f32[8,1], index: 1, kind: input, shape index: {}]   ;;  %s70_s2 = inlined_call_operand.vmem [shape: f32[8,1], index: 2, kind: input, shape index: {}]   ;;  %s71_s0 = inlined_call_operand.vmem [shape: f32[8,128], index: 0, kind: input, shape index: {}]   ;;  %s72_s3 = inlined_call_operand.vmem [shape: f32[8,128], index: 3, kind: output, shape index: {}]  }
   0x1   :  { %35 = vset.pattern.permute.xlu0 %v36_v0  ;;  %v15_v1 = vld [vmem:[%s69_s1] sm:$0xff] }
   0x2   :  { %18 = vperm.xlu0 %35, %v15_v1   ;;  %v22_v2 = vld [vmem:[%s70_s2] sm:$0xff] }
   0x3   :  { %v14_v4 = vld [vmem:[%s71_s0] sm:$0xff] }
   0xa   :  { %25 = vperm.xlu0 %35, %v22_v2  }
  0x74   :  { %v19_v3 = vpop.permute.xlu0 %18 }
  0x75   :  { %v21_v5 = vsub.f32 %v14_v4, %v19_v3 }
  0x7c   :  { %v26_v6 = vpop.permute.xlu0 %25 }
  0x7d   :  { %v28_v7 = vmul.f32 %v26_v6, %v21_v5 }
  0x7f   :  { %29 = vst [vmem:[%s72_s3] sm:$0xff] %v28_v7 }

// kernel: _lambda_.367
= control target key start
LH: loop header
LB: loop body
LE: loop exit
PB: predicated region body
PF: predicated region fallthrough
CT: control target
= control target key end

     0   :  { %s136_s0 = inlined_call_operand.vmem [shape: f32[9,16,128], index: 0, kind: input, shape index: {}]   ;;  %s137_s1 = inlined_call_operand.vmem [shape: f32[1,128], index: 1, kind: input, shape index: {}]   ;;  %s138_s2 = inlined_call_operand.vmem [shape: f32[16,128], index: 2, kind: output, shape index: {}]  }
   0x1   :  { %v11_v0 = vld [vmem:[%s136_s0] sm:$0xff]  ;;  %v13_v1 = vld [vmem:[%s136_s0 + $0x10] sm:$0xff]  ;;  %v12_v6 = vld [vmem:[%s136_s0 + $0x8] sm:$0xff] }
   0x2   :  { %v15_v2 = vld [vmem:[%s136_s0 + $0x20] sm:$0xff]  ;;  %v29_v3 = vadd.f32 %v13_v1, %v11_v0  ;;  %v17_v4 = vld [vmem:[%s136_s0 + $0x30] sm:$0xff]  ;;  %v14_v8 = vld [vmem:[%s136_s0 + $0x18] sm:$0xff] }
   0x3   :  { %v19_v7 = vld [vmem:[%s136_s0 + $0x40] sm:$0xff]  ;;  %v16_v9 = vld [vmem:[%s136_s0 + $0x28] sm:$0xff]  ;;  %v30_v11 = vadd.f32 %v14_v8, %v12_v6  ;;  %v21_v12 = vld [vmem:[%s136_s0 + $0x50] sm:$0xff] }
   0x4   :  { %v31_v5 = vadd.f32 %v29_v3, %v15_v2  ;;  %v18_v13 = vld [vmem:[%s136_s0 + $0x38] sm:$0xff]  ;;  %v23_v16 = vld [vmem:[%s136_s0 + $0x60] sm:$0xff]  ;;  %v20_v17 = vld [vmem:[%s136_s0 + $0x48] sm:$0xff] }
   0x5   :  { %v32_v15 = vadd.f32 %v30_v11, %v16_v9  ;;  %v25_v20 = vld [vmem:[%s136_s0 + $0x70] sm:$0xff]  ;;  %v22_v21 = vld [vmem:[%s136_s0 + $0x58] sm:$0xff]  ;;  %v27_v24 = vld [vmem:[%s136_s0 + $0x80] sm:$0xff] }
   0x6   :  { %v33_v10 = vadd.f32 %v31_v5, %v17_v4  ;;  %v24_v25 = vld [vmem:[%s136_s0 + $0x68] sm:$0xff]  ;;  %v57_v27 = vld [vmem:[%s137_s1] ss:$0 sm:$0xff]  ;;  %v26_v29 = vld [vmem:[%s136_s0 + $0x78] sm:$0xff] }
   0x7   :  { %v34_v19 = vadd.f32 %v32_v15, %v18_v13  ;;  %v28_v32 = vld [vmem:[%s136_s0 + $0x88] sm:$0xff] }
   0x8   :  { %v35_v14 = vadd.f32 %v33_v10, %v19_v7 }
   0x9   :  { %v36_v23 = vadd.f32 %v34_v19, %v20_v17 }
   0xa   :  { %v37_v18 = vadd.f32 %v35_v14, %v21_v12 }
   0xb   :  { %v38_v28 = vadd.f32 %v36_v23, %v22_v21 }
   0xc   :  { %v39_v22 = vadd.f32 %v37_v18, %v23_v16 }
   0xd   :  { %v40_v31 = vadd.f32 %v38_v28, %v24_v25 }
   0xe   :  { %v41_v26 = vadd.f32 %v39_v22, %v25_v20 }
   0xf   :  { %v42_v34 = vadd.f32 %v40_v31, %v26_v29 }
  0x10   :  { %v43_v30 = vadd.f32 %v41_v26, %v27_v24 }
  0x11   :  { %v44_v35 = vadd.f32 %v42_v34, %v28_v32 }
  0x12   :  { %v49_v33 = vmul.f32 %v57_v27, %v43_v30 }
  0x13   :  { %v50_v36 = vmul.f32 %v57_v27, %v44_v35 }
  0x14   :  { %51 = vst [vmem:[%s138_s2] sm:$0xff] %v49_v33 }
  0x15   :  { %52 = vst [vmem:[%s138_s2 + $0x8] sm:$0xff] %v50_v36 }

// kernel: _lambda_.434
= control target key start
LH: loop header
LB: loop body
LE: loop exit
PB: predicated region body
PF: predicated region fallthrough
CT: control target
= control target key end

     0   :  { %vm94_vm0 = vcmask 1043456   ;;  %vm69_vm1 = vcmask 64512   ;;  %s316_s1 = inlined_call_operand.vmem [shape: bf16[8,128], index: 1, kind: input, shape index: {}]   ;;  %s317_s0 = inlined_call_operand.vmem [shape: bf16[128,8], index: 0, kind: input, shape index: {}]   ;;  %s318_s2 = inlined_call_operand.vmem [shape: f32[128,128], index: 2, kind: output, shape index: {}]  }
   0x1   :  { %v28_v0 = vld [vmem:[%s316_s1] sm:$0xf]  ;;  %v209_v3 = vld [vmem:[%s317_s0 + $0x10] sm:$0xff]  ;;  %v208_v6 = vld [vmem:[%s317_s0 + $0x8] sm:$0xff] }
   0x2   :  { %v96_v1 = vsel %vm94_vm0, %v28_v0, 0  ;;  %v207_v2 = vld [vmem:[%s317_s0] sm:$0xff]  ;;  %v213_v5 = vld [vmem:[%s317_s0 + $0x30] sm:$0xff]  ;;  %v210_v7 = vld [vmem:[%s317_s0 + $0x18] sm:$0xff] }
   0x3   :  { %105 = vmatpush.bf16.msra.mxu0 %v96_v1  ;;  %215 = vmatpush.bf16.msra.mxu1 %v96_v1  ;;  %v211_v4 = vld [vmem:[%s317_s0 + $0x20] sm:$0xff]  ;;  %v212_v8 = vld [vmem:[%s317_s0 + $0x28] sm:$0xff]  ;;  %v214_v9 = vld [vmem:[%s317_s0 + $0x38] sm:$0xff] }
   0x4   :  { %216 = vmatpush.bf16.msra.mxu2 %v96_v1  ;;  %217 = vmatpush.bf16.msra.mxu3 %v96_v1 }
   0x6   :  { %199 = vmatmul.msk.bf16.vlgmr.msra.gmra.mxu0 %vm69_vm1, %v207_v2  ;;  %201 = vmatmul.msk.bf16.vlgmr.msra.gmra.mxu1 %vm69_vm1, %v209_v3 }
   0x7   :  { %203 = vmatmul.msk.bf16.vlgmr.msra.gmra.mxu2 %vm69_vm1, %v211_v4  ;;  %205 = vmatmul.msk.bf16.vlgmr.msra.gmra.mxu3 %vm69_vm1, %v213_v5 }
  0x16   :  { %200 = vmatmul.msk.bf16.gmra.mxu0 %vm69_vm1, %v208_v6  ;;  %202 = vmatmul.msk.bf16.gmra.mxu1 %vm69_vm1, %v210_v7 }
  0x17   :  { %204 = vmatmul.msk.bf16.gmra.mxu2 %vm69_vm1, %v212_v8  ;;  %206 = vmatmul.msk.bf16.gmra.mxu3 %vm69_vm1, %v214_v9 }
  0x83   :  { %v107_v10 = vpop.f32.mrf.mxu0  ;;  %v117_v11 = vpop.f32.mrf.mxu1 }
  0x84   :  { %147 = vst [vmem:[%s318_s2] sm:$0xff] %v107_v10 }
  0x85   :  { %151 = vst [vmem:[%s318_s2 + $0x20] sm:$0xff] %v117_v11 }
  0x8a   :  { %v127_v12 = vpop.f32.mrf.mxu2  ;;  %v137_v13 = vpop.f32.mrf.mxu3 }
  0x8b   :  { %155 = vst [vmem:[%s318_s2 + $0x40] sm:$0xff] %v127_v12  ;;  %v109_v14 = vpop.f32.mrf.mxu0  ;;  %v119_v15 = vpop.f32.mrf.mxu1 }
  0x8c   :  { %159 = vst [vmem:[%s318_s2 + $0x60] sm:$0xff] %v137_v13 }
  0x8d   :  { %148 = vst [vmem:[%s318_s2 + $0x8] sm:$0xff] %v109_v14 }
  0x8e   :  { %152 = vst [vmem:[%s318_s2 + $0x28] sm:$0xff] %v119_v15 }
  0x92   :  { %v129_v16 = vpop.f32.mrf.mxu2  ;;  %v139_v17 = vpop.f32.mrf.mxu3 }
  0x93   :  { %156 = vst [vmem:[%s318_s2 + $0x48] sm:$0xff] %v129_v16  ;;  %v112_v18 = vpop.f32.mrf.mxu0  ;;  %v122_v19 = vpop.f32.mrf.mxu1 }
  0x94   :  { %160 = vst [vmem:[%s318_s2 + $0x68] sm:$0xff] %v139_v17 }
  0x95   :  { %149 = vst [vmem:[%s318_s2 + $0x10] sm:$0xff] %v112_v18 }
  0x96   :  { %153 = vst [vmem:[%s318_s2 + $0x30] sm:$0xff] %v122_v19 }
  0x9a   :  { %v132_v20 = vpop.f32.mrf.mxu2  ;;  %v142_v21 = vpop.f32.mrf.mxu3 }
  0x9b   :  { %157 = vst [vmem:[%s318_s2 + $0x50] sm:$0xff] %v132_v20  ;;  %v114_v22 = vpop.f32.mrf.mxu0  ;;  %v124_v23 = vpop.f32.mrf.mxu1 }
  0x9c   :  { %161 = vst [vmem:[%s318_s2 + $0x70] sm:$0xff] %v142_v21 }
  0x9d   :  { %150 = vst [vmem:[%s318_s2 + $0x18] sm:$0xff] %v114_v22 }
  0x9e   :  { %154 = vst [vmem:[%s318_s2 + $0x38] sm:$0xff] %v124_v23 }
  0xa2   :  { %v134_v24 = vpop.f32.mrf.mxu2  ;;  %v144_v25 = vpop.f32.mrf.mxu3 }
  0xa3   :  { %158 = vst [vmem:[%s318_s2 + $0x58] sm:$0xff] %v134_v24 }
  0xa4   :  { %162 = vst [vmem:[%s318_s2 + $0x78] sm:$0xff] %v144_v25 }

// kernel: _lambda_.437
= control target key start
LH: loop header
LB: loop body
LE: loop exit
PB: predicated region body
PF: predicated region fallthrough
CT: control target
= control target key end

     0   :  { %v98_v0 = vmov 0   ;;  %v99_v1 = vmov 2   ;;  %v100_v3 = vmov 4   ;;  %v101_v4 = vmov 1   ;;  %s155_s1 = inlined_call_operand.vmem [shape: f32[8,9], index: 1, kind: input, shape index: {}]   ;;  %s156_s0 = inlined_call_operand.vmem [shape: f32[9,8,128], index: 0, kind: input, shape index: {}]   ;;  %s157_s2 = inlined_call_operand.vmem [shape: f32[8,128], index: 2, kind: output, shape index: {}]  }
   0x1   :  { %89 = vset.pattern.permute.xlu0 %v98_v0  ;;  %91 = vset.pattern.permute.xlu1 %v99_v1  ;;  %v20_v2 = vld [vmem:[%s155_s1] sm:$0xff]  ;;  %v102_v5 = vmov 3   ;;  %v103_v6 = vmov 5   ;;  %v104_v7 = vmov 6   ;;  %v105_v8 = vmov 8   ;;  %v12_v14 = vld [vmem:[%s156_s0 + $0x8] sm:$0xff] }
   0x2   :  { %23 = vperm.xlu0 %89, %v20_v2   ;;  %34 = vperm.xlu1 %91, %v20_v2   ;;  %v106_v9 = vmov 7   ;;  %v11_v13 = vld [vmem:[%s156_s0] sm:$0xff]  ;;  %v13_v16 = vld [vmem:[%s156_s0 + $0x10] sm:$0xff]  ;;  %v14_v21 = vld [vmem:[%s156_s0 + $0x18] sm:$0xff] }
   0x3   :  { %93 = vset.pattern.permute.xlu2 %v100_v3  ;;  %v15_v24 = vld [vmem:[%s156_s0 + $0x20] sm:$0xff]  ;;  %v16_v27 = vld [vmem:[%s156_s0 + $0x28] sm:$0xff]  ;;  %v17_v30 = vld [vmem:[%s156_s0 + $0x30] sm:$0xff] }
   0x4   :  { %46 = vperm.xlu2 %93, %v20_v2   ;;  %v18_v32 = vld [vmem:[%s156_s0 + $0x38] sm:$0xff]  ;;  %v19_v38 = vld [vmem:[%s156_s0 + $0x40] sm:$0xff] }
   0xa   :  { %90 = vset.pattern.permute.xlu0 %v101_v4  ;;  %92 = vset.pattern.permute.xlu1 %v102_v5 }
   0xb   :  { %28 = vperm.xlu0 %90, %v20_v2   ;;  %40 = vperm.xlu1 %92, %v20_v2  }
   0xc   :  { %94 = vset.pattern.permute.xlu2 %v103_v6 }
   0xd   :  { %52 = vperm.xlu2 %94, %v20_v2  }
  0x13   :  { %95 = vset.pattern.permute.xlu1 %v104_v7  ;;  %97 = vset.pattern.permute.xlu0 %v105_v8 }
  0x14   :  { %58 = vperm.xlu1 %95, %v20_v2   ;;  %70 = vperm.xlu0 %97, %v20_v2  }
  0x15   :  { %96 = vset.pattern.permute.xlu2 %v106_v9 }
  0x16   :  { %64 = vperm.xlu2 %96, %v20_v2  }
  0x5e   :  { %v47_v10 = vpop.permute.xlu2 %46 }
  0x5f   :  { %v49_v28 = vmul.f32 %v47_v10, %v15_v24 }
  0x67   :  { %v53_v15 = vpop.permute.xlu2 %52 }
  0x68   :  { %v55_v34 = vmul.f32 %v53_v15, %v16_v27 }
  0x70   :  { %v65_v31 = vpop.permute.xlu2 %64 }
  0x71   :  { %v67_v40 = vmul.f32 %v65_v31, %v18_v32 }
  0x74   :  { %v24_v11 = vpop.permute.xlu0 %23  ;;  %v35_v12 = vpop.permute.xlu1 %34 }
  0x75   :  { %v26_v19 = vmul.f32 %v24_v11, %v11_v13  ;;  %v37_v22 = vmul.f32 %v35_v12, %v13_v16 }
  0x7d   :  { %v29_v17 = vpop.permute.xlu0 %28  ;;  %v41_v18 = vpop.permute.xlu1 %40 }
  0x7e   :  { %v31_v20 = vmul.f32 %v29_v17, %v12_v14  ;;  %v43_v26 = vmul.f32 %v41_v18, %v14_v21 }
  0x80   :  { %v32_v23 = vadd.f32 %v31_v20, %v26_v19 }
  0x82   :  { %v38_v25 = vadd.f32 %v37_v22, %v32_v23 }
  0x84   :  { %v44_v29 = vadd.f32 %v43_v26, %v38_v25 }
  0x86   :  { %v50_v33 = vadd.f32 %v49_v28, %v44_v29  ;;  %v59_v35 = vpop.permute.xlu1 %58  ;;  %v71_v37 = vpop.permute.xlu0 %70 }
  0x87   :  { %v61_v36 = vmul.f32 %v59_v35, %v17_v30  ;;  %v73_v42 = vmul.f32 %v71_v37, %v19_v38 }
  0x88   :  { %v56_v39 = vadd.f32 %v55_v34, %v50_v33 }
  0x8a   :  { %v62_v41 = vadd.f32 %v61_v36, %v56_v39 }
  0x8c   :  { %v68_v43 = vadd.f32 %v67_v40, %v62_v41 }
  0x8e   :  { %v74_v44 = vadd.f32 %v73_v42, %v68_v43 }
  0x90   :  { %75 = vst [vmem:[%s157_s2] sm:$0xff] %v74_v44 }

// kernel: _lambda_.445
= control target key start
LH: loop header
LB: loop body
LE: loop exit
PB: predicated region body
PF: predicated region fallthrough
CT: control target
= control target key end

     0   :  { %v243_v0 = vmov 2   ;;  %v244_v1 = vmov 0   ;;  %v245_v3 = vmov 4   ;;  %v246_v4 = vmov 3   ;;  %s391_s1 = inlined_call_operand.vmem [shape: f32[8,25], index: 1, kind: input, shape index: {}]   ;;  %s392_s0 = inlined_call_operand.vmem [shape: f32[25,8,128], index: 0, kind: input, shape index: {}]   ;;  %s393_s2 = inlined_call_operand.vmem [shape: f32[8,128], index: 2, kind: output, shape index: {}]  }
   0x1   :  { %219 = vset.pattern.permute.xlu1 %v243_v0  ;;  %217 = vset.pattern.permute.xlu0 %v244_v1  ;;  %v286_v2 = vld [vmem:[%s391_s1] sm:$0xff]  ;;  %v247_v5 = vmov 1   ;;  %v248_v6 = vmov 5   ;;  %v249_v7 = vmov 6   ;;  %v250_v8 = vmov 8   ;;  %v12_v31 = vld [vmem:[%s392_s0 + $0x8] sm:$0xff] }
   0x2   :  { %50 = vperm.xlu1 %219, %v286_v2   ;;  %39 = vperm.xlu0 %217, %v286_v2   ;;  %v251_v9 = vmov 7   ;;  %v252_v10 = vmov 9   ;;  %v253_v11 = vmov 13   ;;  %v254_v12 = vmov 10   ;;  %v11_v30 = vld [vmem:[%s392_s0] sm:$0xff]  ;;  %v13_v33 = vld [vmem:[%s392_s0 + $0x10] sm:$0xff] }
   0x3   :  { %221 = vset.pattern.permute.xlu2 %v245_v3  ;;  %v255_v13 = vmov 11   ;;  %v256_v14 = vmov 18   ;;  %v257_v15 = vmov 12   ;;  %v258_v16 = vmov 14   ;;  %v14_v37 = vld [vmem:[%s392_s0 + $0x18] sm:$0xff]  ;;  %v15_v41 = vld [vmem:[%s392_s0 + $0x20] sm:$0xff] }
   0x4   :  { %62 = vperm.xlu2 %221, %v286_v2   ;;  %v259_v17 = vmov 23   ;;  %v260_v18 = vmov 15   ;;  %v261_v19 = vmov 16   ;;  %v262_v20 = vmov 24   ;;  %v16_v46 = vld [vmem:[%s392_s0 + $0x28] sm:$0xff]  ;;  %v17_v49 = vld [vmem:[%s392_s0 + $0x30] sm:$0xff] }
   0x5   :  { %v263_v21 = vmov 17   ;;  %v264_v22 = vmov 19   ;;  %v265_v23 = vmov 20   ;;  %v266_v24 = vmov 21   ;;  %v18_v54 = vld [vmem:[%s392_s0 + $0x38] sm:$0xff]  ;;  %v19_v59 = vld [vmem:[%s392_s0 + $0x40] sm:$0xff] }
   0x6   :  { %v267_v25 = vmov 22   ;;  %v20_v60 = vld [vmem:[%s392_s0 + $0x48] sm:$0xff]  ;;  %v21_v1 = vld [vmem:[%s392_s0 + $0x50] sm:$0xff] }
   0xa   :  { %220 = vset.pattern.permute.xlu1 %v246_v4  ;;  %218 = vset.pattern.permute.xlu0 %v247_v5  ;;  %v22_v4 = vld [vmem:[%s392_s0 + $0x58] sm:$0xff] }
   0xb   :  { %56 = vperm.xlu1 %220, %v286_v2   ;;  %44 = vperm.xlu0 %218, %v286_v2  }
   0xc   :  { %222 = vset.pattern.permute.xlu2 %v248_v6 }
   0xd   :  { %68 = vperm.xlu2 %222, %v286_v2  }
  0x13   :  { %223 = vset.pattern.permute.xlu1 %v249_v7  ;;  %225 = vset.pattern.permute.xlu0 %v250_v8  ;;  %v23_v8 = vld [vmem:[%s392_s0 + $0x60] sm:$0xff] }
  0x14   :  { %74 = vperm.xlu1 %223, %v286_v2   ;;  %86 = vperm.xlu0 %225, %v286_v2  }
  0x15   :  { %224 = vset.pattern.permute.xlu2 %v251_v9 }
  0x16   :  { %80 = vperm.xlu2 %224, %v286_v2  }
  0x1c   :  { %226 = vset.pattern.permute.xlu1 %v252_v10  ;;  %230 = vset.pattern.permute.xlu0 %v253_v11 }
  0x1d   :  { %92 = vperm.xlu1 %226, %v286_v2   ;;  %116 = vperm.xlu0 %230, %v286_v2  }
  0x1e   :  { %227 = vset.pattern.permute.xlu2 %v254_v12 }
  0x1f   :  { %98 = vperm.xlu2 %227, %v286_v2  }
  0x25   :  { %228 = vset.pattern.permute.xlu1 %v255_v13  ;;  %235 = vset.pattern.permute.xlu0 %v256_v14  ;;  %v24_v14 = vld [vmem:[%s392_s0 + $0x68] sm:$0xff] }
  0x26   :  { %104 = vperm.xlu1 %228, %v286_v2   ;;  %146 = vperm.xlu0 %235, %v286_v2  }
  0x27   :  { %229 = vset.pattern.permute.xlu2 %v257_v15 }
  0x28   :  { %110 = vperm.xlu2 %229, %v286_v2  }
  0x2e   :  { %231 = vset.pattern.permute.xlu1 %v258_v16  ;;  %240 = vset.pattern.permute.xlu0 %v259_v17  ;;  %v25_v16 = vld [vmem:[%s392_s0 + $0x70] sm:$0xff] }
  0x2f   :  { %122 = vperm.xlu1 %231, %v286_v2   ;;  %176 = vperm.xlu0 %240, %v286_v2  }
  0x30   :  { %232 = vset.pattern.permute.xlu2 %v260_v18 }
  0x31   :  { %128 = vperm.xlu2 %232, %v286_v2  }
  0x37   :  { %233 = vset.pattern.permute.xlu1 %v261_v19  ;;  %242 = vset.pattern.permute.xlu0 %v262_v20 }
  0x38   :  { %134 = vperm.xlu1 %233, %v286_v2  }
  0x39   :  { %234 = vset.pattern.permute.xlu2 %v263_v21 }
  0x3a   :  { %140 = vperm.xlu2 %234, %v286_v2  }
  0x40   :  { %236 = vset.pattern.permute.xlu1 %v264_v22 }
  0x41   :  { %152 = vperm.xlu1 %236, %v286_v2  }
  0x42   :  { %237 = vset.pattern.permute.xlu2 %v265_v23  ;;  %v27_v23 = vld [vmem:[%s392_s0 + $0x80] sm:$0xff] }
  0x43   :  { %158 = vperm.xlu2 %237, %v286_v2  }
  0x49   :  { %238 = vset.pattern.permute.xlu1 %v266_v24 }
  0x4a   :  { %164 = vperm.xlu1 %238, %v286_v2  }
  0x4b   :  { %239 = vset.pattern.permute.xlu2 %v267_v25 }
  0x4c   :  { %170 = vperm.xlu2 %239, %v286_v2  }
  0x52   :  { %241 = vset.pattern.permute.xlu1 %v262_v20  ;;  %v26_v20 = vld [vmem:[%s392_s0 + $0x78] sm:$0xff] }
  0x53   :  { %182 = vperm.xlu1 %241, %v286_v2  }
  0x5e   :  { %v63_v26 = vpop.permute.xlu2 %62 }
  0x5f   :  { %v65_v45 = vmul.f32 %v63_v26, %v15_v41 }
  0x67   :  { %v69_v29 = vpop.permute.xlu2 %68 }
  0x68   :  { %v71_v50 = vmul.f32 %v69_v29, %v16_v46  ;;  %v33_v46 = vld [vmem:[%s392_s0 + $0xb0] sm:$0xff] }
  0x70   :  { %v81_v38 = vpop.permute.xlu2 %80 }
  0x71   :  { %v83_v56 = vmul.f32 %v81_v38, %v18_v54 }
  0x74   :  { %v51_v27 = vpop.permute.xlu1 %50  ;;  %v40_v28 = vpop.permute.xlu0 %39 }
  0x75   :  { %v42_v32 = vmul.f32 %v40_v28, %v11_v30  ;;  %v53_v39 = vmul.f32 %v51_v27, %v13_v33  ;;  %v28_v28 = vld [vmem:[%s392_s0 + $0x88] sm:$0xff]  ;;  %v29_v33 = vld [vmem:[%s392_s0 + $0x90] sm:$0xff] }
  0x79   :  { %v99_v51 = vpop.permute.xlu2 %98 }
  0x7a   :  { %v101_v6 = vmul.f32 %v99_v51, %v21_v1 }
  0x7d   :  { %v57_v34 = vpop.permute.xlu1 %56  ;;  %v45_v35 = vpop.permute.xlu0 %44 }
  0x7e   :  { %v47_v36 = vmul.f32 %v45_v35, %v12_v31  ;;  %v59_v42 = vmul.f32 %v57_v34, %v14_v37  ;;  %v30_v35 = vld [vmem:[%s392_s0 + $0x98] sm:$0xff] }
  0x80   :  { %v48_v40 = vadd.f32 %v47_v36, %v42_v32 }
  0x82   :  { %v54_v43 = vadd.f32 %v53_v39, %v48_v40  ;;  %v111_v63 = vpop.permute.xlu2 %110  ;;  %v31_v40 = vld [vmem:[%s392_s0 + $0xa0] sm:$0xff] }
  0x83   :  { %v113_v12 = vmul.f32 %v111_v63, %v23_v8 }
  0x84   :  { %v60_v44 = vadd.f32 %v59_v42, %v54_v43 }
  0x86   :  { %v75_v47 = vpop.permute.xlu1 %74  ;;  %v66_v48 = vadd.f32 %v65_v45, %v60_v44  ;;  %v87_v58 = vpop.permute.xlu0 %86  ;;  %v32_v44 = vld [vmem:[%s392_s0 + $0xa8] sm:$0xff] }
  0x87   :  { %v77_v53 = vmul.f32 %v75_v47, %v17_v49  ;;  %v89_v62 = vmul.f32 %v87_v58, %v19_v59 }
  0x88   :  { %v72_v52 = vadd.f32 %v71_v50, %v66_v48 }
  0x8a   :  { %v78_v55 = vadd.f32 %v77_v53, %v72_v52  ;;  %v34_v53 = vld [vmem:[%s392_s0 + $0xb8] sm:$0xff] }
  0x8b   :  { %v129_v10 = vpop.permute.xlu2 %128 }
  0x8c   :  { %v84_v61 = vadd.f32 %v83_v56, %v78_v55  ;;  %v131_v25 = vmul.f32 %v129_v10, %v26_v20  ;;  %v35_v56 = vld [vmem:[%s392_s0 + $0xc0] sm:$0xff] }
  0x8e   :  { %v90_v2 = vadd.f32 %v89_v62, %v84_v61 }
  0x8f   :  { %v93_v57 = vpop.permute.xlu1 %92  ;;  %v117_v13 = vpop.permute.xlu0 %116 }
  0x90   :  { %v95_v0 = vmul.f32 %v93_v57, %v20_v60  ;;  %v119_v18 = vmul.f32 %v117_v13, %v24_v14 }
  0x92   :  { %v96_v5 = vadd.f32 %v95_v0, %v90_v2 }
  0x94   :  { %v102_v9 = vadd.f32 %v101_v6, %v96_v5  ;;  %v141_v22 = vpop.permute.xlu2 %140 }
  0x95   :  { %v143_v31 = vmul.f32 %v141_v22, %v28_v28 }
  0x98   :  { %v105_v3 = vpop.permute.xlu1 %104  ;;  %v147_v32 = vpop.permute.xlu0 %146 }
  0x99   :  { %v107_v7 = vmul.f32 %v105_v3, %v22_v4  ;;  %v149_v37 = vmul.f32 %v147_v32, %v29_v33 }
  0x9b   :  { %v108_v11 = vadd.f32 %v107_v7, %v102_v9 }
  0x9d   :  { %v114_v17 = vadd.f32 %v113_v12, %v108_v11  ;;  %v159_v34 = vpop.permute.xlu2 %158 }
  0x9e   :  { %v161_v43 = vmul.f32 %v159_v34, %v31_v40 }
  0x9f   :  { %v120_v21 = vadd.f32 %v119_v18, %v114_v17 }
  0xa1   :  { %v123_v15 = vpop.permute.xlu1 %122  ;;  %v177_v52 = vpop.permute.xlu0 %176 }
  0xa2   :  { %v125_v19 = vmul.f32 %v123_v15, %v25_v16  ;;  %v179_v55 = vmul.f32 %v177_v52, %v34_v53 }
  0xa4   :  { %v126_v24 = vadd.f32 %v125_v19, %v120_v21 }
  0xa6   :  { %v132_v29 = vadd.f32 %v131_v25, %v126_v24  ;;  %v171_v45 = vpop.permute.xlu2 %170 }
  0xa7   :  { %v173_v50 = vmul.f32 %v171_v45, %v33_v46 }
  0xaa   :  { %v135_v26 = vpop.permute.xlu1 %134 }
  0xab   :  { %v137_v27 = vmul.f32 %v135_v26, %v27_v23 }
  0xad   :  { %v138_v30 = vadd.f32 %v137_v27, %v132_v29 }
  0xaf   :  { %v144_v36 = vadd.f32 %v143_v31, %v138_v30 }
  0xb1   :  { %v150_v41 = vadd.f32 %v149_v37, %v144_v36 }
  0xb3   :  { %v153_v38 = vpop.permute.xlu1 %152 }
  0xb4   :  { %v155_v39 = vmul.f32 %v153_v38, %v30_v35 }
  0xb6   :  { %v156_v42 = vadd.f32 %v155_v39, %v150_v41 }
  0xb8   :  { %v162_v48 = vadd.f32 %v161_v43, %v156_v42 }
  0xbc   :  { %v165_v47 = vpop.permute.xlu1 %164 }
  0xbd   :  { %v167_v49 = vmul.f32 %v165_v47, %v32_v44 }
  0xbf   :  { %v168_v51 = vadd.f32 %v167_v49, %v162_v48 }
  0xc1   :  { %v174_v54 = vadd.f32 %v173_v50, %v168_v51 }
  0xc3   :  { %v180_v58 = vadd.f32 %v179_v55, %v174_v54 }
  0xc5   :  { %v183_v57 = vpop.permute.xlu1 %182 }
  0xc6   :  { %v185_v59 = vmul.f32 %v183_v57, %v35_v56 }
  0xc8   :  { %v186_v60 = vadd.f32 %v185_v59, %v180_v58 }
  0xca   :  { %187 = vst [vmem:[%s393_s2] sm:$0xff] %v186_v60 }

// kernel: _lambda_.432
= control target key start
LH: loop header
LB: loop body
LE: loop exit
PB: predicated region body
PF: predicated region fallthrough
CT: control target
= control target key end

     0   :  { %s158_s21 = smov [#allocation3]   ;;  %s287_s0 = inlined_call_operand.vmem [shape: f32[14], index: 0, kind: input, shape index: {}]   ;;  %s288_s1 = inlined_call_operand.vmem [shape: f32[8,128], index: 1, kind: input, shape index: {}]   ;;  %s289_s2 = inlined_call_operand.vmem [shape: f32[8,128], index: 2, kind: input, shape index: {}]   ;;  %s290_s3 = inlined_call_operand.vmem [shape: f32[8,128], index: 3, kind: input, shape index: {}]   ;;  %s291_s4 = inlined_call_operand.vmem [shape: f32[8,128], index: 4, kind: input, shape index: {}]   ;;  %s292_s5 = inlined_call_operand.vmem [shape: f32[8,128], index: 5, kind: input, shape index: {}]   ;;  %s293_s6 = inlined_call_operand.vmem [shape: f32[8,128], index: 6, kind: input, shape index: {}]   ;;  %s294_s7 = inlined_call_operand.vmem [shape: f32[8,128], index: 7, kind: input, shape index: {}]   ;;  %s295_s8 = inlined_call_operand.vmem [shape: f32[8,128], index: 8, kind: input, shape index: {}]   ;;  %s296_s9 = inlined_call_operand.vmem [shape: f32[8,128], index: 9, kind: input, shape index: {}]   ;;  %s297_s10 = inlined_call_operand.vmem [shape: f32[8,128], index: 10, kind: input, shape index: {}]   ;;  %s298_s11 = inlined_call_operand.vmem [shape: f32[8,128], index: 11, kind: input, shape index: {}]   ;;  %s299_s12 = inlined_call_operand.vmem [shape: f32[8,128], index: 12, kind: input, shape index: {}]   ;;  %s300_s13 = inlined_call_operand.vmem [shape: f32[8,128], index: 13, kind: input, shape index: {}]   ;;  %s301_s14 = inlined_call_operand.vmem [shape: f32[8,128], index: 14, kind: input, shape index: {}]   ;;  %s302_s15 = inlined_call_operand.vmem [shape: f32[8,128], index: 15, kind: output, shape index: {}]  }
   0x1   :  { %s21_s20 = sshll.u32 %s287_s0, 4  ;;  %s22_s20 = int_to_ptr.vmem [resolvable:$true] %s21_s20 }
   0x2   :  { %24 = dma.vmem_to_smem %s22_s20, 16, %s158_s21, [#allocation2] }
   0x3   :  { %156 = dma.done.wait [#allocation2], 16 }
   0x4   :  { %157 = vsyncadd [#allocation2], 4294967280 }
   0x5   :  { %27 = sfence }
   0x6   :  { %s56_s22 = sld [smem:[#allocation3]]  ;;  %v57_v0 = vld [vmem:[%s288_s1] sm:$0xff] }
   0x7   :  { %s130_s23 = sld [smem:[#allocation3 + $0x1]]  ;;  %v61_v1 = vld [vmem:[%s289_s2] sm:$0xff] }
   0x8   :  { %s131_s24 = sld [smem:[#allocation3 + $0x2]]  ;;  %v66_v3 = vld [vmem:[%s290_s3] sm:$0xff] }
   0x9   :  { %s132_s25 = sld [smem:[#allocation3 + $0x3]]  ;;  %v71_v6 = vld [vmem:[%s291_s4] sm:$0xff] }
   0xa   :  { %s133_s28 = sld [smem:[#allocation3 + $0x4]]  ;;  %v76_v11 = vld [vmem:[%s292_s5] sm:$0xff] }
   0xb   :  { %s134_s0 = sld [smem:[#allocation3 + $0x5]]  ;;  %v81_v15 = vld [vmem:[%s293_s6] sm:$0xff] }
   0xc   :  { %v58_v2 = vstv %s56_s22  ;;  %s135_s18 = sld [smem:[#allocation3 + $0x6]]  ;;  %v86_v19 = vld [vmem:[%s294_s7] sm:$0xff] }
   0xd   :  { %v59_v4 = vmul.f32 %v58_v2, %v57_v0  ;;  %v62_v5 = vstv %s130_s23  ;;  %s136_s21 = sld [smem:[#allocation3 + $0x7]]  ;;  %v91_v23 = vld [vmem:[%s295_s8] sm:$0xff] }
   0xe   :  { %v63_v7 = vmul.f32 %v62_v5, %v61_v1  ;;  %v67_v8 = vstv %s131_s24  ;;  %s137_s22 = sld [smem:[#allocation3 + $0x8]]  ;;  %v96_v27 = vld [vmem:[%s296_s9] sm:$0xff] }
   0xf   :  { %v68_v9 = vmul.f32 %v67_v8, %v66_v3  ;;  %v72_v10 = vstv %s132_s25  ;;  %s138_s23 = sld [smem:[#allocation3 + $0x9]]  ;;  %v101_v31 = vld [vmem:[%s297_s10] sm:$0xff] }
  0x10   :  { %v64_v12 = vadd.f32 %v63_v7, %v59_v4  ;;  %v73_v13 = vmul.f32 %v72_v10, %v71_v6  ;;  %v77_v14 = vstv %s133_s28  ;;  %s139_s25 = sld [smem:[#allocation3 + $0xa]]  ;;  %v106_v35 = vld [vmem:[%s298_s11] sm:$0xff] }
  0x11   :  { %v82_v16 = vstv %s134_s0  ;;  %v78_v18 = vmul.f32 %v77_v14, %v76_v11  ;;  %s140_s28 = sld [smem:[#allocation3 + $0xb]]  ;;  %v111_v39 = vld [vmem:[%s299_s12] sm:$0xff] }
  0x12   :  { %v69_v17 = vadd.f32 %v68_v9, %v64_v12  ;;  %v87_v20 = vstv %s135_s18  ;;  %v83_v22 = vmul.f32 %v82_v16, %v81_v15  ;;  %s141_s30 = sld [smem:[#allocation3 + $0xc]]  ;;  %v116_v43 = vld [vmem:[%s300_s13] sm:$0xff] }
  0x13   :  { %v92_v24 = vstv %s136_s21  ;;  %v88_v26 = vmul.f32 %v87_v20, %v86_v19  ;;  %s142_s16 = sld [smem:[#allocation3 + $0xd]]  ;;  %v121_v47 = vld [vmem:[%s301_s14] sm:$0xff] }
  0x14   :  { %v74_v21 = vadd.f32 %v73_v13, %v69_v17  ;;  %v97_v28 = vstv %s137_s22  ;;  %v93_v30 = vmul.f32 %v92_v24, %v91_v23 }
  0x15   :  { %v102_v32 = vstv %s138_s23  ;;  %v98_v34 = vmul.f32 %v97_v28, %v96_v27 }
  0x16   :  { %v79_v25 = vadd.f32 %v78_v18, %v74_v21  ;;  %v107_v36 = vstv %s139_s25  ;;  %v103_v38 = vmul.f32 %v102_v32, %v101_v31 }
  0x17   :  { %v112_v40 = vstv %s140_s28  ;;  %v108_v42 = vmul.f32 %v107_v36, %v106_v35 }
  0x18   :  { %v84_v29 = vadd.f32 %v83_v22, %v79_v25  ;;  %v117_v44 = vstv %s141_s30  ;;  %v113_v46 = vmul.f32 %v112_v40, %v111_v39 }
  0x19   :  { %v122_v48 = vstv %s142_s16  ;;  %v118_v50 = vmul.f32 %v117_v44, %v116_v43 }
  0x1a   :  { %v89_v33 = vadd.f32 %v88_v26, %v84_v29  ;;  %v123_v52 = vmul.f32 %v122_v48, %v121_v47 }
  0x1c   :  { %v94_v37 = vadd.f32 %v93_v30, %v89_v33 }
  0x1e   :  { %v99_v41 = vadd.f32 %v98_v34, %v94_v37 }
  0x20   :  { %v104_v45 = vadd.f32 %v103_v38, %v99_v41 }
  0x22   :  { %v109_v49 = vadd.f32 %v108_v42, %v104_v45 }
  0x24   :  { %v114_v51 = vadd.f32 %v113_v46, %v109_v49 }
  0x26   :  { %v119_v53 = vadd.f32 %v118_v50, %v114_v51 }
  0x28   :  { %v124_v54 = vadd.f32 %v123_v52, %v119_v53 }
  0x2a   :  { %125 = vst [vmem:[%s302_s15] sm:$0xff] %v124_v54 }

// kernel: _lambda_.519
= control target key start
LH: loop header
LB: loop body
LE: loop exit
PB: predicated region body
PF: predicated region fallthrough
CT: control target
= control target key end

     0   :  { %s221_s30 = smov [#allocation3]   ;;  %s406_s0 = inlined_call_operand.vmem [shape: f32[21], index: 0, kind: input, shape index: {}]   ;;  %s407_s1 = inlined_call_operand.vmem [shape: f32[8,128], index: 1, kind: input, shape index: {}]   ;;  %s408_s2 = inlined_call_operand.vmem [shape: f32[8,128], index: 2, kind: input, shape index: {}]   ;;  %s409_s3 = inlined_call_operand.vmem [shape: f32[8,128], index: 3, kind: input, shape index: {}]   ;;  %s410_s4 = inlined_call_operand.vmem [shape: f32[8,128], index: 4, kind: input, shape index: {}]   ;;  %s411_s5 = inlined_call_operand.vmem [shape: f32[8,128], index: 5, kind: input, shape index: {}]   ;;  %s412_s6 = inlined_call_operand.vmem [shape: f32[8,128], index: 6, kind: input, shape index: {}]   ;;  %s413_s7 = inlined_call_operand.vmem [shape: f32[8,128], index: 7, kind: input, shape index: {}]   ;;  %s414_s8 = inlined_call_operand.vmem [shape: f32[8,128], index: 8, kind: input, shape index: {}]   ;;  %s415_s9 = inlined_call_operand.vmem [shape: f32[8,128], index: 9, kind: input, shape index: {}]   ;;  %s416_s10 = inlined_call_operand.vmem [shape: f32[8,128], index: 10, kind: input, shape index: {}]   ;;  %s417_s11 = inlined_call_operand.vmem [shape: f32[8,128], index: 11, kind: input, shape index: {}]   ;;  %s418_s12 = inlined_call_operand.vmem [shape: f32[8,128], index: 12, kind: input, shape index: {}]   ;;  %s419_s13 = inlined_call_operand.vmem [shape: f32[8,128], index: 13, kind: input, shape index: {}]   ;;  %s420_s14 = inlined_call_operand.vmem [shape: f32[8,128], index: 14, kind: input, shape index: {}]   ;;  %s421_s15 = inlined_call_operand.vmem [shape: f32[8,128], index: 15, kind: input, shape index: {}]   ;;  %s422_s16 = inlined_call_operand.vmem [shape: f32[8,128], index: 16, kind: input, shape index: {}]   ;;  %s423_s17 = inlined_call_operand.vmem [shape: f32[8,128], index: 17, kind: input, shape index: {}]   ;;  %s424_s18 = inlined_call_operand.vmem [shape: f32[8,128], index: 18, kind: input, shape index: {}]   ;;  %s425_s19 = inlined_call_operand.vmem [shape: f32[8,128], index: 19, kind: input, shape index: {}]   ;;  %s426_s20 = inlined_call_operand.vmem [shape: f32[8,128], index: 20, kind: input, shape index: {}]   ;;  %s427_s21 = inlined_call_operand.vmem [shape: f32[8,128], index: 21, kind: input, shape index: {}]   ;;  %s428_s22 = inlined_call_operand.vmem [shape: f32[8,128], index: 22, kind: output, shape index: {}]  }
   0x1   :  { %429 = sst [smem:[#allocation5_spill]] %s406_s0 }
   0x2   :  { %430 = sst [smem:[#allocation6_spill]] %s407_s1 }
   0x3   :  { %431 = sst [smem:[#allocation7_spill]] %s408_s2 }
   0x4   :  { %432 = sst [smem:[#allocation8_spill]] %s409_s3 }
   0x5   :  { %433 = sst [smem:[#allocation9_spill]] %s410_s4 }
   0x6   :  { %434 = sst [smem:[#allocation10_spill]] %s411_s5 }
   0x7   :  { %435 = sst [smem:[#allocation11_spill]] %s412_s6 }
   0x8   :  { %436 = sst [smem:[#allocation12_spill]] %s422_s16 }
   0x9   :  { %437 = sst [smem:[#allocation13_spill]] %s426_s20 }
   0xa   :  { %438 = sst [smem:[#allocation14_spill]] %s427_s21 }
   0xb   :  { %439 = sst [smem:[#allocation15_spill]] %s428_s22 }
   0xc   :  { %s440_s29 = sld [smem:[#allocation5_spill]] }
  0x12   :  { %s28_s16 = sshll.u32 %s440_s29, 4  ;;  %s29_s16 = int_to_ptr.vmem [resolvable:$true] %s28_s16 }
  0x13   :  { %31 = dma.vmem_to_smem %s29_s16, 16, %s221_s30, [#allocation2] }
  0x14   :  { %219 = dma.done.wait [#allocation2], 16 }
  0x15   :  { %220 = vsyncadd [#allocation2], 4294967280 }
  0x16   :  { %34 = sfence }
  0x17   :  { %s77_s4 = sld [smem:[#allocation3]]  ;;  %v107_v19 = vld [vmem:[%s413_s7] sm:$0xff] }
  0x18   :  { %s186_s0 = sld [smem:[#allocation3 + $0x1]]  ;;  %v112_v23 = vld [vmem:[%s414_s8] sm:$0xff] }
  0x19   :  { %s187_s23 = sld [smem:[#allocation3 + $0x2]]  ;;  %v117_v27 = vld [vmem:[%s415_s9] sm:$0xff] }
  0x1a   :  { %s188_s1 = sld [smem:[#allocation3 + $0x3]]  ;;  %v122_v31 = vld [vmem:[%s416_s10] sm:$0xff] }
  0x1b   :  { %s441_s6 = sld [smem:[#allocation6_spill]]  ;;  %v127_v35 = vld [vmem:[%s417_s11] sm:$0xff] }
  0x1c   :  { %s189_s25 = sld [smem:[#allocation3 + $0x4]]  ;;  %v132_v39 = vld [vmem:[%s418_s12] sm:$0xff] }
  0x1d   :  { %s442_s27 = sld [smem:[#allocation7_spill]]  ;;  %v79_v2 = vstv %s77_s4  ;;  %v137_v43 = vld [vmem:[%s419_s13] sm:$0xff] }
  0x1e   :  { %s190_s3 = sld [smem:[#allocation3 + $0x5]]  ;;  %v83_v5 = vstv %s186_s0  ;;  %v142_v47 = vld [vmem:[%s420_s14] sm:$0xff] }
  0x1f   :  { %s443_s29 = sld [smem:[#allocation8_spill]]  ;;  %v88_v8 = vstv %s187_s23  ;;  %v147_v51 = vld [vmem:[%s421_s15] sm:$0xff] }
  0x20   :  { %s191_s30 = sld [smem:[#allocation3 + $0x6]]  ;;  %v93_v10 = vstv %s188_s1  ;;  %v157_v59 = vld [vmem:[%s423_s17] sm:$0xff] }
  0x21   :  { %v78_v0 = vld [vmem:[%s441_s6] sm:$0xff]  ;;  %s444_s20 = sld [smem:[#allocation9_spill]] }
  0x22   :  { %v80_v4 = vmul.f32 %v79_v2, %v78_v0  ;;  %s192_s5 = sld [smem:[#allocation3 + $0x7]]  ;;  %v98_v14 = vstv %s189_s25  ;;  %v162_v63 = vld [vmem:[%s424_s18] sm:$0xff] }
  0x23   :  { %v82_v1 = vld [vmem:[%s442_s27] sm:$0xff]  ;;  %s445_s26 = sld [smem:[#allocation10_spill]] }
  0x24   :  { %v84_v7 = vmul.f32 %v83_v5, %v82_v1  ;;  %s193_s4 = sld [smem:[#allocation3 + $0x8]]  ;;  %v103_v16 = vstv %s190_s3 }
  0x25   :  { %v87_v3 = vld [vmem:[%s443_s29] sm:$0xff]  ;;  %s446_s0 = sld [smem:[#allocation11_spill]] }
  0x26   :  { %v89_v9 = vmul.f32 %v88_v8, %v87_v3  ;;  %v85_v12 = vadd.f32 %v84_v7, %v80_v4  ;;  %s194_s21 = sld [smem:[#allocation3 + $0x9]]  ;;  %v108_v20 = vstv %s191_s30  ;;  %v167_v3 = vld [vmem:[%s425_s19] sm:$0xff] }
  0x27   :  { %v92_v6 = vld [vmem:[%s444_s20] sm:$0xff]  ;;  %s195_s23 = sld [smem:[#allocation3 + $0xa]]  ;;  %v109_v26 = vmul.f32 %v108_v20, %v107_v19 }
  0x28   :  { %v94_v13 = vmul.f32 %v93_v10, %v92_v6  ;;  %v90_v17 = vadd.f32 %v89_v9, %v85_v12  ;;  %v113_v24 = vstv %s192_s5  ;;  %s196_s25 = sld [smem:[#allocation3 + $0xb]] }
  0x29   :  { %v97_v11 = vld [vmem:[%s445_s26] sm:$0xff]  ;;  %s197_s29 = sld [smem:[#allocation3 + $0xc]]  ;;  %v114_v30 = vmul.f32 %v113_v24, %v112_v23 }
  0x2a   :  { %v99_v18 = vmul.f32 %v98_v14, %v97_v11  ;;  %v95_v21 = vadd.f32 %v94_v13, %v90_v17  ;;  %v118_v28 = vstv %s193_s4  ;;  %s198_s24 = sld [smem:[#allocation3 + $0xd]] }
  0x2b   :  { %v102_v15 = vld [vmem:[%s446_s0] sm:$0xff]  ;;  %v119_v34 = vmul.f32 %v118_v28, %v117_v27  ;;  %s199_s6 = sld [smem:[#allocation3 + $0xe]] }
  0x2c   :  { %v104_v22 = vmul.f32 %v103_v16, %v102_v15  ;;  %v100_v25 = vadd.f32 %v99_v18, %v95_v21  ;;  %v123_v32 = vstv %s194_s21  ;;  %s200_s4 = sld [smem:[#allocation3 + $0xf]] }
  0x2d   :  { %v128_v36 = vstv %s195_s23  ;;  %v124_v38 = vmul.f32 %v123_v32, %v122_v31  ;;  %s201_s27 = sld [smem:[#allocation3 + $0x10]] }
  0x2e   :  { %v105_v29 = vadd.f32 %v104_v22, %v100_v25  ;;  %v133_v40 = vstv %s196_s25  ;;  %v129_v42 = vmul.f32 %v128_v36, %v127_v35  ;;  %s202_s21 = sld [smem:[#allocation3 + $0x11]] }
  0x2f   :  { %v138_v44 = vstv %s197_s29  ;;  %v134_v46 = vmul.f32 %v133_v40, %v132_v39  ;;  %s203_s22 = sld [smem:[#allocation3 + $0x12]] }
  0x30   :  { %v110_v33 = vadd.f32 %v109_v26, %v105_v29  ;;  %v143_v48 = vstv %s198_s24  ;;  %v139_v50 = vmul.f32 %v138_v44, %v137_v43  ;;  %s447_s1 = sld [smem:[#allocation12_spill]] }
  0x31   :  { %v148_v52 = vstv %s199_s6  ;;  %v144_v54 = vmul.f32 %v143_v48, %v142_v47  ;;  %s204_s28 = sld [smem:[#allocation3 + $0x13]] }
  0x32   :  { %v115_v37 = vadd.f32 %v114_v30, %v110_v33  ;;  %v153_v56 = vstv %s200_s4  ;;  %v149_v58 = vmul.f32 %v148_v52, %v147_v51  ;;  %s205_s3 = sld [smem:[#allocation3 + $0x14]] }
  0x33   :  { %v158_v60 = vstv %s201_s27  ;;  %s448_s24 = sld [smem:[#allocation13_spill]] }
  0x34   :  { %v120_v41 = vadd.f32 %v119_v34, %v115_v37  ;;  %v163_v0 = vstv %s202_s21  ;;  %v159_v2 = vmul.f32 %v158_v60, %v157_v59  ;;  %s449_s18 = sld [smem:[#allocation14_spill]] }
  0x35   :  { %v168_v4 = vstv %s203_s22  ;;  %v164_v6 = vmul.f32 %v163_v0, %v162_v63  ;;  %s450_s9 = sld [smem:[#allocation15_spill]] }
  0x36   :  { %v125_v45 = vadd.f32 %v124_v38, %v120_v41  ;;  %v152_v55 = vld [vmem:[%s447_s1] sm:$0xff]  ;;  %v169_v10 = vmul.f32 %v168_v4, %v167_v3 }
  0x37   :  { %v154_v62 = vmul.f32 %v153_v56, %v152_v55  ;;  %v173_v8 = vstv %s204_s28 }
  0x38   :  { %v130_v49 = vadd.f32 %v129_v42, %v125_v45  ;;  %v178_v12 = vstv %s205_s3 }
  0x39   :  { %v172_v7 = vld [vmem:[%s448_s24] sm:$0xff] }
  0x3a   :  { %v135_v53 = vadd.f32 %v134_v46, %v130_v49  ;;  %v177_v11 = vld [vmem:[%s449_s18] sm:$0xff]  ;;  %v174_v14 = vmul.f32 %v173_v8, %v172_v7 }
  0x3b   :  { %v179_v16 = vmul.f32 %v178_v12, %v177_v11 }
  0x3c   :  { %v140_v57 = vadd.f32 %v139_v50, %v135_v53 }
  0x3e   :  { %v145_v61 = vadd.f32 %v144_v54, %v140_v57 }
  0x40   :  { %v150_v1 = vadd.f32 %v149_v58, %v145_v61 }
  0x42   :  { %v155_v5 = vadd.f32 %v154_v62, %v150_v1 }
  0x44   :  { %v160_v9 = vadd.f32 %v159_v2, %v155_v5 }
  0x46   :  { %v165_v13 = vadd.f32 %v164_v6, %v160_v9 }
  0x48   :  { %v170_v15 = vadd.f32 %v169_v10, %v165_v13 }
  0x4a   :  { %v175_v17 = vadd.f32 %v174_v14, %v170_v15 }
  0x4c   :  { %v180_v18 = vadd.f32 %v179_v16, %v175_v17 }
  0x4e   :  { %181 = vst [vmem:[%s450_s9] sm:$0xff] %v180_v18 }

// kernel: _lambda_.524
= control target key start
LH: loop header
LB: loop body
LE: loop exit
PB: predicated region body
PF: predicated region fallthrough
CT: control target
= control target key end

     0   :  { %vm76_vm0 = vcmask 130048   ;;  %s324_s1 = inlined_call_operand.vmem [shape: bf16[16,128], index: 1, kind: input, shape index: {}]   ;;  %s325_s0 = inlined_call_operand.vmem [shape: bf16[128,16], index: 0, kind: input, shape index: {}]   ;;  %s326_s2 = inlined_call_operand.vmem [shape: f32[128,128], index: 2, kind: output, shape index: {}]  }
   0x1   :  { %v222_v0 = vld [vmem:[%s324_s1] sm:$0xff]  ;;  %v216_v2 = vld [vmem:[%s325_s0 + $0x10] sm:$0xff]  ;;  %v215_v5 = vld [vmem:[%s325_s0 + $0x8] sm:$0xff] }
   0x2   :  { %v214_v1 = vld [vmem:[%s325_s0] sm:$0xff]  ;;  %108 = vmatpush.bf16.msra.mxu0 %v222_v0  ;;  %223 = vmatpush.bf16.msra.mxu1 %v222_v0  ;;  %v220_v4 = vld [vmem:[%s325_s0 + $0x30] sm:$0xff]  ;;  %v217_v6 = vld [vmem:[%s325_s0 + $0x18] sm:$0xff] }
   0x3   :  { %v218_v3 = vld [vmem:[%s325_s0 + $0x20] sm:$0xff]  ;;  %224 = vmatpush.bf16.msra.mxu2 %v222_v0  ;;  %225 = vmatpush.bf16.msra.mxu3 %v222_v0  ;;  %v219_v7 = vld [vmem:[%s325_s0 + $0x28] sm:$0xff]  ;;  %v221_v8 = vld [vmem:[%s325_s0 + $0x38] sm:$0xff] }
   0x5   :  { %206 = vmatmul.msk.bf16.vlgmr.msra.gmra.mxu0 %vm76_vm0, %v214_v1  ;;  %208 = vmatmul.msk.bf16.vlgmr.msra.gmra.mxu1 %vm76_vm0, %v216_v2 }
   0x6   :  { %210 = vmatmul.msk.bf16.vlgmr.msra.gmra.mxu2 %vm76_vm0, %v218_v3  ;;  %212 = vmatmul.msk.bf16.vlgmr.msra.gmra.mxu3 %vm76_vm0, %v220_v4 }
  0x15   :  { %207 = vmatmul.msk.bf16.gmra.mxu0 %vm76_vm0, %v215_v5  ;;  %209 = vmatmul.msk.bf16.gmra.mxu1 %vm76_vm0, %v217_v6 }
  0x16   :  { %211 = vmatmul.msk.bf16.gmra.mxu2 %vm76_vm0, %v219_v7  ;;  %213 = vmatmul.msk.bf16.gmra.mxu3 %vm76_vm0, %v221_v8 }
  0x82   :  { %v110_v9 = vpop.f32.mrf.mxu0  ;;  %v120_v10 = vpop.f32.mrf.mxu1 }
  0x83   :  { %150 = vst [vmem:[%s326_s2] sm:$0xff] %v110_v9 }
  0x84   :  { %154 = vst [vmem:[%s326_s2 + $0x20] sm:$0xff] %v120_v10 }
  0x89   :  { %v130_v11 = vpop.f32.mrf.mxu2  ;;  %v140_v12 = vpop.f32.mrf.mxu3 }
  0x8a   :  { %158 = vst [vmem:[%s326_s2 + $0x40] sm:$0xff] %v130_v11  ;;  %v112_v13 = vpop.f32.mrf.mxu0  ;;  %v122_v14 = vpop.f32.mrf.mxu1 }
  0x8b   :  { %162 = vst [vmem:[%s326_s2 + $0x60] sm:$0xff] %v140_v12 }
  0x8c   :  { %151 = vst [vmem:[%s326_s2 + $0x8] sm:$0xff] %v112_v13 }
  0x8d   :  { %155 = vst [vmem:[%s326_s2 + $0x28] sm:$0xff] %v122_v14 }
  0x91   :  { %v132_v15 = vpop.f32.mrf.mxu2  ;;  %v142_v16 = vpop.f32.mrf.mxu3 }
  0x92   :  { %159 = vst [vmem:[%s326_s2 + $0x48] sm:$0xff] %v132_v15  ;;  %v115_v17 = vpop.f32.mrf.mxu0  ;;  %v125_v18 = vpop.f32.mrf.mxu1 }
  0x93   :  { %163 = vst [vmem:[%s326_s2 + $0x68] sm:$0xff] %v142_v16 }
  0x94   :  { %152 = vst [vmem:[%s326_s2 + $0x10] sm:$0xff] %v115_v17 }
  0x95   :  { %156 = vst [vmem:[%s326_s2 + $0x30] sm:$0xff] %v125_v18 }
  0x99   :  { %v135_v19 = vpop.f32.mrf.mxu2  ;;  %v145_v20 = vpop.f32.mrf.mxu3 }
  0x9a   :  { %160 = vst [vmem:[%s326_s2 + $0x50] sm:$0xff] %v135_v19  ;;  %v117_v21 = vpop.f32.mrf.mxu0  ;;  %v127_v22 = vpop.f32.mrf.mxu1 }
  0x9b   :  { %164 = vst [vmem:[%s326_s2 + $0x70] sm:$0xff] %v145_v20 }
  0x9c   :  { %153 = vst [vmem:[%s326_s2 + $0x18] sm:$0xff] %v117_v21 }
  0x9d   :  { %157 = vst [vmem:[%s326_s2 + $0x38] sm:$0xff] %v127_v22 }
  0xa1   :  { %v137_v23 = vpop.f32.mrf.mxu2  ;;  %v147_v24 = vpop.f32.mrf.mxu3 }
  0xa2   :  { %161 = vst [vmem:[%s326_s2 + $0x58] sm:$0xff] %v137_v23 }
  0xa3   :  { %165 = vst [vmem:[%s326_s2 + $0x78] sm:$0xff] %v147_v24 }

// kernel: _lambda_.683
= control target key start
LH: loop header
LB: loop body
LE: loop exit
PB: predicated region body
PF: predicated region fallthrough
CT: control target
= control target key end

     0   :  { %vm43_vm0 = vcmask 1040384   ;;  %v86_v2 = vmov 0   ;;  %vm39_vm1 = vcmask 269312   ;;  %s120_s1 = inlined_call_operand.vmem [shape: bf16[33,128], index: 1, kind: input, shape index: {}]   ;;  %s121_s0 = inlined_call_operand.vmem [shape: bf16[16,33], index: 0, kind: input, shape index: {}]   ;;  %s122_s2 = inlined_call_operand.vmem [shape: f32[16,128], index: 2, kind: output, shape index: {}]  }
   0x1   :  { %v18_v0 = vld [vmem:[%s120_s1 + $0x10] sm:$0x1]  ;;  %v45_v3 = vsel %vm43_vm0, 65535, %v86_v2  ;;  %v84_v6 = vld [vmem:[%s120_s1 + $0x8] sm:$0xff]  ;;  %v83_v7 = vld [vmem:[%s120_s1] sm:$0xff] }
   0x2   :  { %v33_v1 = vunpack.c.l.b16 %v18_v0  ;;  %v82_v8 = vld [vmem:[%s121_s0] sm:$0xff] }
   0x4   :  { %v36_v4 = vpack.c.b16 %v33_v1, %v33_v1 }
   0x6   :  { %v47_v5 = vand.u32 %v45_v3, %v36_v4 }
   0x8   :  { %54 = vmatpush.bf16.msra.mxu0 %v47_v5 }
   0xc   :  { %55 = vmatpush.bf16.msra.mxu0 %v84_v6 }
  0x10   :  { %56 = vmatpush.bf16.msra.mxu0 %v83_v7 }
  0x13   :  { %81 = vmatmul.msk.bf16.vlgmr.msra.gmra.mxu0 %vm39_vm1, %v82_v8 }
  0x90   :  { %v58_v9 = vpop.f32.mrf.mxu0 }
  0x91   :  { %63 = vst [vmem:[%s122_s2] sm:$0xff] %v58_v9 }
  0x98   :  { %v60_v10 = vpop.f32.mrf.mxu0 }
  0x99   :  { %64 = vst [vmem:[%s122_s2 + $0x8] sm:$0xff] %v60_v10 }

</bundles_post_ra>
